<compile_context>
chip_gen: v6e
topology: v6e:2x2x1
jax: 0.10.0
libtpu: 0.0.40
codegen_flags: <defaults>
</compile_context>

<pallas_src>
import functools
import math

import jax
import jax.numpy as jnp
from jax import lax
from jax.experimental import pallas as pl
from jax.experimental.pallas import tpu as pltpu


# ----------------------------------------------------------------------------- tiling helpers
def _divisors(n):
    ds = set()
    i = 1
    while i * i <= n:
        if n % i == 0:
            ds.add(i)
            ds.add(n // i)
        i += 1
    return sorted(ds)


def _round_up(x, m):
    return (x + m - 1) // m * m


def _pick_m_tile(hw, cap=512):
    """Largest divisor of hw that is a multiple of 8 and <= cap, preferring >= 2 tiles."""
    divs = [d for d in _divisors(hw) if d % 8 == 0 and d <= cap]
    if not divs:
        return hw
    two = [d for d in divs if hw // d >= 2]
    return max(two) if two else max(divs)


def _pick_lane_tile(n):
    if n % 256 == 0:
        return 256
    if n % 128 == 0:
        return 128
    return n


def _pick_rows(hw, c):
    cap = max(64, min(1024, (1 << 21) // max(1, c)))
    divs = [d for d in _divisors(hw) if d % 8 == 0 and d <= cap]
    if not divs:
        return hw
    two = [d for d in divs if hw // d >= 2]
    return max(two) if two else max(divs)


def _dw_row_blocks(ho, other_steps):
    """Pick a number of output-row blocks so the dw grid has >= 4 steps (pipelining + v7x)."""
    if other_steps >= 4:
        return 1
    for rb in (2, 3, 4, 6, 8):
        if ho % rb == 0 and other_steps * rb >= 4:
            return rb
    return 1


# ----------------------------------------------------------------------------- matmul kernel
def _mm_kernel(*refs, pre, act, with_stats):
    if pre:
        x_ref, a_ref, b_ref, w_ref = refs[:4]
        rest = refs[4:]
    else:
        x_ref, w_ref = refs[:2]
        rest = refs[2:]
    if with_stats:
        o_ref, s_ref = rest
    else:
        (o_ref,) = rest

    if pre:
        # fused GroupNorm affine (+SiLU) of the *producer* layer, applied to the input tile
        xf = x_ref[...].astype(jnp.float32) * a_ref[0] + b_ref[0]
        if act:
            xf = xf * jax.nn.sigmoid(xf)
        x = xf.astype(jnp.bfloat16)
    else:
        x = x_ref[...]
    acc = jnp.dot(x, w_ref[...], preferred_element_type=jnp.float32)
    o_ref[...] = acc.astype(o_ref.dtype)
    if with_stats:
        s = jnp.sum(acc, axis=0, keepdims=True)
        sq = jnp.sum(acc * acc, axis=0, keepdims=True)
        s_ref[0] = jnp.concatenate([s, sq], axis=0)


def _matmul(x2, w, pre=None, *, act=False, want_stats=True, n_img=1, hw=None):
    """x2: (M, K) bf16 with M = n_img*hw and M-tiles never straddling images; w: (K, Cout) bf16.
       pre: optional (scale, shift) each (n_img, K) f32, applied (+SiLU if act) to x before the
       dot (fused GroupNorm of the producing layer).  Returns (y bf16, per-image stats | None)."""
    M, K = x2.shape
    Cout = w.shape[1]
    hw = M // n_img if hw is None else hw
    tm = _pick_m_tile(hw)
    tn = _pick_lane_tile(Cout)
    Tm, Tn = M // tm, Cout // tn
    tpi = hw // tm                                   # M-tiles per image

    in_specs = [pl.BlockSpec((tm, K), lambda j, i: (i, 0))]
    args = [x2]
    if pre is not None:
        in_specs += [pl.BlockSpec((1, 1, K), lambda j, i: (i // tpi, 0, 0)),
                     pl.BlockSpec((1, 1, K), lambda j, i: (i // tpi, 0, 0))]
        args += [pre[0].reshape(n_img, 1, K), pre[1].reshape(n_img, 1, K)]
    in_specs.append(pl.BlockSpec((K, tn), lambda j, i: (0, j)))
    args.append(w)

    out_shape = [jax.ShapeDtypeStruct((M, Cout), jnp.bfloat16)]
    out_specs = [pl.BlockSpec((tm, tn), lambda j, i: (i, j))]
    if want_stats:
        out_shape.append(jax.ShapeDtypeStruct((Tm, 2, Cout), jnp.float32))
        out_specs.append(pl.BlockSpec((1, 2, tn), lambda j, i: (i, 0, j)))

    res = pl.pallas_call(
        functools.partial(_mm_kernel, pre=pre is not None, act=act, with_stats=want_stats),
        out_shape=tuple(out_shape) if want_stats else out_shape[0],
        grid_spec=pltpu.PrefetchScalarGridSpec(
            num_scalar_prefetch=0,
            grid=(Tn, Tm),                            # M innermost -> weight tile stays resident
            in_specs=in_specs,
            out_specs=tuple(out_specs) if want_stats else out_specs[0]),
        compiler_params=pltpu.CompilerParams(
            dimension_semantics=("parallel", "parallel")),
    )(*args)

    if want_stats:
        y, st = res
        stats = st.reshape(n_img, tpi, 2, Cout).sum(axis=1)
        return y, stats
    return res, None


# ----------------------------------------------------------------------------- conv wrappers
def conv_pw(x, w, pre=None, *, pre_act=False, want_stats=True):
    """1x1 conv; x: (N,H,W,Cin) bf16, w: (Cin,Cout) bf16."""
    N, H, W, Cin = x.shape
    HW = H * W
    Cout = w.shape[1]
    if HW >= 8:
        x2 = x.reshape(N * HW, Cin)
        y, stats = _matmul(x2, w, pre, act=pre_act, want_stats=want_stats, n_img=N, hw=HW)
        return y.reshape(N, H, W, Cout), stats
    # HW == 1 (head after the pool): tiny path, affine applied in XLA glue, rows padded to 8.
    x2 = x.reshape(N * HW, Cin)
    if pre is not None:
        xf = x2.astype(jnp.float32) * pre[0] + pre[1]
        if pre_act:
            xf = xf * jax.nn.sigmoid(xf)
        x2 = xf.astype(jnp.bfloat16)
    M = x2.shape[0]
    Mp = _round_up(M, 8)
    if Mp != M:
        x2 = jnp.pad(x2, ((0, Mp - M), (0, 0)))
    y, _ = _matmul(x2, w, None, want_stats=False, n_img=1, hw=Mp)
    y = y[:M].reshape(N, H, W, Cout)
    if want_stats:
        yf = y.astype(jnp.float32).reshape(N, HW, Cout)
        stats = jnp.stack([yf.sum(axis=1), (yf * yf).sum(axis=1)], axis=1)
        return y, stats
    return y, None


def conv_dense(x, wm, *, k, stride, pad):
    """Dense KxK conv via im2col (XLA glue) + fused Pallas matmul; wm: (k*k*Cin, Cout) bf16."""
    # TODO(synk): move the im2col into the kernel (k*k shifted matmuls into one f32 acc)
    # so the expanded patch tensor never hits HBM (stem + FusedIB only).
    N, H, W, Cin = x.shape
    Cout = wm.shape[1]
    xp = jnp.pad(x, ((0, 0), (pad, pad), (pad, pad), (0, 0)))
    Ho = (H + 2 * pad - k) // stride + 1
    Wo = (W + 2 * pad - k) // stride + 1
    cols = []
    for ki in range(k):
        for kj in range(k):
            cols.append(xp[:, ki:ki + stride * (Ho - 1) + 1:stride,
                           kj:kj + stride * (Wo - 1) + 1:stride, :])
    patches = jnp.concatenate(cols, axis=-1).reshape(N * Ho * Wo, k * k * Cin)
    y, stats = _matmul(patches, wm, None, want_stats=True, n_img=N, hw=Ho * Wo)
    return y.reshape(N, Ho, Wo, Cout), stats


# ----------------------------------------------------------------------------- depthwise conv
def _dw_kernel(x_ref, w_ref, o_ref, s_ref, *, K, rh):
    # x_ref: (1, Hp, Wp, tc) bf16 (full padded spatial extent, one channel chunk; resident
    #         across the row-block grid axis).  w_ref: (K, K, tc) f32.
    # o_ref: (1, rh, Wo, tc) bf16 -- one block of output rows.
    # s_ref: (1, 1, 2, tc) f32   -- [sum, sum-of-squares] over this block (fused GN stats).
    Wo, tc = o_ref.shape[2], o_ref.shape[3]
    r0 = pl.program_id(2) * rh
    w = w_ref[...]

    def row_body(i, carry):
        win = x_ref[0, pl.ds(r0 + i, K), :, :]               # (K, Wp, tc) bf16
        acc = jnp.zeros((Wo, tc), jnp.float32)                # register-resident row accumulator
        for ki in range(K):
            xr = win[ki].astype(jnp.float32)                  # (Wp, tc)
            for kj in range(K):
                acc = acc + xr[kj:kj + Wo, :] * w[ki, kj][None, :]
        o_ref[0, pl.ds(i, 1), :, :] = acc[None].astype(o_ref.dtype)
        s = jnp.sum(acc, axis=0, keepdims=True)
        sq = jnp.sum(acc * acc, axis=0, keepdims=True)
        return carry + jnp.concatenate([s, sq], axis=0)

    stats = lax.fori_loop(0, rh, row_body, jnp.zeros((2, tc), jnp.float32))
    s_ref[0, 0] = stats


def conv_dw(x, w, *, stride, pad):
    """Depthwise KxK conv.  x: (N,H,W,C) bf16; w: (K,K,C) f32.
       Returns (strided output bf16, fused per-image channel stats f32 | None)."""
    N, H, W, C = x.shape
    K = w.shape[0]
    xp = jnp.pad(x, ((0, 0), (pad, pad), (pad, pad), (0, 0)))
    Hp, Wp = H + 2 * pad, W + 2 * pad
    Ho, Wo = Hp - K + 1, Wp - K + 1                           # stride-1 output extent
    tc = _pick_lane_tile(C)
    cc = C // tc
    RB = _dw_row_blocks(Ho, N * cc)
    rh = Ho // RB

    out, stats = pl.pallas_call(
        functools.partial(_dw_kernel, K=K, rh=rh),
        out_shape=(jax.ShapeDtypeStruct((N, Ho, Wo, C), jnp.bfloat16),
                   jax.ShapeDtypeStruct((N, RB, 2, C), jnp.float32)),
        grid_spec=pltpu.PrefetchScalarGridSpec(
            num_scalar_prefetch=0,
            grid=(N, cc, RB),                                 # row-block axis innermost
            in_specs=[pl.BlockSpec((1, Hp, Wp, tc), lambda n, c, r: (n, 0, 0, c)),
                      pl.BlockSpec((K, K, tc), lambda n, c, r: (0, 0, c))],
            out_specs=(pl.BlockSpec((1, rh, Wo, tc), lambda n, c, r: (n, r, 0, c)),
                       pl.BlockSpec((1, 1, 2, tc), lambda n, c, r: (n, r, 0, c)))),
        compiler_params=pltpu.CompilerParams(
            dimension_semantics=("parallel", "parallel", "parallel")),
    )(xp, w)

    if stride > 1:
        # TODO(synk): subsample the taps in-kernel for the 3 stride-2 layers instead of
        # computing the full stride-1 output and slicing (would also keep the fused stats).
        return out[:, ::stride, ::stride, :], None
    return out, stats.sum(axis=1)


# ----------------------------------------------------------------------------- stats fallback
def _stats_kernel(x_ref, o_ref):
    @pl.when(pl.program_id(1) == 0)
    def _():
        o_ref[...] = jnp.zeros_like(o_ref)

    x = x_ref[0].astype(jnp.float32)
    s = jnp.sum(x, axis=0, keepdims=True)
    sq = jnp.sum(x * x, axis=0, keepdims=True)
    o_ref[0] = o_ref[0] + jnp.concatenate([s, sq], axis=0)


def channel_stats(x):
    # x: (N,H,W,C) -> (N, 2, C) [sum, sum-of-squares]; only used after the 3 strided dw convs.
    N, H, W, C = x.shape
    HW = H * W
    xf = x.reshape(N, HW, C)
    rt = _pick_rows(HW, C)
    return pl.pallas_call(
        _stats_kernel,
        out_shape=jax.ShapeDtypeStruct((N, 2, C), jnp.float32),
        grid_spec=pltpu.PrefetchScalarGridSpec(
            num_scalar_prefetch=0,
            grid=(N, HW // rt),
            in_specs=[pl.BlockSpec((1, rt, C), lambda n, r: (n, r, 0))],
            out_specs=pl.BlockSpec((1, 2, C), lambda n, r: (n, 0, 0))),
        compiler_params=pltpu.CompilerParams(
            dimension_semantics=("parallel", "arbitrary")),
    )(xf)


# ----------------------------------------------------------------------------- normalize / pool
def _norm_kernel(x_ref, a_ref, b_ref, o_ref, *, act):
    y = x_ref[0].astype(jnp.float32) * a_ref[0] + b_ref[0]
    if act:
        y = y * jax.nn.sigmoid(y)
    o_ref[0] = y.astype(o_ref.dtype)


def _norm_res_kernel(x_ref, a_ref, b_ref, r_ref, o_ref, *, act):
    y = x_ref[0].astype(jnp.float32) * a_ref[0] + b_ref[0]
    if act:
        y = y * jax.nn.sigmoid(y)
    y = y + r_ref[0].astype(jnp.float32)
    o_ref[0] = y.astype(o_ref.dtype)


def norm_act(x, scale, shift, *, act, res=None):
    """Standalone per-channel affine (+SiLU) (+fused block residual).  Only used where the
       consumer is a padded conv (dw / dense) or where the residual add is required."""
    N, H, W, C = x.shape
    HW = H * W
    rt = _pick_rows(HW, C)
    xf = x.reshape(N, HW, C)
    a = scale.reshape(N, 1, C)
    b = shift.reshape(N, 1, C)
    in_specs = [pl.BlockSpec((1, rt, C), lambda n, r: (n, r, 0)),
                pl.BlockSpec((1, 1, C), lambda n, r: (n, 0, 0)),
                pl.BlockSpec((1, 1, C), lambda n, r: (n, 0, 0))]
    args = [xf, a, b]
    if res is not None:
        in_specs.append(pl.BlockSpec((1, rt, C), lambda n, r: (n, r, 0)))
        args.append(res.reshape(N, HW, C))
        kern = functools.partial(_norm_res_kernel, act=act)
    else:
        kern = functools.partial(_norm_kernel, act=act)
    y = pl.pallas_call(
        kern,
        out_shape=jax.ShapeDtypeStruct((N, HW, C), jnp.bfloat16),
        grid_spec=pltpu.PrefetchScalarGridSpec(
            num_scalar_prefetch=0,
            grid=(N, HW // rt),
            in_specs=in_specs,
            out_specs=pl.BlockSpec((1, rt, C), lambda n, r: (n, r, 0))),
        compiler_params=pltpu.CompilerParams(
            dimension_semantics=("parallel", "parallel")),
    )(*args)
    return y.reshape(N, H, W, C)


def _norm_pool_kernel(x_ref, a_ref, b_ref, o_ref):
    y = x_ref[0].astype(jnp.float32) * a_ref[0] + b_ref[0]
    y = y * jax.nn.sigmoid(y)
    o_ref[0] = (jnp.sum(y, axis=0, keepdims=True) * (1.0 / y.shape[0])).astype(o_ref.dtype)


def norm_silu_pool(x, scale, shift):
    """Fused GroupNorm affine + SiLU + AvgPool2d((H,W)) for the head (sum-only reduction)."""
    N, H, W, C = x.shape
    HW = H * W
    out = pl.pallas_call(
        _norm_pool_kernel,
        out_shape=jax.ShapeDtypeStruct((N, 1, C), jnp.bfloat16),
        grid_spec=pltpu.PrefetchScalarGridSpec(
            num_scalar_prefetch=0,
            grid=(N,),
            in_specs=[pl.BlockSpec((1, HW, C), lambda n: (n, 0, 0)),
                      pl.BlockSpec((1, 1, C), lambda n: (n, 0, 0)),
                      pl.BlockSpec((1, 1, C), lambda n: (n, 0, 0))],
            out_specs=pl.BlockSpec((1, 1, C), lambda n: (n, 0, 0))),
        compiler_params=pltpu.CompilerParams(dimension_semantics=("parallel",)),
    )(x.reshape(N, HW, C), scale.reshape(N, 1, C), shift.reshape(N, 1, C))
    return out.reshape(N, 1, 1, C)


# ----------------------------------------------------------------------------- GroupNorm glue
def gn_scale_shift(stats, gamma, beta, hw):
    """Fold per-channel (sum, sumsq) into the per-channel affine of GroupNorm(C//8).
       PyTorch semantics: eps=1e-5, biased variance, 8 consecutive channels per group."""
    # TODO(synk): fold this tiny per-layer glue into a Pallas scalar-path kernel.
    N, _, C = stats.shape
    G = C // 8
    s = stats[:, 0, :].reshape(N, G, 8).sum(-1)
    sq = stats[:, 1, :].reshape(N, G, 8).sum(-1)
    cnt = float(hw * 8)
    mean = s / cnt
    var = jnp.maximum(sq / cnt - mean * mean, 0.0)
    inv = jax.lax.rsqrt(var + 1e-5)
    mean_c = jnp.repeat(mean, 8, axis=1)
    inv_c = jnp.repeat(inv, 8, axis=1)
    scale = inv_c * gamma[None, :]
    shift = beta[None, :] - mean_c * scale
    return scale, shift


# ----------------------------------------------------------------------------- model execution
@functools.partial(jax.jit, static_argnums=(0,))
def run_block(bcfg, bparams, x):
    use_res, layer_cfgs = bcfg
    n_layers = len(layer_cfgs)
    h = x
    pending = None                         # (scale, shift, act) of the previous layer's GN
    for idx, (lcfg, lp) in enumerate(zip(layer_cfgs, bparams)):
        kind, k, stride, pad, act = lcfg
        last = idx == n_layers - 1
        if kind == "pw":
            pre = (pending[0], pending[1]) if pending is not None else None
            pre_act = pending[2] if pending is not None else False
            y, stats = conv_pw(h, lp["w"], pre, pre_act=pre_act)
        else:
            if pending is not None:
                # padded-conv consumer: materialise the normalised input first
                # TODO(synk): fuse the affine into the dw kernel with in-kernel pad masking.
                h = norm_act(h, pending[0], pending[1], act=pending[2])
            if kind == "dense":
                y, stats = conv_dense(h, lp["w"], k=k, stride=stride, pad=pad)
            else:
                y, stats = conv_dw(h, lp["w"], stride=stride, pad=pad)
        if stats is None:                  # strided dw: fused stats invalid after subsampling
            stats = channel_stats(y)
        hw_out = y.shape[1] * y.shape[2]
        scale, shift = gn_scale_shift(stats, lp["gamma"], lp["beta"], hw_out)
        if last:
            return norm_act(y, scale, shift, act=act, res=x if use_res else None)
        pending = (scale, shift, act)
        h = y
    return h


@jax.jit
def run_head(hp, x):
    N, H, W, _ = x.shape
    y, st = conv_pw(x, hp["w1"])
    scale, shift = gn_scale_shift(st, hp["g1_g"], hp["g1_b"], H * W)
    p = norm_silu_pool(y, scale, shift)                       # GN + SiLU + AvgPool2d((12,12))
    y2, st2 = conv_pw(p, hp["w2"])
    s2, b2 = gn_scale_shift(st2, hp["g2_g"], hp["g2_b"], 1)
    z = y2.astype(jnp.float32) * s2.reshape(N, 1, 1, -1) + b2.reshape(N, 1, 1, -1)
    z = z * jax.nn.sigmoid(z)                                 # tiny (N,1,1,1280) -> glue is fine
    y3, _ = conv_pw(z.astype(jnp.bfloat16), hp["w3"], want_stats=False)
    return y3.reshape(N, -1).astype(jnp.float32) + hp["b3"][None, :]   # Flatten + bias


def mnv4_conv_l_forward(cfgs, params, head, x_nchw):
    x = jnp.transpose(x_nchw, (0, 2, 3, 1)).astype(jnp.bfloat16)      # NCHW -> NHWC bf16
    for bcfg, bp in zip(cfgs, params):
        x = run_block(bcfg, bp, x)
    return run_head(head, x)


# ----------------------------------------------------------------------------- parameters
class PInit:
    def __init__(self, seed=0):
        self.key = jax.random.PRNGKey(seed)

    def take(self):
        self.key, k = jax.random.split(self.key)
        return k

    def pw(self, cin, cout):
        w = jax.random.normal(self.take(), (cin, cout), jnp.float32) / math.sqrt(cin)
        return w.astype(jnp.bfloat16)

    def dense(self, cin, cout, k):
        w = jax.random.normal(self.take(), (k, k, cin, cout), jnp.float32) / math.sqrt(cin * k * k)
        return w.reshape(k * k * cin, cout).astype(jnp.bfloat16)

    def dw(self, c, k):
        return jax.random.normal(self.take(), (k, k, c), jnp.float32) / math.sqrt(k * k)

    def gn(self, c):
        return jnp.ones((c,), jnp.float32), jnp.zeros((c,), jnp.float32)


def make_layer(pi, kind, cin, cout, k, stride, pad, act):
    if kind == "dense":
        w = pi.dense(cin, cout, k)
        c_out = cout
    elif kind == "pw":
        w = pi.pw(cin, cout)
        c_out = cout
    else:
        w = pi.dw(cin, k)
        c_out = cin
    gamma, beta = pi.gn(c_out)
    return (kind, k, stride, pad, act), {"w": w, "gamma": gamma, "beta": beta}


def stem(pi, cin, cout, k, s, p):
    c, pr = make_layer(pi, "dense", cin, cout, k, s, p, True)
    return (False, (c,)), (pr,)


def fused_ib(pi, cin, cout, cexp, k, s, p):
    l1 = make_layer(pi, "dense", cin, cexp, k, s, p, True)
    l2 = make_layer(pi, "pw", cexp, cout, 1, 1, 0, False)
    return (s == 1 and cin == cout, (l1[0], l2[0])), (l1[1], l2[1])


def extra_dw(pi, cin, cout, cexp, k1, k2, s, p1, p2):
    ls = [make_layer(pi, "dw", cin, cin, k1, s, p1, False),
          make_layer(pi, "pw", cin, cexp, 1, 1, 0, True),
          make_layer(pi, "dw", cexp, cexp, k2, 1, p2, True),
          make_layer(pi, "pw", cexp, cout, 1, 1, 0, False)]
    return (s == 1 and cin == cout, tuple(l[0] for l in ls)), tuple(l[1] for l in ls)


def convnext(pi, cin, cout, cexp, k, s, p):
    ls = [make_layer(pi, "dw", cin, cin, k, s, p, False),
          make_layer(pi, "pw", cin, cexp, 1, 1, 0, True),
          make_layer(pi, "pw", cexp, cout, 1, 1, 0, False)]
    return (s == 1 and cin == cout, tuple(l[0] for l in ls)), tuple(l[1] for l in ls)


def build_model(seed=0):
    pi = PInit(seed)
    specs = [stem(pi, 3, 24, 3, 2, 1),
             fused_ib(pi, 24, 48, 96, 3, 2, 1),
             # stage 3
             extra_dw(pi, 48, 96, 192, 3, 5, 2, 1, 2),
             extra_dw(pi, 96, 96, 384, 3, 5, 1, 1, 2),
             # stage 4
             extra_dw(pi, 96, 192, 384, 3, 5, 2, 1, 2)]
    for _ in range(10):
        specs.append(extra_dw(pi, 192, 192, 768, 3, 3, 1, 1, 1))
    specs.append(convnext(pi, 192, 192, 768, 3, 1, 1))
    # stage 5
    specs.append(extra_dw(pi, 192, 512, 768, 5, 5, 2, 2, 2))
    specs.append(extra_dw(pi, 512, 512, 2048, 5, 5, 1, 2, 2))
    specs.append(extra_dw(pi, 512, 512, 2048, 5, 5, 1, 2, 2))
    specs.append(extra_dw(pi, 512, 512, 2048, 5, 5, 1, 2, 2))
    specs.append(convnext(pi, 512, 512, 2048, 5, 1, 2))
    specs.append(extra_dw(pi, 512, 512, 2048, 5, 3, 1, 2, 1))
    specs.append(convnext(pi, 512, 512, 2048, 5, 1, 2))
    specs.append(convnext(pi, 512, 512, 2048, 5, 1, 2))
    specs.append(extra_dw(pi, 512, 512, 2048, 5, 3, 1, 2, 1))
    specs.append(extra_dw(pi, 512, 512, 2048, 5, 5, 1, 2, 2))
    specs.append(convnext(pi, 512, 512, 2048, 5, 1, 2))
    specs.append(convnext(pi, 512, 512, 2048, 5, 1, 2))
    specs.append(convnext(pi, 512, 512, 2048, 5, 1, 2))

    cfgs = tuple(s[0] for s in specs)
    params = tuple(s[1] for s in specs)
    head = dict(
        w1=pi.pw(512, 960),
        g1_g=jnp.ones((960,), jnp.float32), g1_b=jnp.zeros((960,), jnp.float32),
        w2=pi.pw(960, 1280),
        g2_g=jnp.ones((1280,), jnp.float32), g2_b=jnp.zeros((1280,), jnp.float32),
        w3=pi.pw(1280, 1000),
        b3=jax.random.normal(pi.take(), (1000,), jnp.float32) * 0.01)
    return cfgs, params, head


if __name__ == "__main__":
    # Input must be 384x384 so the head's AvgPool2d((12,12)) sees a 12x12 map
    # (5 stride-2 stages: 384 / 32 = 12).  Batch kept at 1 to stay small.
    key = jax.random.PRNGKey(0)
    x = jax.random.normal(key, (1, 3, 384, 384), jnp.float32)

    cfgs, params, head = build_model(seed=0)
    out = mnv4_conv_l_forward(cfgs, params, head, x)
    out = jax.block_until_ready(out)

    assert out.shape == (1, 1000), out.shape
    assert bool(jnp.all(jnp.isfinite(out)))
    print("KERNEL_OK")
</pallas_src>

<mosaic_0001>
module attributes {stable_mosaic.version = 11 : i64} {
  func.func @_mm_kernel(%arg0: i32, %arg1: i32, %arg2: memref<512x27xbf16, #tpu.memory_space<vmem>>, %arg3: memref<27x24xbf16, #tpu.memory_space<vmem>>, %arg4: memref<512x24xbf16, #tpu.memory_space<vmem>>, %arg5: memref<1x2x24xf32, #tpu.memory_space<vmem>>) attributes {dimension_semantics = [#tpu.dimension_semantics<parallel>, #tpu.dimension_semantics<parallel>], iteration_bounds = array<i64: 1, 72>, scalar_prefetch = 0 : i64, scratch_operands = 0 : i64, tpu.core_type = #tpu.core_type<tc>, window_params = [{transform_indices = @transform_0, window_bounds = array<i64: 512, 27>}, {transform_indices = @transform_1, window_bounds = array<i64: 27, 24>}, {transform_indices = @transform_2, window_bounds = array<i64: 512, 24>}, {transform_indices = @transform_3, window_bounds = array<i64: 1, 2, 24>}]} {
    %c0 = arith.constant 0 : index
    %c0_0 = arith.constant 0 : index
    %0 = vector.load %arg2[%c0, %c0_0] : memref<512x27xbf16, #tpu.memory_space<vmem>>, vector<512x27xbf16>
    %c0_1 = arith.constant 0 : index
    %c0_2 = arith.constant 0 : index
    %1 = vector.load %arg3[%c0_1, %c0_2] : memref<27x24xbf16, #tpu.memory_space<vmem>>, vector<27x24xbf16>
    %cst = arith.constant dense<0.000000e+00> : vector<512x24xf32>
    %2 = tpu.matmul %0, %1, %cst {dimension_numbers = #tpu.dot_dimension_numbers<[1], [0], [0], [1], [0, 0, 1, 1], [], []>} : vector<512x27xbf16>, vector<27x24xbf16>, vector<512x24xf32> -> vector<512x24xf32>
    %3 = arith.truncf %2 : vector<512x24xf32> to vector<512x24xbf16>
    %c0_3 = arith.constant 0 : index
    %c0_4 = arith.constant 0 : index
    %4 = vector.load %arg4[%c0_3, %c0_4] : memref<512x24xbf16, #tpu.memory_space<vmem>>, vector<512x24xbf16>
    tpu.vector_store %arg4[%c0_3, %c0_4], %3 {strides = array<i32>} : memref<512x24xbf16, #tpu.memory_space<vmem>>, vector<512x24xbf16>,
    %cst_5 = arith.constant dense<0.000000e+00> : vector<24xf32>
    %5 = vector.multi_reduction <add>, %2, %cst_5 [0] : vector<512x24xf32> to vector<24xf32>
    %6 = vector.shape_cast %5 : vector<24xf32> to vector<1x24xf32>
    %7 = arith.mulf %2, %2 : vector<512x24xf32>
    %cst_6 = arith.constant dense<0.000000e+00> : vector<24xf32>
    %8 = vector.multi_reduction <add>, %7, %cst_6 [0] : vector<512x24xf32> to vector<24xf32>
    %9 = vector.shape_cast %8 : vector<24xf32> to vector<1x24xf32>
    %10 = tpu.concatenate %6, %9 in 0 : vector<1x24xf32>, vector<1x24xf32> -> vector<2x24xf32>
    %c0_7 = arith.constant 0 : index
    %c0_8 = arith.constant 0 : index
    %c0_9 = arith.constant 0 : index
    %11 = vector.load %arg5[%c0_7, %c0_8, %c0_9] : memref<1x2x24xf32, #tpu.memory_space<vmem>>, vector<1x2x24xf32>
    %12 = vector.shape_cast %11 : vector<1x2x24xf32> to vector<2x24xf32>
    %13 = vector.shape_cast %10 : vector<2x24xf32> to vector<1x2x24xf32>
    tpu.vector_store %arg5[%c0_7, %c0_8, %c0_9], %13 {strides = array<i32>} : memref<1x2x24xf32, #tpu.memory_space<vmem>>, vector<1x2x24xf32>,
    return
  }
  func.func @transform_0(%arg0: i32, %arg1: i32) -> (i32, i32) {
    %c0_i32 = arith.constant 0 : i32
    %c0_i32_0 = arith.constant 0 : i32
    return %arg1, %c0_i32 : i32, i32
  }
  func.func @transform_1(%arg0: i32, %arg1: i32) -> (i32, i32) {
    %c0_i32 = arith.constant 0 : i32
    %c0_i32_0 = arith.constant 0 : i32
    return %c0_i32, %arg0 : i32, i32
  }
  func.func @transform_2(%arg0: i32, %arg1: i32) -> (i32, i32) {
    %c0_i32 = arith.constant 0 : i32
    return %arg1, %arg0 : i32, i32
  }
  func.func @transform_3(%arg0: i32, %arg1: i32) -> (i32, i32, i32) {
    %c0_i32 = arith.constant 0 : i32
    %c0_i32_0 = arith.constant 0 : i32
    return %arg1, %c0_i32, %arg0 : i32, i32, i32
  }
}

module attributes {stable_mosaic.version = 11 : i64} {
  func.func @_norm_kernel(%arg0: i32, %arg1: i32, %arg2: memref<1x1024x24xbf16, #tpu.memory_space<vmem>>, %arg3: memref<1x1x24xf32, #tpu.memory_space<vmem>>, %arg4: memref<1x1x24xf32, #tpu.memory_space<vmem>>, %arg5: memref<1x1024x24xbf16, #tpu.memory_space<vmem>>) attributes {dimension_semantics = [#tpu.dimension_semantics<parallel>, #tpu.dimension_semantics<parallel>], iteration_bounds = array<i64: 1, 36>, scalar_prefetch = 0 : i64, scratch_operands = 0 : i64, tpu.core_type = #tpu.core_type<tc>, window_params = [{transform_indices = @transform_0, window_bounds = array<i64: 1, 1024, 24>}, {transform_indices = @transform_1, window_bounds = array<i64: 1, 1, 24>}, {transform_indices = @transform_2, window_bounds = array<i64: 1, 1, 24>}, {transform_indices = @transform_3, window_bounds = array<i64: 1, 1024, 24>}]} {
    %c0 = arith.constant 0 : index
    %c0_0 = arith.constant 0 : index
    %c0_1 = arith.constant 0 : index
    %0 = vector.load %arg2[%c0, %c0_0, %c0_1] : memref<1x1024x24xbf16, #tpu.memory_space<vmem>>, vector<1x1024x24xbf16>
    %1 = vector.shape_cast %0 : vector<1x1024x24xbf16> to vector<1024x24xbf16>
    %2 = arith.extf %1 : vector<1024x24xbf16> to vector<1024x24xf32>
    %c0_2 = arith.constant 0 : index
    %c0_3 = arith.constant 0 : index
    %c0_4 = arith.constant 0 : index
    %3 = vector.load %arg3[%c0_2, %c0_3, %c0_4] : memref<1x1x24xf32, #tpu.memory_space<vmem>>, vector<1x1x24xf32>
    %4 = vector.shape_cast %3 : vector<1x1x24xf32> to vector<1x24xf32>
    %5 = vector.broadcast %4 : vector<1x24xf32> to vector<1024x24xf32>
    %6 = arith.mulf %2, %5 : vector<1024x24xf32>
    %c0_5 = arith.constant 0 : index
    %c0_6 = arith.constant 0 : index
    %c0_7 = arith.constant 0 : index
    %7 = vector.load %arg4[%c0_5, %c0_6, %c0_7] : memref<1x1x24xf32, #tpu.memory_space<vmem>>, vector<1x1x24xf32>
    %8 = vector.shape_cast %7 : vector<1x1x24xf32> to vector<1x24xf32>
    %9 = vector.broadcast %8 : vector<1x24xf32> to vector<1024x24xf32>
    %10 = arith.addf %6, %9 : vector<1024x24xf32>
    %11 = arith.negf %10 : vector<1024x24xf32>
    %12 = math.exp %11 : vector<1024x24xf32>
    %cst = arith.constant 1.000000e+00 : f32
    %13 = vector.broadcast %cst : f32 to vector<1024x24xf32>
    %14 = arith.addf %13, %12 : vector<1024x24xf32>
    %15 = arith.divf %13, %14 : vector<1024x24xf32>
    %16 = arith.mulf %10, %15 : vector<1024x24xf32>
    %17 = arith.truncf %16 : vector<1024x24xf32> to vector<1024x24xbf16>
    %c0_8 = arith.constant 0 : index
    %c0_9 = arith.constant 0 : index
    %c0_10 = arith.constant 0 : index
    %18 = vector.load %arg5[%c0_8, %c0_9, %c0_10] : memref<1x1024x24xbf16, #tpu.memory_space<vmem>>, vector<1x1024x24xbf16>
    %19 = vector.shape_cast %18 : vector<1x1024x24xbf16> to vector<1024x24xbf16>
    %20 = vector.shape_cast %17 : vector<1024x24xbf16> to vector<1x1024x24xbf16>
    tpu.vector_store %arg5[%c0_8, %c0_9, %c0_10], %20 {strides = array<i32>} : memref<1x1024x24xbf16, #tpu.memory_space<vmem>>, vector<1x1024x24xbf16>,
    return
  }
  func.func @transform_0(%arg0: i32, %arg1: i32) -> (i32, i32, i32) {
    %c0_i32 = arith.constant 0 : i32
    %c0_i32_0 = arith.constant 0 : i32
    return %arg0, %arg1, %c0_i32 : i32, i32, i32
  }
  func.func @transform_1(%arg0: i32, %arg1: i32) -> (i32, i32, i32) {
    %c0_i32 = arith.constant 0 : i32
    %c0_i32_0 = arith.constant 0 : i32
    %c0_i32_1 = arith.constant 0 : i32
    return %arg0, %c0_i32, %c0_i32_0 : i32, i32, i32
  }
  func.func @transform_2(%arg0: i32, %arg1: i32) -> (i32, i32, i32) {
    %c0_i32 = arith.constant 0 : i32
    %c0_i32_0 = arith.constant 0 : i32
    %c0_i32_1 = arith.constant 0 : i32
    return %arg0, %c0_i32, %c0_i32_0 : i32, i32, i32
  }
  func.func @transform_3(%arg0: i32, %arg1: i32) -> (i32, i32, i32) {
    %c0_i32 = arith.constant 0 : i32
    %c0_i32_0 = arith.constant 0 : i32
    return %arg0, %arg1, %c0_i32 : i32, i32, i32
  }
}

</mosaic_0001>

<bundles_post_ra>
// kernel: run_block.2
= control target key start
LH: loop header
LB: loop body
LE: loop exit
PB: predicated region body
PF: predicated region fallthrough
CT: control target
= control target key end

     0   :  { %s2067_s12 = smov 0   ;;  %s2069_s13 = smov 0   ;;  %s2669_s0 = inlined_call_operand.vmem [shape: bf16[36864,27], index: 0, kind: input, shape index: {}]   ;;  %s2670_s1 = inlined_call_operand.vmem [shape: bf16[27,24], index: 1, kind: input, shape index: {}]   ;;  %s2671_s2 = inlined_call_operand.vmem [shape: bf16[36864,24], index: 2, kind: output, shape index: {0}]   ;;  %s2672_s3 = inlined_call_operand.vmem [shape: f32[72,2,24], index: 3, kind: output, shape index: {1}]  }
   0x1   :  { %s2071_s14 = smov 0  }
   0x2 LB: > { %s23_s15 = sadd.s32 1, %s2040_s13  ;;  %p1655_p0 = scmp.ge.s32.totalorder %s2044_s14, 1  ;;  %s2044_s14 = sphi %s2071_s14, %s14_s14   ;;  %s2040_s13 = sphi %s2069_s13, %s2674_s13   ;;  %s2036_s12 = sphi %s2067_s12, %s2673_s12  }
   0x3   : > { %p24_p1 = scmp.ge.s32.totalorder %s23_s15, 72  ;;  %p166_p2 = scmp.lt.s32.totalorder %s2044_s14, 73 }
   0x5   : > { %s2676_s15 = smov (%p24_p1, %s23_s15), 0  ;;  %p167_p3 = pnand %p1655_p0, %p166_p2 }
   0x6   : > { %s1656_s18 = sshll.u32 (!%p167_p3), %s2036_s12, 6  ;;  %p223_p5 = scmp.lt.s32.totalorder (!%p167_p3), %s2036_s12, 71 }
   0x7   : > { %170 = sbr.rel (%p167_p3) target bundleno = 367 (0x16f), region = 28  ;;  %p205_p4 = scmp.lt.s32.totalorder (!%p167_p3), %s1656_s18, 4607 }
   0xc   : > { %v1988_v0 = vld [vmem:[%s2670_s1 + $0x8] sm:$0x3f]   ;;  %vm567_vm0 = vcmask 1044480   ;;  %vm568_vm1 = vcmask 1045504   ;;  %v2046_v1 = vmov 65535   ;;  %v1989_v5 = vld [vmem:[%s2670_s1] sm:$0xff]  }
   0xd   : > { %v569_v2 = vsel %vm567_vm0, 4294967295, %v2046_v1  ;;  %s2678_s18 = smov (!%p205_p4, %s1656_s18), 4607  ;;  %vm470_vm2 = vcmask 220160   ;;  %vm1119_vm3 = vcmask 191488   ;;  %vm1184_vm4 = vcmask 195584   ;;  %s2680_s12 = smov (!%p223_p5, %s2036_s12), 71 }
   0xe   : > { %v570_v3 = vsel %vm568_vm1, %v569_v2, 0  ;;  %s1657_s21 = sshll.u32 %s2678_s18, 2  ;;  %s1660_s28 = sshll.u32 %s2680_s12, 1  ;;  %vm1515_vm5 = vcmask 1040384   ;;  %vm1517_vm6 = vcmask 189440  }
   0xf   : > { %v572_v4 = vand.u32 %v1988_v0, %v570_v3  ;;  %s2102_s24 = scalar_lea.vmem %s2669_s0, %s1657_s21  ;;  %s2173_s27 = scalar_lea.vmem %s2671_s2, %s1657_s21 }
  0x10   : > { %v1990_v6 = vld [vmem:[%s2102_s24] sm:$0xff]   ;;  %v1991_v7 = vld [vmem:[%s2102_s24 + $0x8] sm:$0xff]   ;;  %v1992_v8 = vld [vmem:[%s2102_s24 + $0x10] sm:$0xff]   ;;  %s229_s4 = scalar_lea.vmem %s2672_s3, %s1660_s28 }
  0x11   : > { %1891 = vmatprep.subr.bf16.mxu0 %v572_v4  ;;  %1959 = vmatprep.subr.bf16.mxu1 %v572_v4  ;;  %v1993_v9 = vld [vmem:[%s2102_s24 + $0x18] sm:$0xff]   ;;  %v1994_v10 = vld [vmem:[%s2102_s24 + $0x20] sm:$0xff]   ;;  %v1995_v11 = vld [vmem:[%s2102_s24 + $0x28] sm:$0xff]  }
  0x12   : > { %1892 = vmatpush3.bf16.msra.mxu0 %v572_v4  ;;  %1961 = vmatpush3.bf16.msra.mxu1 %v572_v4  ;;  %v1996_v12 = vld [vmem:[%s2102_s24 + $0x30] sm:$0xff]   ;;  %v2006_v13 = vld [vmem:[%s2102_s24 + $0x80] sm:$0xff]   ;;  %v2007_v14 = vld [vmem:[%s2102_s24 + $0x88] sm:$0xff]  }
  0x13   : > { %1893 = vmatprep.subr.bf16.mxu0 %v1989_v5  ;;  %1960 = vmatprep.subr.bf16.mxu1 %v1989_v5  ;;  %v2008_v15 = vld [vmem:[%s2102_s24 + $0x90] sm:$0xff]   ;;  %v2009_v16 = vld [vmem:[%s2102_s24 + $0x98] sm:$0xff]   ;;  %v2010_v17 = vld [vmem:[%s2102_s24 + $0xa0] sm:$0xff]  }
  0x14   : > { %1895 = vmatprep.mubr.msk.bf16.mxu0 %vm470_vm2, %v1990_v6  ;;  %1927 = vmatprep.mubr.msk.bf16.mxu1 %vm470_vm2, %v2006_v13  ;;  %v1997_v18 = vld [vmem:[%s2102_s24 + $0x38] sm:$0xff]   ;;  %v1998_v19 = vld [vmem:[%s2102_s24 + $0x40] sm:$0xff]   ;;  %v2011_v20 = vld [vmem:[%s2102_s24 + $0xa8] sm:$0xff]  }
  0x15   : > { %v2012_v21 = vld [vmem:[%s2102_s24 + $0xb0] sm:$0xff]   ;;  %v1999_v22 = vld [vmem:[%s2102_s24 + $0x48] sm:$0xff]   ;;  %v2013_v24 = vld [vmem:[%s2102_s24 + $0xb8] sm:$0xff]  }
  0x16   : > { %1894 = vmatpush3.bf16.msra.mxu0 %v1989_v5  ;;  %1962 = vmatpush3.bf16.msra.mxu1 %v1989_v5  ;;  %v2000_v23 = vld [vmem:[%s2102_s24 + $0x50] sm:$0xff]   ;;  %v2014_v25 = vld [vmem:[%s2102_s24 + $0xc0] sm:$0xff]   ;;  %v2001_v26 = vld [vmem:[%s2102_s24 + $0x58] sm:$0xff]  }
  0x17   : > { %v2002_v27 = vld [vmem:[%s2102_s24 + $0x60] sm:$0xff]   ;;  %v2015_v28 = vld [vmem:[%s2102_s24 + $0xc8] sm:$0xff]   ;;  %v2016_v29 = vld [vmem:[%s2102_s24 + $0xd0] sm:$0xff]  }
  0x18   : > { %v2003_v30 = vld [vmem:[%s2102_s24 + $0x68] sm:$0xff]   ;;  %v2004_v31 = vld [vmem:[%s2102_s24 + $0x70] sm:$0xff]   ;;  %v2017_v32 = vld [vmem:[%s2102_s24 + $0xd8] sm:$0xff]  }
  0x19   : > { %1896 = vmatmul.mubr.msk.bf16.vlgmr.msra.gmra.mxu0 %vm470_vm2, %v1991_v7  ;;  %1928 = vmatmul.mubr.msk.bf16.vlgmr.msra.gmra.mxu1 %vm470_vm2, %v2007_v14  ;;  %v2018_v33 = vld [vmem:[%s2102_s24 + $0xe0] sm:$0xff]   ;;  %v2005_v34 = vld [vmem:[%s2102_s24 + $0x78] sm:$0xff]   ;;  %v2019_v35 = vld [vmem:[%s2102_s24 + $0xe8] sm:$0xff]  }
  0x1a   : > { %1899 = vmatprep.mubr.msk.bf16.mxu0 %vm470_vm2, %v1992_v8  ;;  %1931 = vmatprep.mubr.msk.bf16.mxu1 %vm470_vm2, %v2008_v15  ;;  %v2020_v36 = vld [vmem:[%s2102_s24 + $0xf0] sm:$0xff]   ;;  %v2021_v37 = vld [vmem:[%s2102_s24 + $0xf8] sm:$0xff]  }
  0x21   : > { %1900 = vmatmul.mubr.msk.bf16.gmra.mxu0 %vm470_vm2, %v1993_v9  ;;  %1932 = vmatmul.mubr.msk.bf16.gmra.mxu1 %vm470_vm2, %v2009_v16 }
  0x22   : > { %1903 = vmatprep.mubr.msk.bf16.mxu0 %vm470_vm2, %v1994_v10  ;;  %1935 = vmatprep.mubr.msk.bf16.mxu1 %vm470_vm2, %v2010_v17 }
  0x29   : > { %1904 = vmatmul.mubr.msk.bf16.gmra.mxu0 %vm470_vm2, %v1995_v11  ;;  %1936 = vmatmul.mubr.msk.bf16.gmra.mxu1 %vm470_vm2, %v2011_v20 }
  0x2a   : > { %1907 = vmatprep.mubr.msk.bf16.mxu0 %vm470_vm2, %v1996_v12  ;;  %1939 = vmatprep.mubr.msk.bf16.mxu1 %vm470_vm2, %v2012_v21 }
  0x31   : > { %1908 = vmatmul.mubr.msk.bf16.gmra.mxu0 %vm470_vm2, %v1997_v18  ;;  %1940 = vmatmul.mubr.msk.bf16.gmra.mxu1 %vm470_vm2, %v2013_v24 }
  0x32   : > { %1911 = vmatprep.mubr.msk.bf16.mxu0 %vm470_vm2, %v1998_v19  ;;  %1943 = vmatprep.mubr.msk.bf16.mxu1 %vm470_vm2, %v2014_v25 }
  0x39   : > { %1912 = vmatmul.mubr.msk.bf16.gmra.mxu0 %vm470_vm2, %v1999_v22  ;;  %1944 = vmatmul.mubr.msk.bf16.gmra.mxu1 %vm470_vm2, %v2015_v28 }
  0x3a   : > { %1915 = vmatprep.mubr.msk.bf16.mxu0 %vm470_vm2, %v2000_v23  ;;  %1947 = vmatprep.mubr.msk.bf16.mxu1 %vm470_vm2, %v2016_v29 }
  0x41   : > { %1916 = vmatmul.mubr.msk.bf16.gmra.mxu0 %vm470_vm2, %v2001_v26  ;;  %1948 = vmatmul.mubr.msk.bf16.gmra.mxu1 %vm470_vm2, %v2017_v32 }
  0x42   : > { %1919 = vmatprep.mubr.msk.bf16.mxu0 %vm470_vm2, %v2002_v27  ;;  %1951 = vmatprep.mubr.msk.bf16.mxu1 %vm470_vm2, %v2018_v33 }
  0x49   : > { %1920 = vmatmul.mubr.msk.bf16.gmra.mxu0 %vm470_vm2, %v2003_v30  ;;  %1952 = vmatmul.mubr.msk.bf16.gmra.mxu1 %vm470_vm2, %v2019_v35 }
  0x4a   : > { %1923 = vmatprep.mubr.msk.bf16.mxu0 %vm470_vm2, %v2004_v31  ;;  %1955 = vmatprep.mubr.msk.bf16.mxu1 %vm470_vm2, %v2020_v36 }
  0x51   : > { %1924 = vmatmul.mubr.msk.bf16.gmra.mxu0 %vm470_vm2, %v2005_v34  ;;  %1956 = vmatmul.mubr.msk.bf16.gmra.mxu1 %vm470_vm2, %v2021_v37 }
  0xd9   : > { %v1897_v38 = vpop.f32.mrf.mxu0  ;;  %v2196_v11 = vpop.f32.mrf.mxu1 }
  0xda   : > { %v1795_v39 = vpack.c.bf16 %v1897_v38, %v1897_v38  ;;  %v1320_v45 = vmul.f32 %v1897_v38, %v1897_v38  ;;  %v1188_v51 = vsel %vm1184_vm4, %v1897_v38, 0.0  ;;  %v1827_v19 = vpack.c.bf16 %v2196_v11, %v2196_v11 }
  0xdb   : > { %v608_v40 = vpop.f32.mrf.mxu0  ;;  %v2204_v20 = vpop.f32.mrf.mxu1 }
  0xdc   : > { %1122 = vst.msk [vmem:[%s2173_s27 + $0x8] sm:$0xf] %vm1119_vm3, %v1795_v39  ;;  %v1793_v41 = vpack.c.bf16 %v608_v40, %v608_v40  ;;  %v1318_v43 = vmul.f32 %v608_v40, %v608_v40  ;;  %v1185_v47 = vsel %vm1184_vm4, %v608_v40, 0.0  ;;  %v1385_v61 = vsel %vm1184_vm4, %v1320_v45, 0.0  ;;  %1154 = vst.msk [vmem:[%s2173_s27 + $0x88] sm:$0xf] %vm1119_vm3, %v1827_v19 }
  0xdd   : > { %v1898_v42 = vpop.f32.mrf.mxu0  ;;  %v1825_v28 = vpack.c.bf16 %v2204_v20, %v2204_v20  ;;  %v2214_v29 = vpop.f32.mrf.mxu1 }
  0xde   : > { %1120 = vst.msk [vmem:[%s2173_s27] sm:$0xf] %vm1119_vm3, %v1793_v41  ;;  %v1796_v44 = vpack.c.bf16 %v1898_v42, %v1898_v42  ;;  %v1382_v54 = vsel %vm1184_vm4, %v1318_v43, 0.0  ;;  %v1321_v55 = vmul.f32 %v1898_v42, %v1898_v42  ;;  %v1190_v62 = vsel %vm1184_vm4, %v1898_v42, 0.0 }
  0xdf   : > { %v611_v46 = vpop.f32.mrf.mxu0  ;;  %1152 = vst.msk [vmem:[%s2173_s27 + $0x80] sm:$0xf] %vm1119_vm3, %v1825_v28  ;;  %v2222_v37 = vpop.f32.mrf.mxu1  ;;  %v1828_v45 = vpack.c.bf16 %v2214_v29, %v2214_v29 }
  0xe0   : > { %1123 = vst.msk [vmem:[%s2173_s27 + $0xc] sm:$0xf] %vm1119_vm3, %v1796_v44  ;;  %v1794_v48 = vpack.c.bf16 %v611_v46, %v611_v46  ;;  %v1186_v49 = vsel %vm1184_vm4, %v611_v46, 0.0  ;;  %v1319_v50 = vmul.f32 %v611_v46, %v611_v46  ;;  %v1387_v4 = vsel %vm1184_vm4, %v1321_v55, 0.0 }
  0xe1   : > { %v1187_v52 = vadd.f32 %v1186_v49, %v1185_v47  ;;  %v1901_v53 = vpop.f32.mrf.mxu0  ;;  %v2230_v46 = vpop.f32.mrf.mxu1  ;;  %1155 = vst.msk [vmem:[%s2173_s27 + $0x8c] sm:$0xf] %vm1119_vm3, %v1828_v45 }
  0xe2   : > { %1121 = vst.msk [vmem:[%s2173_s27 + $0x4] sm:$0xf] %vm1119_vm3, %v1794_v48  ;;  %v1383_v56 = vsel %vm1184_vm4, %v1319_v50, 0.0  ;;  %v1799_v57 = vpack.c.bf16 %v1901_v53, %v1901_v53  ;;  %v1324_v7 = vmul.f32 %v1901_v53, %v1901_v53  ;;  %v1196_v21 = vsel %vm1184_vm4, %v1901_v53, 0.0 }
  0xe3   : > { %v1189_v58 = vadd.f32 %v1188_v51, %v1187_v52  ;;  %v1384_v59 = vadd.f32 %v1383_v56, %v1382_v54  ;;  %v624_v60 = vpop.f32.mrf.mxu0  ;;  %v2238_v54 = vpop.f32.mrf.mxu1 }
  0xe4   : > { %1126 = vst.msk [vmem:[%s2173_s27 + $0x18] sm:$0xf] %vm1119_vm3, %v1799_v57  ;;  %v1797_v63 = vpack.c.bf16 %v624_v60, %v624_v60  ;;  %v1322_v0 = vmul.f32 %v624_v60, %v624_v60  ;;  %v1192_v5 = vsel %vm1184_vm4, %v624_v60, 0.0  ;;  %v1393_v30 = vsel %vm1184_vm4, %v1324_v7, 0.0 }
  0xe5   : > { %v1386_v1 = vadd.f32 %v1385_v61, %v1384_v59  ;;  %v1191_v2 = vadd.f32 %v1190_v62, %v1189_v58  ;;  %v1902_v3 = vpop.f32.mrf.mxu0  ;;  %v1826_v62 = vpack.c.bf16 %v2222_v37, %v2222_v37 }
  0xe6   : > { %1124 = vst.msk [vmem:[%s2173_s27 + $0x10] sm:$0xf] %vm1119_vm3, %v1797_v63  ;;  %v1800_v6 = vpack.c.bf16 %v1902_v3, %v1902_v3  ;;  %v1389_v12 = vsel %vm1184_vm4, %v1322_v0, 0.0  ;;  %v1325_v22 = vmul.f32 %v1902_v3, %v1902_v3  ;;  %v1198_v31 = vsel %vm1184_vm4, %v1902_v3, 0.0  ;;  %v2246_v63 = vpop.f32.mrf.mxu1 }
  0xe7   : > { %v1193_v8 = vadd.f32 %v1192_v5, %v1191_v2  ;;  %v1388_v9 = vadd.f32 %v1387_v4, %v1386_v1  ;;  %v627_v10 = vpop.f32.mrf.mxu0  ;;  %1153 = vst.msk [vmem:[%s2173_s27 + $0x84] sm:$0xf] %vm1119_vm3, %v1826_v62 }
  0xe8   : > { %1127 = vst.msk [vmem:[%s2173_s27 + $0x1c] sm:$0xf] %vm1119_vm3, %v1800_v6  ;;  %v1798_v13 = vpack.c.bf16 %v627_v10, %v627_v10  ;;  %v1194_v14 = vsel %vm1184_vm4, %v627_v10, 0.0  ;;  %v1323_v15 = vmul.f32 %v627_v10, %v627_v10  ;;  %v1395_v38 = vsel %vm1184_vm4, %v1325_v22, 0.0  ;;  %v2254_v7 = vpop.f32.mrf.mxu1 }
  0xe9   : > { %v1390_v16 = vadd.f32 %v1389_v12, %v1388_v9  ;;  %v1195_v17 = vadd.f32 %v1194_v14, %v1193_v8  ;;  %v1905_v18 = vpop.f32.mrf.mxu0 }
  0xea   : > { %1125 = vst.msk [vmem:[%s2173_s27 + $0x14] sm:$0xf] %vm1119_vm3, %v1798_v13  ;;  %v1391_v23 = vsel %vm1184_vm4, %v1323_v15, 0.0  ;;  %v1803_v24 = vpack.c.bf16 %v1905_v18, %v1905_v18  ;;  %v1328_v41 = vmul.f32 %v1905_v18, %v1905_v18  ;;  %v1204_v55 = vsel %vm1184_vm4, %v1905_v18, 0.0 }
  0xeb   : > { %v1197_v25 = vadd.f32 %v1196_v21, %v1195_v17  ;;  %v1392_v26 = vadd.f32 %v1391_v23, %v1390_v16  ;;  %v640_v27 = vpop.f32.mrf.mxu0  ;;  %v1831_v16 = vpack.c.bf16 %v2230_v46, %v2230_v46  ;;  %v2262_v17 = vpop.f32.mrf.mxu1 }
  0xec   : > { %1130 = vst.msk [vmem:[%s2173_s27 + $0x28] sm:$0xf] %vm1119_vm3, %v1803_v24  ;;  %v1801_v32 = vpack.c.bf16 %v640_v27, %v640_v27  ;;  %v1326_v33 = vmul.f32 %v640_v27, %v640_v27  ;;  %v1200_v39 = vsel %vm1184_vm4, %v640_v27, 0.0  ;;  %v1401_v0 = vsel %vm1184_vm4, %v1328_v41, 0.0 }
  0xed   : > { %v1394_v34 = vadd.f32 %v1393_v30, %v1392_v26  ;;  %v1199_v35 = vadd.f32 %v1198_v31, %v1197_v25  ;;  %v1906_v36 = vpop.f32.mrf.mxu0  ;;  %1158 = vst.msk [vmem:[%s2173_s27 + $0x98] sm:$0xf] %vm1119_vm3, %v1831_v16  ;;  %v2270_v26 = vpop.f32.mrf.mxu1 }
  0xee   : > { %1128 = vst.msk [vmem:[%s2173_s27 + $0x20] sm:$0xf] %vm1119_vm3, %v1801_v32  ;;  %v1804_v40 = vpack.c.bf16 %v1906_v36, %v1906_v36  ;;  %v1397_v47 = vsel %vm1184_vm4, %v1326_v33, 0.0  ;;  %v1329_v56 = vmul.f32 %v1906_v36, %v1906_v36  ;;  %v1206_v1 = vsel %vm1184_vm4, %v1906_v36, 0.0 }
  0xef   : > { %v1201_v42 = vadd.f32 %v1200_v39, %v1199_v35  ;;  %v1396_v43 = vadd.f32 %v1395_v38, %v1394_v34  ;;  %v643_v44 = vpop.f32.mrf.mxu0  ;;  %v1829_v35 = vpack.c.bf16 %v2238_v54, %v2238_v54  ;;  %v2278_v36 = vpop.f32.mrf.mxu1 }
  0xf0   : > { %1131 = vst.msk [vmem:[%s2173_s27 + $0x2c] sm:$0xf] %vm1119_vm3, %v1804_v40  ;;  %v1802_v48 = vpack.c.bf16 %v643_v44, %v643_v44  ;;  %v1202_v49 = vsel %vm1184_vm4, %v643_v44, 0.0  ;;  %v1327_v50 = vmul.f32 %v643_v44, %v643_v44  ;;  %v1403_v8 = vsel %vm1184_vm4, %v1329_v56, 0.0 }
  0xf1   : > { %v1398_v51 = vadd.f32 %v1397_v47, %v1396_v43  ;;  %v1203_v52 = vadd.f32 %v1202_v49, %v1201_v42  ;;  %v1909_v53 = vpop.f32.mrf.mxu0  ;;  %1156 = vst.msk [vmem:[%s2173_s27 + $0x90] sm:$0xf] %vm1119_vm3, %v1829_v35  ;;  %v2286_v45 = vpop.f32.mrf.mxu1 }
  0xf2   : > { %1129 = vst.msk [vmem:[%s2173_s27 + $0x24] sm:$0xf] %vm1119_vm3, %v1802_v48  ;;  %v1399_v57 = vsel %vm1184_vm4, %v1327_v50, 0.0  ;;  %v1807_v58 = vpack.c.bf16 %v1909_v53, %v1909_v53  ;;  %v1332_v12 = vmul.f32 %v1909_v53, %v1909_v53  ;;  %v1212_v27 = vsel %vm1184_vm4, %v1909_v53, 0.0 }
  0xf3   : > { %v1205_v59 = vadd.f32 %v1204_v55, %v1203_v52  ;;  %v1400_v60 = vadd.f32 %v1399_v57, %v1398_v51  ;;  %v656_v61 = vpop.f32.mrf.mxu0  ;;  %v1832_v55 = vpack.c.bf16 %v2246_v63, %v2246_v63  ;;  %v2294_v56 = vpop.f32.mrf.mxu1 }
  0xf4   : > { %1134 = vst.msk [vmem:[%s2173_s27 + $0x38] sm:$0xf] %vm1119_vm3, %v1807_v58  ;;  %v1805_v2 = vpack.c.bf16 %v656_v61, %v656_v61  ;;  %v1330_v3 = vmul.f32 %v656_v61, %v656_v61  ;;  %v1208_v9 = vsel %vm1184_vm4, %v656_v61, 0.0  ;;  %v1409_v38 = vsel %vm1184_vm4, %v1332_v12, 0.0 }
  0xf5   : > { %v1402_v4 = vadd.f32 %v1401_v0, %v1400_v60  ;;  %v1207_v5 = vadd.f32 %v1206_v1, %v1205_v59  ;;  %v1910_v6 = vpop.f32.mrf.mxu0  ;;  %1159 = vst.msk [vmem:[%s2173_s27 + $0x9c] sm:$0xf] %vm1119_vm3, %v1832_v55  ;;  %v2302_v1 = vpop.f32.mrf.mxu1 }
  0xf6   : > { %1132 = vst.msk [vmem:[%s2173_s27 + $0x30] sm:$0xf] %vm1119_vm3, %v1805_v2  ;;  %v1808_v10 = vpack.c.bf16 %v1910_v6, %v1910_v6  ;;  %v1405_v18 = vsel %vm1184_vm4, %v1330_v3, 0.0  ;;  %v1333_v28 = vmul.f32 %v1910_v6, %v1910_v6  ;;  %v1214_v39 = vsel %vm1184_vm4, %v1910_v6, 0.0 }
  0xf7   : > { %v1209_v13 = vadd.f32 %v1208_v9, %v1207_v5  ;;  %v1404_v14 = vadd.f32 %v1403_v8, %v1402_v4  ;;  %v659_v15 = vpop.f32.mrf.mxu0  ;;  %v2310_v12 = vpop.f32.mrf.mxu1 }
  0xf8   : > { %1135 = vst.msk [vmem:[%s2173_s27 + $0x3c] sm:$0xf] %vm1119_vm3, %v1808_v10  ;;  %v1806_v19 = vpack.c.bf16 %v659_v15, %v659_v15  ;;  %v1210_v21 = vsel %vm1184_vm4, %v659_v15, 0.0  ;;  %v1331_v22 = vmul.f32 %v659_v15, %v659_v15  ;;  %v1411_v47 = vsel %vm1184_vm4, %v1333_v28, 0.0 }
  0xf9   : > { %v1406_v23 = vadd.f32 %v1405_v18, %v1404_v14  ;;  %v1211_v24 = vadd.f32 %v1210_v21, %v1209_v13  ;;  %v1913_v25 = vpop.f32.mrf.mxu0  ;;  %v1830_v10 = vpack.c.bf16 %v2254_v7, %v2254_v7 }
  0xfa   : > { %1133 = vst.msk [vmem:[%s2173_s27 + $0x34] sm:$0xf] %vm1119_vm3, %v1806_v19  ;;  %v1407_v30 = vsel %vm1184_vm4, %v1331_v22, 0.0  ;;  %v1811_v31 = vpack.c.bf16 %v1913_v25, %v1913_v25  ;;  %v1336_v50 = vmul.f32 %v1913_v25, %v1913_v25  ;;  %v1220_v2 = vsel %vm1184_vm4, %v1913_v25, 0.0  ;;  %v2318_v22 = vpop.f32.mrf.mxu1 }
  0xfb   : > { %v1213_v32 = vadd.f32 %v1212_v27, %v1211_v24  ;;  %v1408_v33 = vadd.f32 %v1407_v30, %v1406_v23  ;;  %v672_v34 = vpop.f32.mrf.mxu0  ;;  %1157 = vst.msk [vmem:[%s2173_s27 + $0x94] sm:$0xf] %vm1119_vm3, %v1830_v10 }
  0xfc   : > { %1138 = vst.msk [vmem:[%s2173_s27 + $0x48] sm:$0xf] %vm1119_vm3, %v1811_v31  ;;  %v1809_v40 = vpack.c.bf16 %v672_v34, %v672_v34  ;;  %v1334_v41 = vmul.f32 %v672_v34, %v672_v34  ;;  %v1216_v48 = vsel %vm1184_vm4, %v672_v34, 0.0  ;;  %v1417_v13 = vsel %vm1184_vm4, %v1336_v50, 0.0 }
  0xfd   : > { %v1410_v42 = vadd.f32 %v1409_v38, %v1408_v33  ;;  %v1215_v43 = vadd.f32 %v1214_v39, %v1213_v32  ;;  %v1914_v44 = vpop.f32.mrf.mxu0  ;;  %v1835_v32 = vpack.c.bf16 %v2262_v17, %v2262_v17  ;;  %v2326_v33 = vpop.f32.mrf.mxu1 }
  0xfe   : > { %1136 = vst.msk [vmem:[%s2173_s27 + $0x40] sm:$0xf] %vm1119_vm3, %v1809_v40  ;;  %v1812_v49 = vpack.c.bf16 %v1914_v44, %v1914_v44  ;;  %v1413_v57 = vsel %vm1184_vm4, %v1334_v41, 0.0  ;;  %v1337_v3 = vmul.f32 %v1914_v44, %v1914_v44  ;;  %v1222_v14 = vsel %vm1184_vm4, %v1914_v44, 0.0 }
  0xff   : > { %v1217_v51 = vadd.f32 %v1216_v48, %v1215_v43  ;;  %v1412_v52 = vadd.f32 %v1411_v47, %v1410_v42  ;;  %v675_v53 = vpop.f32.mrf.mxu0  ;;  %1162 = vst.msk [vmem:[%s2173_s27 + $0xa8] sm:$0xf] %vm1119_vm3, %v1835_v32  ;;  %v2334_v43 = vpop.f32.mrf.mxu1 }
 0x100   : > { %1139 = vst.msk [vmem:[%s2173_s27 + $0x4c] sm:$0xf] %vm1119_vm3, %v1812_v49  ;;  %v1810_v58 = vpack.c.bf16 %v675_v53, %v675_v53  ;;  %v1218_v59 = vsel %vm1184_vm4, %v675_v53, 0.0  ;;  %v1335_v60 = vmul.f32 %v675_v53, %v675_v53  ;;  %v1419_v23 = vsel %vm1184_vm4, %v1337_v3, 0.0 }
 0x101   : > { %v1414_v61 = vadd.f32 %v1413_v57, %v1412_v52  ;;  %v1219_v62 = vadd.f32 %v1218_v59, %v1217_v51  ;;  %v1917_v0 = vpop.f32.mrf.mxu0  ;;  %v1833_v53 = vpack.c.bf16 %v2270_v26, %v2270_v26  ;;  %v2342_v55 = vpop.f32.mrf.mxu1 }
 0x102   : > { %1137 = vst.msk [vmem:[%s2173_s27 + $0x44] sm:$0xf] %vm1119_vm3, %v1810_v58  ;;  %v1415_v4 = vsel %vm1184_vm4, %v1335_v60, 0.0  ;;  %v1815_v5 = vpack.c.bf16 %v1917_v0, %v1917_v0  ;;  %v1340_v27 = vmul.f32 %v1917_v0, %v1917_v0  ;;  %v1228_v44 = vsel %vm1184_vm4, %v1917_v0, 0.0 }
 0x103   : > { %v1221_v6 = vadd.f32 %v1220_v2, %v1219_v62  ;;  %v1416_v8 = vadd.f32 %v1415_v4, %v1414_v61  ;;  %v688_v9 = vpop.f32.mrf.mxu0  ;;  %1160 = vst.msk [vmem:[%s2173_s27 + $0xa0] sm:$0xf] %vm1119_vm3, %v1833_v53  ;;  %v2350_v2 = vpop.f32.mrf.mxu1 }
 0x104   : > { %1142 = vst.msk [vmem:[%s2173_s27 + $0x58] sm:$0xf] %vm1119_vm3, %v1815_v5  ;;  %v1813_v15 = vpack.c.bf16 %v688_v9, %v688_v9  ;;  %v1338_v16 = vmul.f32 %v688_v9, %v688_v9  ;;  %v1224_v24 = vsel %vm1184_vm4, %v688_v9, 0.0  ;;  %v1425_v57 = vsel %vm1184_vm4, %v1340_v27, 0.0 }
 0x105   : > { %v1418_v18 = vadd.f32 %v1417_v13, %v1416_v8  ;;  %v1223_v19 = vadd.f32 %v1222_v14, %v1221_v6  ;;  %v1918_v21 = vpop.f32.mrf.mxu0  ;;  %v1836_v13 = vpack.c.bf16 %v2278_v36, %v2278_v36  ;;  %v2358_v14 = vpop.f32.mrf.mxu1 }
 0x106   : > { %1140 = vst.msk [vmem:[%s2173_s27 + $0x50] sm:$0xf] %vm1119_vm3, %v1813_v15  ;;  %v1816_v25 = vpack.c.bf16 %v1918_v21, %v1918_v21  ;;  %v1421_v34 = vsel %vm1184_vm4, %v1338_v16, 0.0  ;;  %v1341_v47 = vmul.f32 %v1918_v21, %v1918_v21  ;;  %v1230_v58 = vsel %vm1184_vm4, %v1918_v21, 0.0 }
 0x107   : > { %v1225_v28 = vadd.f32 %v1224_v24, %v1223_v19  ;;  %v1420_v30 = vadd.f32 %v1419_v23, %v1418_v18  ;;  %v691_v31 = vpop.f32.mrf.mxu0  ;;  %1163 = vst.msk [vmem:[%s2173_s27 + $0xac] sm:$0xf] %vm1119_vm3, %v1836_v13 }
 0x108   : > { %1143 = vst.msk [vmem:[%s2173_s27 + $0x5c] sm:$0xf] %vm1119_vm3, %v1816_v25  ;;  %v1814_v35 = vpack.c.bf16 %v691_v31, %v691_v31  ;;  %v1226_v38 = vsel %vm1184_vm4, %v691_v31, 0.0  ;;  %v1339_v39 = vmul.f32 %v691_v31, %v691_v31  ;;  %v1427_v3 = vsel %vm1184_vm4, %v1341_v47, 0.0  ;;  %v2366_v25 = vpop.f32.mrf.mxu1 }
 0x109   : > { %v1422_v40 = vadd.f32 %v1421_v34, %v1420_v30  ;;  %v1227_v41 = vadd.f32 %v1226_v38, %v1225_v28  ;;  %v1921_v42 = vpop.f32.mrf.mxu0  ;;  %v1834_v38 = vpack.c.bf16 %v2286_v45, %v2286_v45 }
 0x10a   : > { %1141 = vst.msk [vmem:[%s2173_s27 + $0x54] sm:$0xf] %vm1119_vm3, %v1814_v35  ;;  %v1423_v48 = vsel %vm1184_vm4, %v1339_v39, 0.0  ;;  %v1819_v49 = vpack.c.bf16 %v1921_v42, %v1921_v42  ;;  %v1344_v6 = vmul.f32 %v1921_v42, %v1921_v42  ;;  %v1236_v27 = vsel %vm1184_vm4, %v1921_v42, 0.0  ;;  %v2374_v39 = vpop.f32.mrf.mxu1 }
 0x10b   : > { %v1229_v50 = vadd.f32 %v1228_v44, %v1227_v41  ;;  %v1424_v51 = vadd.f32 %v1423_v48, %v1422_v40  ;;  %v704_v52 = vpop.f32.mrf.mxu0  ;;  %1161 = vst.msk [vmem:[%s2173_s27 + $0xa4] sm:$0xf] %vm1119_vm3, %v1834_v38  ;;  %v1351_v38 = vmul.f32 %v2222_v37, %v2222_v37 }
 0x10c   : > { %1146 = vst.msk [vmem:[%s2173_s27 + $0x68] sm:$0xf] %vm1119_vm3, %v1819_v49  ;;  %v1817_v59 = vpack.c.bf16 %v704_v52, %v704_v52  ;;  %v1342_v60 = vmul.f32 %v704_v52, %v704_v52  ;;  %v1232_v4 = vsel %vm1184_vm4, %v704_v52, 0.0  ;;  %v1433_v40 = vsel %vm1184_vm4, %v1344_v6, 0.0 }
 0x10d   : > { %v1426_v61 = vadd.f32 %v1425_v57, %v1424_v51  ;;  %v1231_v62 = vadd.f32 %v1230_v58, %v1229_v50  ;;  %v1922_v0 = vpop.f32.mrf.mxu0  ;;  %v2382_v50 = vpop.f32.mrf.mxu1 }
 0x10e   : > { %1144 = vst.msk [vmem:[%s2173_s27 + $0x60] sm:$0xf] %vm1119_vm3, %v1817_v59  ;;  %v1820_v5 = vpack.c.bf16 %v1922_v0, %v1922_v0  ;;  %v1429_v15 = vsel %vm1184_vm4, %v1342_v60, 0.0  ;;  %v1345_v28 = vmul.f32 %v1922_v0, %v1922_v0  ;;  %v1238_v41 = vsel %vm1184_vm4, %v1922_v0, 0.0 }
 0x10f   : > { %v1233_v8 = vadd.f32 %v1232_v4, %v1231_v62  ;;  %v1428_v9 = vadd.f32 %v1427_v3, %v1426_v61  ;;  %v707_v10 = vpop.f32.mrf.mxu0  ;;  %v1839_v61 = vpack.c.bf16 %v2294_v56, %v2294_v56  ;;  %v2390_v62 = vpop.f32.mrf.mxu1 }
 0x110   : > { %1147 = vst.msk [vmem:[%s2173_s27 + $0x6c] sm:$0xf] %vm1119_vm3, %v1820_v5  ;;  %v1818_v16 = vpack.c.bf16 %v707_v10, %v707_v10  ;;  %v1234_v18 = vsel %vm1184_vm4, %v707_v10, 0.0  ;;  %v1343_v19 = vmul.f32 %v707_v10, %v707_v10  ;;  %v1435_v51 = vsel %vm1184_vm4, %v1345_v28, 0.0 }
 0x111   : > { %v1430_v21 = vadd.f32 %v1429_v15, %v1428_v9  ;;  %v1235_v23 = vadd.f32 %v1234_v18, %v1233_v8  ;;  %v1925_v24 = vpop.f32.mrf.mxu0  ;;  %1166 = vst.msk [vmem:[%s2173_s27 + $0xb8] sm:$0xf] %vm1119_vm3, %v1839_v61  ;;  %v2398_v9 = vpop.f32.mrf.mxu1  ;;  %v1350_v28 = vmul.f32 %v2204_v20, %v2204_v20 }
 0x112   : > { %1145 = vst.msk [vmem:[%s2173_s27 + $0x64] sm:$0xf] %vm1119_vm3, %v1818_v16  ;;  %v1431_v30 = vsel %vm1184_vm4, %v1343_v19, 0.0  ;;  %v1823_v31 = vpack.c.bf16 %v1925_v24, %v1925_v24  ;;  %v1348_v57 = vmul.f32 %v1925_v24, %v1925_v24  ;;  %v1244_v10 = vsel %vm1184_vm4, %v1925_v24, 0.0 }
 0x113   : > { %v1237_v32 = vadd.f32 %v1236_v27, %v1235_v23  ;;  %v1432_v34 = vadd.f32 %v1431_v30, %v1430_v21  ;;  %v720_v35 = vpop.f32.mrf.mxu0  ;;  %v1837_v16 = vpack.c.bf16 %v2302_v1, %v2302_v1  ;;  %v1840_v21 = vpack.c.bf16 %v2310_v12, %v2310_v12  ;;  %v2408_v23 = vpop.f32.mrf.mxu1 }
 0x114   : > { %1150 = vst.msk [vmem:[%s2173_s27 + $0x78] sm:$0xf] %vm1119_vm3, %v1823_v31  ;;  %v1821_v42 = vpack.c.bf16 %v720_v35, %v720_v35  ;;  %v1346_v44 = vmul.f32 %v720_v35, %v720_v35  ;;  %v1240_v52 = vsel %vm1184_vm4, %v720_v35, 0.0  ;;  %v1441_v27 = vsel %vm1184_vm4, %v1348_v57, 0.0 }
 0x115   : > { %v1434_v47 = vadd.f32 %v1433_v40, %v1432_v34  ;;  %v1239_v48 = vadd.f32 %v1238_v41, %v1237_v32  ;;  %v1926_v49 = vpop.f32.mrf.mxu0  ;;  %1164 = vst.msk [vmem:[%s2173_s27 + $0xb0] sm:$0xf] %vm1119_vm3, %v1837_v16  ;;  %v1838_v30 = vpack.c.bf16 %v2318_v22, %v2318_v22  ;;  %1167 = vst.msk [vmem:[%s2173_s27 + $0xbc] sm:$0xf] %vm1119_vm3, %v1840_v21  ;;  %v1248_v35 = vsel %vm1184_vm4, %v2204_v20, 0.0 }
 0x116   : > { %1148 = vst.msk [vmem:[%s2173_s27 + $0x70] sm:$0xf] %vm1119_vm3, %v1821_v42  ;;  %v1824_v53 = vpack.c.bf16 %v1926_v49, %v1926_v49  ;;  %v1437_v0 = vsel %vm1184_vm4, %v1346_v44, 0.0  ;;  %v1349_v13 = vmul.f32 %v1926_v49, %v1926_v49  ;;  %v1246_v24 = vsel %vm1184_vm4, %v1926_v49, 0.0 }
 0x117   : > { %v1241_v58 = vadd.f32 %v1240_v52, %v1239_v48  ;;  %v1436_v59 = vadd.f32 %v1435_v51, %v1434_v47  ;;  %v723_v60 = vpop.f32.mrf.mxu0  ;;  %1165 = vst.msk [vmem:[%s2173_s27 + $0xb4] sm:$0xf] %vm1119_vm3, %v1838_v30  ;;  %v1843_v40 = vpack.c.bf16 %v2326_v33, %v2326_v33  ;;  %v1841_v44 = vpack.c.bf16 %v2334_v43, %v2334_v43  ;;  %v2431_v47 = vpop.f32.mrf.mxu1 }
 0x118   : > { %1151 = vst.msk [vmem:[%s2173_s27 + $0x7c] sm:$0xf] %vm1119_vm3, %v1824_v53  ;;  %v1822_v3 = vpack.c.bf16 %v723_v60, %v723_v60  ;;  %v1242_v4 = vsel %vm1184_vm4, %v723_v60, 0.0  ;;  %v1347_v5 = vmul.f32 %v723_v60, %v723_v60  ;;  %v1443_v34 = vsel %vm1184_vm4, %v1349_v13, 0.0 }
 0x119   : > { %v1438_v6 = vadd.f32 %v1437_v0, %v1436_v59  ;;  %v1243_v8 = vadd.f32 %v1242_v4, %v1241_v58  ;;  %v1352_v48 = vmul.f32 %v2196_v11, %v2196_v11  ;;  %v1445_v20 = vsel %vm1184_vm4, %v1350_v28, 0.0  ;;  %1170 = vst.msk [vmem:[%s2173_s27 + $0xc8] sm:$0xf] %vm1119_vm3, %v1843_v40  ;;  %1168 = vst.msk [vmem:[%s2173_s27 + $0xc0] sm:$0xf] %vm1119_vm3, %v1841_v44 }
 0x11a   : > { %1149 = vst.msk [vmem:[%s2173_s27 + $0x74] sm:$0xf] %vm1119_vm3, %v1822_v3  ;;  %v1439_v15 = vsel %vm1184_vm4, %v1347_v5, 0.0  ;;  %v1250_v49 = vsel %vm1184_vm4, %v2222_v37, 0.0  ;;  %v1844_v51 = vpack.c.bf16 %v2342_v55, %v2342_v55  ;;  %v1252_v57 = vsel %vm1184_vm4, %v2196_v11, 0.0  ;;  %v2455_v3 = vpop.f32.mrf.mxu1 }
 0x11b   : > { %v1245_v18 = vadd.f32 %v1244_v10, %v1243_v8  ;;  %v1440_v19 = vadd.f32 %v1439_v15, %v1438_v6  ;;  %v1353_v58 = vmul.f32 %v2214_v29, %v2214_v29  ;;  %v1447_v59 = vsel %vm1184_vm4, %v1351_v38, 0.0 }
 0x11c   : > { %1171 = vst.msk [vmem:[%s2173_s27 + $0xcc] sm:$0xf] %vm1119_vm3, %v1844_v51  ;;  %v1842_v37 = vpack.c.bf16 %v2350_v2, %v2350_v2  ;;  %v1847_v0 = vpack.c.bf16 %v2358_v14, %v2358_v14  ;;  %v1449_v11 = vsel %vm1184_vm4, %v1352_v48, 0.0  ;;  %v1254_v4 = vsel %vm1184_vm4, %v2214_v29, 0.0 }
 0x11d   : > { %v1247_v31 = vadd.f32 %v1246_v24, %v1245_v18  ;;  %v1442_v32 = vadd.f32 %v1441_v27, %v1440_v19  ;;  %v1354_v5 = vmul.f32 %v2238_v54, %v2238_v54  ;;  %v1845_v6 = vpack.c.bf16 %v2366_v25, %v2366_v25  ;;  %v2479_v27 = vpop.f32.mrf.mxu1 }
 0x11e   : > { %1169 = vst.msk [vmem:[%s2173_s27 + $0xc4] sm:$0xf] %vm1119_vm3, %v1842_v37  ;;  %1174 = vst.msk [vmem:[%s2173_s27 + $0xd8] sm:$0xf] %vm1119_vm3, %v1847_v0  ;;  %v1451_v13 = vsel %vm1184_vm4, %v1353_v58, 0.0  ;;  %v1256_v15 = vsel %vm1184_vm4, %v2238_v54, 0.0  ;;  %v1355_v29 = vmul.f32 %v2254_v7, %v2254_v7  ;;  %v1848_v16 = vpack.c.bf16 %v2374_v39, %v2374_v39 }
 0x11f   : > { %v1444_v41 = vadd.f32 %v1443_v34, %v1442_v32  ;;  %v1249_v42 = vadd.f32 %v1248_v35, %v1247_v31  ;;  %1172 = vst.msk [vmem:[%s2173_s27 + $0xd0] sm:$0xf] %vm1119_vm3, %v1845_v6  ;;  %v1846_v21 = vpack.c.bf16 %v2382_v50, %v2382_v50  ;;  %v1356_v24 = vmul.f32 %v2230_v46, %v2230_v46  ;;  %v2503_v44 = vpop.f32.mrf.mxu1 }
 0x120   : > { %v1453_v54 = vsel %vm1184_vm4, %v1354_v5, 0.0  ;;  %v1258_v28 = vsel %vm1184_vm4, %v2254_v7, 0.0  ;;  %1175 = vst.msk [vmem:[%s2173_s27 + $0xdc] sm:$0xf] %vm1119_vm3, %v1848_v16  ;;  %v1851_v30 = vpack.c.bf16 %v2390_v62, %v2390_v62  ;;  %v1260_v34 = vsel %vm1184_vm4, %v2230_v46, 0.0 }
 0x121   : > { %v1251_v52 = vadd.f32 %v1250_v49, %v1249_v42  ;;  %v1446_v53 = vadd.f32 %v1445_v20, %v1444_v41  ;;  %1173 = vst.msk [vmem:[%s2173_s27 + $0xd4] sm:$0xf] %vm1119_vm3, %v1846_v21  ;;  %v1357_v35 = vmul.f32 %v2246_v63, %v2246_v63  ;;  %v1455_v38 = vsel %vm1184_vm4, %v1355_v29, 0.0 }
 0x122   : > { %1178 = vst.msk [vmem:[%s2173_s27 + $0xe8] sm:$0xf] %vm1119_vm3, %v1851_v30  ;;  %v1849_v7 = vpack.c.bf16 %v2398_v9, %v2398_v9  ;;  %v1852_v42 = vpack.c.bf16 %v2408_v23, %v2408_v23  ;;  %v1457_v46 = vsel %vm1184_vm4, %v1356_v24, 0.0  ;;  %v1262_v48 = vsel %vm1184_vm4, %v2246_v63, 0.0 }
 0x123   : > { %v1253_v60 = vadd.f32 %v1252_v57, %v1251_v52  ;;  %v1448_v61 = vadd.f32 %v1447_v59, %v1446_v53  ;;  %v1358_v20 = vmul.f32 %v2270_v26, %v2270_v26  ;;  %v1850_v49 = vpack.c.bf16 %v2431_v47, %v2431_v47 }
 0x124   : > { %1176 = vst.msk [vmem:[%s2173_s27 + $0xe0] sm:$0xf] %vm1119_vm3, %v1849_v7  ;;  %1179 = vst.msk [vmem:[%s2173_s27 + $0xec] sm:$0xf] %vm1119_vm3, %v1852_v42  ;;  %v1459_v53 = vsel %vm1184_vm4, %v1357_v35, 0.0  ;;  %v1264_v57 = vsel %vm1184_vm4, %v2270_v26, 0.0  ;;  %v1359_v63 = vmul.f32 %v2286_v45, %v2286_v45  ;;  %v1855_v58 = vpack.c.bf16 %v2455_v3, %v2455_v3 }
 0x125   : > { %v1450_v8 = vadd.f32 %v1449_v11, %v1448_v61  ;;  %v1255_v10 = vadd.f32 %v1254_v4, %v1253_v60  ;;  %1177 = vst.msk [vmem:[%s2173_s27 + $0xe4] sm:$0xf] %vm1119_vm3, %v1850_v49  ;;  %v1853_v60 = vpack.c.bf16 %v2479_v27, %v2479_v27  ;;  %v2527_v61 = vpop.f32.mrf.mxu1  ;;  %v1360_v0 = vmul.f32 %v2262_v17, %v2262_v17 }
 0x126   : > { %v1461_v26 = vsel %vm1184_vm4, %v1358_v20, 0.0  ;;  %v1266_v11 = vsel %vm1184_vm4, %v2286_v45, 0.0  ;;  %1182 = vst.msk [vmem:[%s2173_s27 + $0xf8] sm:$0xf] %vm1119_vm3, %v1855_v58  ;;  %v1856_v4 = vpack.c.bf16 %v2503_v44, %v2503_v44  ;;  %v1854_v45 = vpack.c.bf16 %v2527_v61, %v2527_v61 }
 0x127   : > { %v1257_v18 = vadd.f32 %v1256_v15, %v1255_v10  ;;  %v1452_v19 = vadd.f32 %v1451_v13, %v1450_v8  ;;  %1180 = vst.msk [vmem:[%s2173_s27 + $0xf0] sm:$0xf] %vm1119_vm3, %v1853_v60  ;;  %v1268_v8 = vsel %vm1184_vm4, %v2262_v17, 0.0  ;;  %v1361_v10 = vmul.f32 %v2278_v36, %v2278_v36 }
 0x128   : > { %v1463_v13 = vsel %vm1184_vm4, %v1359_v63, 0.0  ;;  %1183 = vst.msk [vmem:[%s2173_s27 + $0xfc] sm:$0xf] %vm1119_vm3, %v1856_v4  ;;  %v1465_v16 = vsel %vm1184_vm4, %v1360_v0, 0.0  ;;  %v1362_v17 = vmul.f32 %v2302_v1, %v2302_v1  ;;  %1181 = vst.msk [vmem:[%s2173_s27 + $0xf4] sm:$0xf] %vm1119_vm3, %v1854_v45  ;;  %v1368_v63 = vmul.f32 %v2326_v33, %v2326_v33 }
 0x129   : > { %v1454_v31 = vadd.f32 %v1453_v54, %v1452_v19  ;;  %v1259_v32 = vadd.f32 %v1258_v28, %v1257_v18  ;;  %v1270_v18 = vsel %vm1184_vm4, %v2278_v36, 0.0  ;;  %v1467_v24 = vsel %vm1184_vm4, %v1361_v10, 0.0 }
 0x12a   : > { %v1272_v54 = vsel %vm1184_vm4, %v2302_v1, 0.0  ;;  %v1363_v28 = vmul.f32 %v2318_v22, %v2318_v22  ;;  %v1364_v36 = vmul.f32 %v2294_v56, %v2294_v56  ;;  %v1276_v7 = vsel %vm1184_vm4, %v2294_v56, 0.0 }
 0x12b   : > { %v1261_v40 = vadd.f32 %v1260_v34, %v1259_v32  ;;  %v1456_v41 = vadd.f32 %v1455_v38, %v1454_v31  ;;  %v1469_v32 = vsel %vm1184_vm4, %v1362_v17, 0.0  ;;  %v1274_v34 = vsel %vm1184_vm4, %v2318_v22, 0.0 }
 0x12c   : > { %v1365_v1 = vmul.f32 %v2310_v12, %v2310_v12  ;;  %v1366_v22 = vmul.f32 %v2334_v43, %v2334_v43  ;;  %v1280_v56 = vsel %vm1184_vm4, %v2334_v43, 0.0  ;;  %v1282_v58 = vsel %vm1184_vm4, %v2350_v2, 0.0 }
 0x12d   : > { %v1458_v51 = vadd.f32 %v1457_v46, %v1456_v41  ;;  %v1263_v52 = vadd.f32 %v1262_v48, %v1261_v40  ;;  %v1471_v40 = vsel %vm1184_vm4, %v1363_v28, 0.0  ;;  %v1473_v46 = vsel %vm1184_vm4, %v1364_v36, 0.0 }
 0x12e   : > { %v1278_v48 = vsel %vm1184_vm4, %v2310_v12, 0.0  ;;  %v1477_v12 = vsel %vm1184_vm4, %v1366_v22, 0.0  ;;  %v1284_v60 = vsel %vm1184_vm4, %v2326_v33, 0.0  ;;  %v1369_v43 = vmul.f32 %v2342_v55, %v2342_v55 }
 0x12f   : > { %v1265_v59 = vadd.f32 %v1264_v57, %v1263_v52  ;;  %v1460_v37 = vadd.f32 %v1459_v53, %v1458_v51  ;;  %v1475_v51 = vsel %vm1184_vm4, %v1365_v1, 0.0  ;;  %v1367_v52 = vmul.f32 %v2350_v2, %v2350_v2 }
 0x130   : > { %v1481_v4 = vsel %vm1184_vm4, %v1368_v63, 0.0  ;;  %v1370_v2 = vmul.f32 %v2366_v25, %v2366_v25  ;;  %v1483_v10 = vsel %vm1184_vm4, %v1369_v43, 0.0  ;;  %v1288_v33 = vsel %vm1184_vm4, %v2366_v25, 0.0 }
 0x131   : > { %v1462_v5 = vadd.f32 %v1461_v26, %v1460_v37  ;;  %v1267_v6 = vadd.f32 %v1266_v11, %v1265_v59  ;;  %v1479_v0 = vsel %vm1184_vm4, %v1367_v52, 0.0  ;;  %v1373_v25 = vmul.f32 %v2374_v39, %v2374_v39 }
 0x132   : > { %v1298_v1 = vsel %vm1184_vm4, %v2431_v47, 0.0 }
 0x133   : > { %v1269_v15 = vadd.f32 %v1268_v8, %v1267_v6  ;;  %v1464_v29 = vadd.f32 %v1463_v13, %v1462_v5  ;;  %v1286_v5 = vsel %vm1184_vm4, %v2342_v55, 0.0  ;;  %v1371_v13 = vmul.f32 %v2382_v50, %v2382_v50 }
 0x134   : > { %v1485_v55 = vsel %vm1184_vm4, %v1370_v2, 0.0 }
 0x135   : > { %v1466_v19 = vadd.f32 %v1465_v16, %v1464_v29  ;;  %v1271_v21 = vadd.f32 %v1270_v18, %v1269_v15  ;;  %v1372_v29 = vmul.f32 %v2358_v14, %v2358_v14  ;;  %v1290_v16 = vsel %vm1184_vm4, %v2382_v50, 0.0 }
 0x136   : > { %v1374_v50 = vmul.f32 %v2398_v9, %v2398_v9 }
 0x137   : > { %v1273_v30 = vadd.f32 %v1272_v54, %v1271_v21  ;;  %v1468_v31 = vadd.f32 %v1467_v24, %v1466_v19  ;;  %v1292_v19 = vsel %vm1184_vm4, %v2358_v14, 0.0  ;;  %v1487_v21 = vsel %vm1184_vm4, %v1371_v13, 0.0 }
 0x138   : > { %v1489_v28 = vsel %vm1184_vm4, %v1372_v29, 0.0  ;;  %v1296_v14 = vsel %vm1184_vm4, %v2398_v9, 0.0  ;;  %v1377_v9 = vmul.f32 %v2408_v23, %v2408_v23 }
 0x139   : > { %v1470_v35 = vadd.f32 %v1469_v32, %v1468_v31  ;;  %v1275_v38 = vadd.f32 %v1274_v34, %v1273_v30  ;;  %v1294_v30 = vsel %vm1184_vm4, %v2374_v39, 0.0  ;;  %v1491_v32 = vsel %vm1184_vm4, %v1373_v25, 0.0 }
 0x13a   : > { %v1375_v34 = vmul.f32 %v2431_v47, %v2431_v47  ;;  %v1493_v39 = vsel %vm1184_vm4, %v1374_v50, 0.0  ;;  %v1378_v47 = vmul.f32 %v2479_v27, %v2479_v27  ;;  %v1499_v52 = vsel %vm1184_vm4, %v1377_v9, 0.0 }
 0x13b   : > { %v1277_v41 = vadd.f32 %v1276_v7, %v1275_v38  ;;  %v1472_v42 = vadd.f32 %v1471_v40, %v1470_v35  ;;  %v1376_v7 = vmul.f32 %v2390_v62, %v2390_v62 }
 0x13d   : > { %v1474_v20 = vadd.f32 %v1473_v46, %v1472_v42  ;;  %v1279_v49 = vadd.f32 %v1278_v48, %v1277_v41  ;;  %v1300_v42 = vsel %vm1184_vm4, %v2390_v62, 0.0  ;;  %v1495_v46 = vsel %vm1184_vm4, %v1375_v34, 0.0 }
 0x13e   : > { %v1304_v62 = vsel %vm1184_vm4, %v2479_v27, 0.0  ;;  %v1381_v27 = vmul.f32 %v2503_v44, %v2503_v44 }
 0x13f   : > { %v1281_v53 = vadd.f32 %v1280_v56, %v1279_v49  ;;  %v1476_v57 = vadd.f32 %v1475_v51, %v1474_v20  ;;  %v1497_v20 = vsel %vm1184_vm4, %v1376_v7, 0.0  ;;  %v1302_v49 = vsel %vm1184_vm4, %v2408_v23, 0.0 }
 0x140   : > { %v1501_v23 = vsel %vm1184_vm4, %v1378_v47, 0.0  ;;  %v1507_v2 = vsel %vm1184_vm4, %v1381_v27, 0.0 }
 0x141   : > { %v1478_v59 = vadd.f32 %v1477_v12, %v1476_v57  ;;  %v1283_v37 = vadd.f32 %v1282_v58, %v1281_v53  ;;  %v1379_v53 = vmul.f32 %v2527_v61, %v2527_v61  ;;  %v1380_v12 = vmul.f32 %v2455_v3, %v2455_v3 }
 0x142   : > { %v1306_v58 = vsel %vm1184_vm4, %v2527_v61, 0.0 }
 0x143   : > { %v1285_v26 = vadd.f32 %v1284_v60, %v1283_v37  ;;  %v1480_v11 = vadd.f32 %v1479_v0, %v1478_v59  ;;  %v1308_v60 = vsel %vm1184_vm4, %v2455_v3, 0.0  ;;  %v1503_v43 = vsel %vm1184_vm4, %v1379_v53, 0.0 }
 0x145   : > { %v1482_v6 = vadd.f32 %v1481_v4, %v1480_v11  ;;  %v1287_v8 = vadd.f32 %v1286_v5, %v1285_v26  ;;  %v1505_v11 = vsel %vm1184_vm4, %v1380_v12, 0.0  ;;  %v1310_v4 = vsel %vm1184_vm4, %v2503_v44, 0.0 }
 0x147   : > { %v1289_v45 = vadd.f32 %v1288_v33, %v1287_v8  ;;  %v1484_v15 = vadd.f32 %v1483_v10, %v1482_v6 }
 0x149   : > { %v1486_v18 = vadd.f32 %v1485_v55, %v1484_v15  ;;  %v1291_v17 = vadd.f32 %v1290_v16, %v1289_v45 }
 0x14b   : > { %v1293_v24 = vadd.f32 %v1292_v19, %v1291_v17  ;;  %v1488_v54 = vadd.f32 %v1487_v21, %v1486_v18 }
 0x14d   : > { %v1490_v31 = vadd.f32 %v1489_v28, %v1488_v54  ;;  %v1295_v36 = vadd.f32 %v1294_v30, %v1293_v24 }
 0x14f   : > { %v1297_v35 = vadd.f32 %v1296_v14, %v1295_v36  ;;  %v1492_v38 = vadd.f32 %v1491_v32, %v1490_v31 }
 0x151   : > { %v1494_v40 = vadd.f32 %v1493_v39, %v1492_v38  ;;  %v1299_v41 = vadd.f32 %v1298_v1, %v1297_v35 }
 0x153   : > { %v1301_v48 = vadd.f32 %v1300_v42, %v1299_v41  ;;  %v1496_v22 = vadd.f32 %v1495_v46, %v1494_v40 }
 0x155   : > { %v1498_v51 = vadd.f32 %v1497_v20, %v1496_v22  ;;  %v1303_v56 = vadd.f32 %v1302_v49, %v1301_v48 }
 0x157   : > { %v1305_v57 = vadd.f32 %v1304_v62, %v1303_v56  ;;  %v1500_v63 = vadd.f32 %v1499_v52, %v1498_v51 }
 0x159   : > { %v1502_v59 = vadd.f32 %v1501_v23, %v1500_v63  ;;  %v1307_v37 = vadd.f32 %v1306_v58, %v1305_v57 }
 0x15b   : > { %v1309_v0 = vadd.f32 %v1308_v60, %v1307_v37  ;;  %v1504_v26 = vadd.f32 %v1503_v43, %v1502_v59 }
 0x15d   : > { %v1311_v5 = vadd.f32 %v1310_v4, %v1309_v0  ;;  %v1506_v61 = vadd.f32 %v1505_v11, %v1504_v26 }
 0x15f   : > { %v1312_v6 = vrot.slane %v1311_v5, 4  ;;  %v1508_v8 = vadd.f32 %v1507_v2, %v1506_v61 }
 0x161   : > { %v1313_v3 = vadd.f32 %v1312_v6, %v1311_v5  ;;  %v1509_v10 = vrot.slane %v1508_v8, 4 }
 0x163   : > { %v1314_v33 = vrot.slane %v1313_v3, 2  ;;  %v1510_v13 = vadd.f32 %v1509_v10, %v1508_v8 }
 0x165   : > { %v1315_v45 = vadd.f32 %v1314_v33, %v1313_v3  ;;  %v1511_v15 = vrot.slane %v1510_v13, 2 }
 0x167   : > { %v1316_v29 = vrot.slane %v1315_v45, 1  ;;  %v1512_v55 = vadd.f32 %v1511_v15, %v1510_v13 }
 0x169   : > { %v1513_v16 = vrot.slane %v1512_v55, 1  ;;  %v1317_v44 = vadd.f32 %v1316_v29, %v1315_v45 }
 0x16b   : > { %v1514_v18 = vadd.f32 %v1513_v16, %v1512_v55 }
 0x16d   : > { %v1516_v17 = vsel %vm1515_vm5, %v1317_v44, %v1514_v18 }
 0x16e   : > { %1518 = vst.msk [vmem:[%s229_s4] sm:$0x3] %vm1517_vm6, %v1516_v17 }
 0x16f PF: > { %s14_s14 = sadd.s32 1, %s2044_s14   ;;  %s2673_s12 = smov %s2040_s13 }
 0x170   : > { %p11_p6 = scmp.ge.s32.totalorder %s14_s14, 74   ;;  %s2674_s13 = smov %s2676_s15 }
 0x172   :  { %13 = sbr.rel (!%p11_p6) target bundleno = 2 (0x2), region = 73 }

// kernel: squeeze.2
= control target key start
LH: loop header
LB: loop body
LE: loop exit
PB: predicated region body
PF: predicated region fallthrough
CT: control target
= control target key end

     0   :  { %vm8_vm0 = vcmask 64512   ;;  %s33_s8 = smov 112   ;;  %s50_s0 = inlined_call_operand.vmem [shape: f32[24], index: 0, kind: input, shape index: {}]   ;;  %s51_s1 = inlined_call_operand.vmem [shape: f32[3,8], index: 1, kind: output, shape index: {}]  }
   0x1   :  { %v5_v0 = vld [vmem:[%s50_s0] sm:$0x1]  ;;  %s32_s0 = smov 120  }
   0x2   :  { %6 = vst [vmem:[#allocation1] sm:$0x1] %v5_v0 }
   0x9   :  { %v10_v1 = vld [vmem:[#allocation1] sm:$0x1]  }
   0xa   :  { %v7_v2 = vld [vmem:[#allocation1] sm:$0x1]   ;;  %11 = vrot.lane.b32.xlu0 %v10_v1, %s32_s0 }
   0xb   :  { %9 = vst.msk [vmem:[#allocation0] sm:$0x1] %vm8_vm0, %v7_v2   ;;  %v16_v3 = vld [vmem:[#allocation1] sm:$0x1]  }
   0xe   :  { %17 = vrot.lane.b32.xlu0 %v16_v3, %s33_s8 }
  0x7c   :  { %v12_v4 = vpop.permute.xlu0 %11  }
  0x7d   :  { %15 = vst.msk [vmem:[#allocation0 + $0x1] sm:$0x1] %vm8_vm0, %v12_v4  }
  0x80   :  { %v18_v5 = vpop.permute.xlu0 %17  }
  0x81   :  { %21 = vst.msk [vmem:[#allocation0 + $0x2] sm:$0x1] %vm8_vm0, %v18_v5  }
  0x88   :  { %v26_v6 = vld [vmem:[#allocation0] sm:$0xf] }
  0x89   :  { %29 = vst [vmem:[%s51_s1] sm:$0xf] %v26_v6 }

// kernel: run_block.3
= control target key start
LH: loop header
LB: loop body
LE: loop exit
PB: predicated region body
PF: predicated region fallthrough
CT: control target
= control target key end

     0   :  { %s3714_s12 = smov 0   ;;  %s3716_s13 = smov 0   ;;  %s4912_s0 = inlined_call_operand.vmem [shape: bf16[1,36864,24], index: 0, kind: input, shape index: {}]   ;;  %s4913_s1 = inlined_call_operand.vmem [shape: f32[1,1,24], index: 1, kind: input, shape index: {}]   ;;  %s4914_s2 = inlined_call_operand.vmem [shape: f32[1,1,24], index: 2, kind: input, shape index: {}]   ;;  %s4915_s3 = inlined_call_operand.vmem [shape: bf16[1,36864,24], index: 3, kind: output, shape index: {}]  }
   0x1   :  { %s3718_s14 = smov 0  }
   0x2 LB: > { %s22_s15 = sadd.s32 1, %s3688_s13  ;;  %p2418_p0 = scmp.ge.s32.totalorder %s3692_s14, 1  ;;  %s3692_s14 = sphi %s3718_s14, %s13_s14   ;;  %s3688_s13 = sphi %s3716_s13, %s4917_s13   ;;  %s3684_s12 = sphi %s3714_s12, %s4916_s12  }
   0x3   : > { %p23_p1 = scmp.ge.s32.totalorder %s22_s15, 36  ;;  %p174_p2 = scmp.lt.s32.totalorder %s3692_s14, 37 }
   0x5   : > { %s4919_s15 = smov (%p23_p1, %s22_s15), 0  ;;  %p175_p3 = pnand %p2418_p0, %p174_p2 }
   0x6   : > { %s2419_s16 = sshll.u32 (!%p175_p3), %s3684_s12, 7 }
   0x7   : > { %178 = sbr.rel (%p175_p3) target bundleno = 328 (0x148), region = 32  ;;  %p215_p4 = scmp.lt.s32.totalorder (!%p175_p3), %s2419_s16, 4607 }
   0xc   : > { %s4921_s16 = smov (!%p215_p4, %s2419_s16), 4607  ;;  %v3745_v0 = vld [vmem:[%s4913_s1] ss:$0 sm:$0xff]  ;;  %vm2172_vm0 = vcmask 191488  }
   0xd   : > { %s2420_s17 = sshll.u32 %s4921_s16, 2  ;;  %v3754_v9 = vld [vmem:[%s4914_s2] ss:$0 sm:$0xff] }
   0xe   : > { %s3740_s20 = scalar_lea.vmem %s4912_s0, %s2420_s17  ;;  %s3924_s27 = scalar_lea.vmem %s4915_s3, %s2420_s17 }
   0xf   : > { %v2812_v1 = vld [vmem:[%s3740_s20] sm:$0xff]   ;;  %v3067_v2 = vld [vmem:[%s3740_s20 + $0x8] sm:$0xff]   ;;  %v3068_v3 = vld [vmem:[%s3740_s20 + $0x10] sm:$0xff]  }
  0x10   : > { %v2813_v4 = vunpack.c.l.bf16 %v2812_v1  ;;  %v2814_v5 = vunpack.c.h.bf16 %v2812_v1  ;;  %v2817_v6 = vunpack.c.l.bf16 %v3067_v2  ;;  %v2818_v7 = vunpack.c.h.bf16 %v3067_v2  ;;  %v3069_v8 = vld [vmem:[%s3740_s20 + $0x18] sm:$0xff]   ;;  %v3070_v22 = vld [vmem:[%s3740_s20 + $0x20] sm:$0xff]   ;;  %v3071_v31 = vld [vmem:[%s3740_s20 + $0x28] sm:$0xff]  }
  0x11   : > { %v2821_v10 = vunpack.c.l.bf16 %v3068_v3  ;;  %v2822_v11 = vunpack.c.h.bf16 %v3068_v3  ;;  %v2825_v12 = vunpack.c.l.bf16 %v3069_v8  ;;  %v2826_v13 = vunpack.c.h.bf16 %v3069_v8  ;;  %v3072_v32 = vld [vmem:[%s3740_s20 + $0x30] sm:$0xff]   ;;  %v3073_v53 = vld [vmem:[%s3740_s20 + $0x38] sm:$0xff]   ;;  %v3074_v63 = vld [vmem:[%s3740_s20 + $0x40] sm:$0xff]  }
  0x12   : > { %v501_v14 = vmul.f32 %v2813_v4, %v3745_v0  ;;  %v502_v15 = vmul.f32 %v2814_v5, %v3745_v0  ;;  %v503_v16 = vmul.f32 %v2817_v6, %v3745_v0  ;;  %v504_v17 = vmul.f32 %v2818_v7, %v3745_v0  ;;  %v3075_v4 = vld [vmem:[%s3740_s20 + $0x48] sm:$0xff]  }
  0x13   : > { %v505_v18 = vmul.f32 %v2821_v10, %v3745_v0  ;;  %v506_v19 = vmul.f32 %v2822_v11, %v3745_v0  ;;  %v507_v20 = vmul.f32 %v2825_v12, %v3745_v0  ;;  %v508_v21 = vmul.f32 %v2826_v13, %v3745_v0 }
  0x14   : > { %v3766_v23 = vadd.f32 %v3754_v9, %v501_v14  ;;  %v3769_v24 = vadd.f32 %v3754_v9, %v502_v15  ;;  %v3772_v25 = vadd.f32 %v3754_v9, %v503_v16  ;;  %v3775_v26 = vadd.f32 %v3754_v9, %v504_v17 }
  0x15   : > { %v3778_v27 = vadd.f32 %v3754_v9, %v505_v18  ;;  %v3781_v28 = vadd.f32 %v3754_v9, %v506_v19  ;;  %v3784_v29 = vadd.f32 %v3754_v9, %v507_v20  ;;  %v3787_v30 = vadd.f32 %v3754_v9, %v508_v21 }
  0x16   : > { %v2425_v33 = vmul.f32 -1.442695, %v3766_v23  ;;  %v2426_v34 = vmul.f32 -1.442695, %v3769_v24  ;;  %v2427_v35 = vmul.f32 -1.442695, %v3772_v25  ;;  %v2829_v36 = vunpack.c.l.bf16 %v3070_v22 }
  0x17   : > { %v2428_v37 = vmul.f32 -1.442695, %v3775_v26  ;;  %v2429_v38 = vmul.f32 -1.442695, %v3778_v27  ;;  %v2430_v39 = vmul.f32 -1.442695, %v3781_v28  ;;  %v2830_v40 = vunpack.c.h.bf16 %v3070_v22 }
  0x18   : > { %3154 = vpow2.f32 %v2425_v33  ;;  %v2431_v41 = vmul.f32 -1.442695, %v3784_v29  ;;  %v2432_v42 = vmul.f32 -1.442695, %v3787_v30  ;;  %v509_v43 = vmul.f32 %v2829_v36, %v3745_v0 }
  0x19   : > { %3156 = vpow2.f32 %v2426_v34  ;;  %v510_v44 = vmul.f32 %v2830_v40, %v3745_v0  ;;  %v2833_v45 = vunpack.c.l.bf16 %v3071_v31  ;;  %v2834_v46 = vunpack.c.h.bf16 %v3071_v31 }
  0x1a   : > { %3158 = vpow2.f32 %v2427_v35  ;;  %v3802_v47 = vadd.f32 %v3754_v9, %v509_v43  ;;  %v2837_v48 = vunpack.c.l.bf16 %v3072_v32  ;;  %v2838_v49 = vunpack.c.h.bf16 %v3072_v32 }
  0x1b   : > { %3160 = vpow2.f32 %v2428_v37  ;;  %v3805_v50 = vadd.f32 %v3754_v9, %v510_v44  ;;  %v511_v51 = vmul.f32 %v2833_v45, %v3745_v0  ;;  %v512_v52 = vmul.f32 %v2834_v46, %v3745_v0  ;;  %v3076_v37 = vld [vmem:[%s3740_s20 + $0x50] sm:$0xff]  }
  0x1c   : > { %3162 = vpow2.f32 %v2429_v38  ;;  %v2433_v54 = vmul.f32 -1.442695, %v3802_v47  ;;  %v513_v55 = vmul.f32 %v2837_v48, %v3745_v0  ;;  %v514_v56 = vmul.f32 %v2838_v49, %v3745_v0 }
  0x1d   : > { %3164 = vpow2.f32 %v2430_v39  ;;  %v2434_v57 = vmul.f32 -1.442695, %v3805_v50  ;;  %v3815_v58 = vadd.f32 %v3754_v9, %v511_v51  ;;  %v3818_v59 = vadd.f32 %v3754_v9, %v512_v52 }
  0x1e   : > { %3166 = vpow2.f32 %v2431_v41  ;;  %v3821_v60 = vadd.f32 %v3754_v9, %v513_v55  ;;  %v3824_v61 = vadd.f32 %v3754_v9, %v514_v56  ;;  %v2841_v62 = vunpack.c.l.bf16 %v3073_v53 }
  0x1f   : > { %3168 = vpow2.f32 %v2432_v42  ;;  %v2435_v1 = vmul.f32 -1.442695, %v3815_v58  ;;  %v2436_v2 = vmul.f32 -1.442695, %v3818_v59  ;;  %v2842_v3 = vunpack.c.h.bf16 %v3073_v53  ;;  %v3077_v42 = vld [vmem:[%s3740_s20 + $0x58] sm:$0xff]  }
  0x20   : > { %3170 = vpow2.f32 %v2433_v54  ;;  %v2437_v5 = vmul.f32 -1.442695, %v3821_v60  ;;  %v2438_v6 = vmul.f32 -1.442695, %v3824_v61  ;;  %v515_v7 = vmul.f32 %v2841_v62, %v3745_v0 }
  0x21   : > { %3172 = vpow2.f32 %v2434_v57  ;;  %v516_v8 = vmul.f32 %v2842_v3, %v3745_v0  ;;  %v2845_v10 = vunpack.c.l.bf16 %v3074_v63  ;;  %v2846_v11 = vunpack.c.h.bf16 %v3074_v63 }
  0x22   : > { %3174 = vpow2.f32 %v2435_v1  ;;  %v3835_v12 = vadd.f32 %v3754_v9, %v515_v7  ;;  %v2849_v13 = vunpack.c.l.bf16 %v3075_v4  ;;  %v2850_v14 = vunpack.c.h.bf16 %v3075_v4 }
  0x23   : > { %3176 = vpow2.f32 %v2436_v2  ;;  %v3838_v15 = vadd.f32 %v3754_v9, %v516_v8  ;;  %v517_v16 = vmul.f32 %v2845_v10, %v3745_v0  ;;  %v518_v17 = vmul.f32 %v2846_v11, %v3745_v0 }
  0x24   : > { %3178 = vpow2.f32 %v2437_v5  ;;  %v2439_v18 = vmul.f32 -1.442695, %v3835_v12  ;;  %v519_v19 = vmul.f32 %v2849_v13, %v3745_v0  ;;  %v520_v20 = vmul.f32 %v2850_v14, %v3745_v0 }
  0x25   : > { %v3155_v21 = vpop.eup %3154  ;;  %3180 = vpow2.f32 %v2438_v6  ;;  %v2440_v22 = vmul.f32 -1.442695, %v3838_v15  ;;  %v3847_v31 = vadd.f32 %v3754_v9, %v517_v16  ;;  %v3850_v32 = vadd.f32 %v3754_v9, %v518_v17  ;;  %v3078_v17 = vld [vmem:[%s3740_s20 + $0x60] sm:$0xff]  }
  0x26   : > { %v3157_v33 = vpop.eup %3156  ;;  %v1148_v34 = vadd.f32 1.0, %v3155_v21  ;;  %3182 = vpow2.f32 %v2439_v18  ;;  %v3853_v35 = vadd.f32 %v3754_v9, %v519_v19  ;;  %v3856_v36 = vadd.f32 %v3754_v9, %v520_v20 }
  0x27   : > { %v3159_v38 = vpop.eup %3158  ;;  %v1149_v39 = vadd.f32 1.0, %v3157_v33  ;;  %3184 = vpow2.f32 %v2440_v22  ;;  %v3860_v40 = vmul.f32 -1.442695, %v3847_v31  ;;  %v3863_v41 = vmul.f32 -1.442695, %v3850_v32  ;;  %v3079_v22 = vld [vmem:[%s3740_s20 + $0x68] sm:$0xff]  }
  0x28   : > { %v3161_v43 = vpop.eup %3160  ;;  %3186 = vrcp.f32 %v1148_v34  ;;  %v1150_v44 = vadd.f32 1.0, %v3159_v38  ;;  %v3867_v45 = vmul.f32 -1.442695, %v3853_v35  ;;  %v3870_v46 = vmul.f32 -1.442695, %v3856_v36 }
  0x29   : > { %v3163_v48 = vpop.eup %3162  ;;  %3188 = vrcp.f32 %v1149_v39  ;;  %v1151_v49 = vadd.f32 1.0, %v3161_v43  ;;  %v2853_v51 = vunpack.c.l.bf16 %v3076_v37  ;;  %v2854_v52 = vunpack.c.h.bf16 %v3076_v37 }
  0x2a   : > { %v3165_v53 = vpop.eup %3164  ;;  %3190 = vrcp.f32 %v1150_v44  ;;  %v1152_v54 = vadd.f32 1.0, %v3163_v48  ;;  %v2857_v55 = vunpack.c.l.bf16 %v3077_v42  ;;  %v2858_v56 = vunpack.c.h.bf16 %v3077_v42 }
  0x2b   : > { %v3167_v57 = vpop.eup %3166  ;;  %3192 = vrcp.f32 %v1151_v49  ;;  %v1153_v62 = vadd.f32 1.0, %v3165_v53  ;;  %v521_v63 = vmul.f32 %v2853_v51, %v3745_v0  ;;  %v522_v1 = vmul.f32 %v2854_v52, %v3745_v0 }
  0x2c   : > { %v3169_v2 = vpop.eup %3168  ;;  %3194 = vrcp.f32 %v1152_v54  ;;  %v1154_v3 = vadd.f32 1.0, %v3167_v57  ;;  %v523_v4 = vmul.f32 %v2857_v55, %v3745_v0  ;;  %v524_v5 = vmul.f32 %v2858_v56, %v3745_v0 }
  0x2d   : > { %v3171_v6 = vpop.eup %3170  ;;  %3196 = vrcp.f32 %v1153_v62  ;;  %v1155_v7 = vadd.f32 1.0, %v3169_v2  ;;  %v3877_v8 = vadd.f32 %v3754_v9, %v521_v63  ;;  %v3880_v10 = vadd.f32 %v3754_v9, %v522_v1 }
  0x2e   : > { %v3173_v11 = vpop.eup %3172  ;;  %3198 = vrcp.f32 %v1154_v3  ;;  %v1156_v13 = vadd.f32 1.0, %v3171_v6  ;;  %v3883_v14 = vadd.f32 %v3754_v9, %v523_v4  ;;  %v3886_v16 = vadd.f32 %v3754_v9, %v524_v5 }
  0x2f   : > { %v3175_v18 = vpop.eup %3174  ;;  %3200 = vrcp.f32 %v1155_v7  ;;  %v1157_v19 = vadd.f32 1.0, %v3173_v11  ;;  %v3890_v20 = vmul.f32 -1.442695, %v3877_v8  ;;  %v3893_v21 = vmul.f32 -1.442695, %v3880_v10 }
  0x30   : > { %v3177_v33 = vpop.eup %3176  ;;  %3202 = vrcp.f32 %v1156_v13  ;;  %v1158_v34 = vadd.f32 1.0, %v3175_v18  ;;  %v3897_v37 = vmul.f32 -1.442695, %v3883_v14  ;;  %v3900_v38 = vmul.f32 -1.442695, %v3886_v16 }
  0x31   : > { %v3179_v39 = vpop.eup %3178  ;;  %3204 = vrcp.f32 %v1157_v19  ;;  %v1159_v42 = vadd.f32 1.0, %v3177_v33  ;;  %v2861_v43 = vunpack.c.l.bf16 %v3078_v17  ;;  %v2862_v44 = vunpack.c.h.bf16 %v3078_v17 }
  0x32   : > { %v3181_v48 = vpop.eup %3180  ;;  %3206 = vrcp.f32 %v1158_v34  ;;  %v1160_v49 = vadd.f32 1.0, %v3179_v39  ;;  %v2865_v51 = vunpack.c.l.bf16 %v3079_v22  ;;  %v2866_v52 = vunpack.c.h.bf16 %v3079_v22  ;;  %v3080_v22 = vld [vmem:[%s3740_s20 + $0x70] sm:$0xff]  }
  0x33   : > { %v3183_v53 = vpop.eup %3182  ;;  %3208 = vrcp.f32 %v1159_v42  ;;  %v1161_v54 = vadd.f32 1.0, %v3181_v48  ;;  %v525_v55 = vmul.f32 %v2861_v43, %v3745_v0  ;;  %v526_v56 = vmul.f32 %v2862_v44, %v3745_v0 }
  0x34   : > { %v3185_v57 = vpop.eup %3184  ;;  %3210 = vrcp.f32 %v1160_v49  ;;  %v1162_v62 = vadd.f32 1.0, %v3183_v53  ;;  %v527_v63 = vmul.f32 %v2865_v51, %v3745_v0  ;;  %v528_v1 = vmul.f32 %v2866_v52, %v3745_v0 }
  0x35   : > { %v3187_v2 = vpop.eup %3186  ;;  %3212 = vrcp.f32 %v1161_v54  ;;  %v1163_v3 = vadd.f32 1.0, %v3185_v57  ;;  %v3907_v4 = vadd.f32 %v3754_v9, %v525_v55  ;;  %v3910_v5 = vadd.f32 %v3754_v9, %v526_v56 }
  0x36   : > { %v3189_v6 = vpop.eup %3188  ;;  %v1532_v7 = vmul.f32 %v3187_v2, %v3766_v23  ;;  %3214 = vrcp.f32 %v1162_v62  ;;  %v3914_v11 = vadd.f32 %v3754_v9, %v527_v63  ;;  %v3917_v13 = vadd.f32 %v3754_v9, %v528_v1 }
  0x37   : > { %v3191_v17 = vpop.eup %3190  ;;  %v1533_v18 = vmul.f32 %v3189_v6, %v3769_v24  ;;  %3216 = vrcp.f32 %v1163_v3  ;;  %v2449_v23 = vmul.f32 -1.442695, %v3907_v4  ;;  %v2450_v19 = vmul.f32 -1.442695, %v3910_v5  ;;  %v3081_v3 = vld [vmem:[%s3740_s20 + $0x78] sm:$0xff]  }
  0x38   : > { %v3193_v33 = vpop.eup %3192  ;;  %v2683_v34 = vpack.c.bf16 %v1532_v7, %v1532_v7  ;;  %v1534_v39 = vmul.f32 %v3191_v17, %v3772_v25  ;;  %3218 = vpow2.f32 %v3860_v40  ;;  %v2451_v42 = vmul.f32 -1.442695, %v3914_v11 }
  0x39   : > { %v3195_v43 = vpop.eup %3194  ;;  %v2684_v44 = vpack.c.bf16 %v1533_v18, %v1533_v18  ;;  %v1535_v24 = vmul.f32 %v3193_v33, %v3775_v26  ;;  %3220 = vpow2.f32 %v3863_v41  ;;  %v2452_v48 = vmul.f32 -1.442695, %v3917_v13 }
  0x3a   : > { %v3197_v49 = vpop.eup %3196  ;;  %2173 = vst.msk [vmem:[%s3924_s27] sm:$0xf] %vm2172_vm0, %v2683_v34  ;;  %v2685_v51 = vpack.c.bf16 %v1534_v39, %v1534_v39  ;;  %v1536_v52 = vmul.f32 %v3195_v43, %v3778_v27  ;;  %3222 = vpow2.f32 %v3867_v45  ;;  %v2869_v25 = vunpack.c.l.bf16 %v3080_v22 }
  0x3b   : > { %v3199_v40 = vpop.eup %3198  ;;  %2174 = vst.msk [vmem:[%s3924_s27 + $0x4] sm:$0xf] %vm2172_vm0, %v2684_v44  ;;  %v2686_v53 = vpack.c.bf16 %v1535_v24, %v1535_v24  ;;  %v1537_v26 = vmul.f32 %v3197_v49, %v3781_v28  ;;  %3224 = vpow2.f32 %v3870_v46  ;;  %v2870_v41 = vunpack.c.h.bf16 %v3080_v22 }
  0x3c   : > { %v3201_v54 = vpop.eup %3200  ;;  %2175 = vst.msk [vmem:[%s3924_s27 + $0x8] sm:$0xf] %vm2172_vm0, %v2685_v51  ;;  %v2687_v55 = vpack.c.bf16 %v1536_v52, %v1536_v52  ;;  %v1538_v27 = vmul.f32 %v3199_v40, %v3784_v29  ;;  %3226 = vpow2.f32 %v3890_v20  ;;  %v529_v45 = vmul.f32 %v2869_v25, %v3745_v0 }
  0x3d   : > { %v3203_v56 = vpop.eup %3202  ;;  %2176 = vst.msk [vmem:[%s3924_s27 + $0xc] sm:$0xf] %vm2172_vm0, %v2686_v53  ;;  %v2688_v57 = vpack.c.bf16 %v1537_v26, %v1537_v26  ;;  %v1539_v28 = vmul.f32 %v3201_v54, %v3787_v30  ;;  %3228 = vpow2.f32 %v3893_v21  ;;  %v530_v46 = vmul.f32 %v2870_v41, %v3745_v0 }
  0x3e   : > { %v3205_v62 = vpop.eup %3204  ;;  %2177 = vst.msk [vmem:[%s3924_s27 + $0x10] sm:$0xf] %vm2172_vm0, %v2687_v55  ;;  %v2689_v29 = vpack.c.bf16 %v1538_v27, %v1538_v27  ;;  %v1540_v20 = vmul.f32 %v3203_v56, %v3802_v47  ;;  %3230 = vpow2.f32 %v3897_v37  ;;  %v3959_v63 = vadd.f32 %v3754_v9, %v529_v45  ;;  %v3083_v27 = vld [vmem:[%s3740_s20 + $0x88] sm:$0xff]  }
  0x3f   : > { %v3207_v1 = vpop.eup %3206  ;;  %2178 = vst.msk [vmem:[%s3924_s27 + $0x14] sm:$0xf] %vm2172_vm0, %v2688_v57  ;;  %v2690_v30 = vpack.c.bf16 %v1539_v28, %v1539_v28  ;;  %v1541_v21 = vmul.f32 %v3205_v62, %v3805_v50  ;;  %3232 = vpow2.f32 %v3900_v38  ;;  %v3966_v2 = vadd.f32 %v3754_v9, %v530_v46 }
  0x40   : > { %v3209_v47 = vpop.eup %3208  ;;  %2179 = vst.msk [vmem:[%s3924_s27 + $0x18] sm:$0xf] %vm2172_vm0, %v2689_v29  ;;  %v2691_v37 = vpack.c.bf16 %v1540_v20, %v1540_v20  ;;  %v1542_v6 = vmul.f32 %v3207_v1, %v3815_v58  ;;  %3234 = vpow2.f32 %v2449_v23  ;;  %v2453_v7 = vmul.f32 -1.442695, %v3959_v63 }
  0x41   : > { %v3211_v17 = vpop.eup %3210  ;;  %2180 = vst.msk [vmem:[%s3924_s27 + $0x1c] sm:$0xf] %vm2172_vm0, %v2690_v30  ;;  %v2692_v50 = vpack.c.bf16 %v1541_v21, %v1541_v21  ;;  %v1543_v38 = vmul.f32 %v3209_v47, %v3818_v59  ;;  %3236 = vpow2.f32 %v2450_v19  ;;  %v2454_v18 = vmul.f32 -1.442695, %v3966_v2  ;;  %v3082_v19 = vld [vmem:[%s3740_s20 + $0x80] sm:$0xff]  }
  0x42   : > { %v3213_v22 = vpop.eup %3212  ;;  %2181 = vst.msk [vmem:[%s3924_s27 + $0x20] sm:$0xf] %vm2172_vm0, %v2691_v37  ;;  %v2693_v33 = vpack.c.bf16 %v1542_v6, %v1542_v6  ;;  %v1544_v58 = vmul.f32 %v3211_v17, %v3821_v60  ;;  %3238 = vpow2.f32 %v2451_v42  ;;  %v2873_v23 = vunpack.c.l.bf16 %v3081_v3  ;;  %v3084_v17 = vld [vmem:[%s3740_s20 + $0x90] sm:$0xff]  }
  0x43   : > { %v3215_v34 = vpop.eup %3214  ;;  %2182 = vst.msk [vmem:[%s3924_s27 + $0x24] sm:$0xf] %vm2172_vm0, %v2692_v50  ;;  %v2694_v39 = vpack.c.bf16 %v1543_v38, %v1543_v38  ;;  %v1545_v43 = vmul.f32 %v3213_v22, %v3824_v61  ;;  %3240 = vpow2.f32 %v2452_v48  ;;  %v2874_v59 = vunpack.c.h.bf16 %v3081_v3 }
  0x44   : > { %v3217_v44 = vpop.eup %3216  ;;  %2183 = vst.msk [vmem:[%s3924_s27 + $0x28] sm:$0xf] %vm2172_vm0, %v2693_v33  ;;  %v2695_v24 = vpack.c.bf16 %v1544_v58, %v1544_v58  ;;  %v1546_v49 = vmul.f32 %v3215_v34, %v3835_v12  ;;  %3242 = vpow2.f32 %v2453_v7  ;;  %v531_v60 = vmul.f32 %v2873_v23, %v3745_v0 }
  0x45   : > { %v3219_v42 = vpop.eup %3218  ;;  %2184 = vst.msk [vmem:[%s3924_s27 + $0x2c] sm:$0xf] %vm2172_vm0, %v2694_v39  ;;  %v2696_v51 = vpack.c.bf16 %v1545_v43, %v1545_v43  ;;  %v1547_v61 = vmul.f32 %v3217_v44, %v3838_v15  ;;  %3244 = vpow2.f32 %v2454_v18  ;;  %v532_v48 = vmul.f32 %v2874_v59, %v3745_v0 }
  0x46   : > { %v3221_v52 = vpop.eup %3220  ;;  %2185 = vst.msk [vmem:[%s3924_s27 + $0x30] sm:$0xf] %vm2172_vm0, %v2695_v24  ;;  %v2697_v25 = vpack.c.bf16 %v1546_v49, %v1546_v49  ;;  %v1164_v12 = vadd.f32 1.0, %v3219_v42  ;;  %v3995_v40 = vadd.f32 %v3754_v9, %v531_v60  ;;  %v2877_v53 = vunpack.c.l.bf16 %v3082_v19  ;;  %v3085_v42 = vld [vmem:[%s3740_s20 + $0x98] sm:$0xff]  }
  0x47   : > { %v3223_v26 = vpop.eup %3222  ;;  %2186 = vst.msk [vmem:[%s3924_s27 + $0x34] sm:$0xf] %vm2172_vm0, %v2696_v51  ;;  %v2698_v41 = vpack.c.bf16 %v1547_v61, %v1547_v61  ;;  %v1165_v54 = vadd.f32 1.0, %v3221_v52  ;;  %v4000_v15 = vadd.f32 %v3754_v9, %v532_v48  ;;  %v2878_v55 = vunpack.c.h.bf16 %v3082_v19 }
  0x48   : > { %v3225_v45 = vpop.eup %3224  ;;  %2187 = vst.msk [vmem:[%s3924_s27 + $0x38] sm:$0xf] %vm2172_vm0, %v2697_v25  ;;  %3246 = vrcp.f32 %v1164_v12  ;;  %v1166_v56 = vadd.f32 1.0, %v3223_v26  ;;  %v4006_v57 = vmul.f32 -1.442695, %v3995_v40  ;;  %v533_v28 = vmul.f32 %v2877_v53, %v3745_v0 }
  0x49   : > { %v3227_v46 = vpop.eup %3226  ;;  %2188 = vst.msk [vmem:[%s3924_s27 + $0x3c] sm:$0xf] %vm2172_vm0, %v2698_v41  ;;  %3248 = vrcp.f32 %v1165_v54  ;;  %v1167_v62 = vadd.f32 1.0, %v3225_v45  ;;  %v4012_v29 = vmul.f32 -1.442695, %v4000_v15  ;;  %v534_v20 = vmul.f32 %v2878_v55, %v3745_v0  ;;  %v3086_v41 = vld [vmem:[%s3740_s20 + $0xa0] sm:$0xff]  }
  0x4a   : > { %v3229_v1 = vpop.eup %3228  ;;  %3250 = vrcp.f32 %v1166_v56  ;;  %v1168_v30 = vadd.f32 1.0, %v3227_v46  ;;  %v4016_v21 = vadd.f32 %v3754_v9, %v533_v28  ;;  %v2881_v3 = vunpack.c.l.bf16 %v3083_v27 }
  0x4b   : > { %v3231_v47 = vpop.eup %3230  ;;  %3252 = vrcp.f32 %v1167_v62  ;;  %v1169_v37 = vadd.f32 1.0, %v3229_v1  ;;  %v4019_v6 = vadd.f32 %v3754_v9, %v534_v20  ;;  %v2882_v7 = vunpack.c.h.bf16 %v3083_v27 }
  0x4c   : > { %v3233_v50 = vpop.eup %3232  ;;  %3254 = vrcp.f32 %v1168_v30  ;;  %v1170_v38 = vadd.f32 1.0, %v3231_v47  ;;  %v2457_v18 = vmul.f32 -1.442695, %v4016_v21  ;;  %v535_v22 = vmul.f32 %v2881_v3, %v3745_v0 }
  0x4d   : > { %v3235_v33 = vpop.eup %3234  ;;  %3256 = vrcp.f32 %v1169_v37  ;;  %v1171_v58 = vadd.f32 1.0, %v3233_v50  ;;  %v2458_v23 = vmul.f32 -1.442695, %v4019_v6  ;;  %v536_v34 = vmul.f32 %v2882_v7, %v3745_v0 }
  0x4e   : > { %v3237_v39 = vpop.eup %3236  ;;  %3258 = vrcp.f32 %v1170_v38  ;;  %v1172_v43 = vadd.f32 1.0, %v3235_v33  ;;  %v4027_v59 = vadd.f32 %v3754_v9, %v535_v22  ;;  %v2885_v19 = vunpack.c.l.bf16 %v3084_v17 }
  0x4f   : > { %v3239_v44 = vpop.eup %3238  ;;  %3260 = vrcp.f32 %v1171_v58  ;;  %v1173_v24 = vadd.f32 1.0, %v3237_v39  ;;  %v4030_v49 = vadd.f32 %v3754_v9, %v536_v34  ;;  %v2886_v60 = vunpack.c.h.bf16 %v3084_v17 }
  0x50   : > { %v3241_v51 = vpop.eup %3240  ;;  %3262 = vrcp.f32 %v1172_v43  ;;  %v1174_v61 = vadd.f32 1.0, %v3239_v44  ;;  %v2459_v48 = vmul.f32 -1.442695, %v4027_v59  ;;  %v537_v52 = vmul.f32 %v2885_v19, %v3745_v0 }
  0x51   : > { %v3243_v25 = vpop.eup %3242  ;;  %3264 = vrcp.f32 %v1173_v24  ;;  %v1175_v12 = vadd.f32 1.0, %v3241_v51  ;;  %v2460_v53 = vmul.f32 -1.442695, %v4030_v49  ;;  %v538_v26 = vmul.f32 %v2886_v60, %v3745_v0 }
  0x52   : > { %v3245_v54 = vpop.eup %3244  ;;  %3266 = vrcp.f32 %v1174_v61  ;;  %v1176_v55 = vadd.f32 1.0, %v3243_v25  ;;  %v4039_v27 = vadd.f32 %v3754_v9, %v537_v52  ;;  %v2889_v45 = vunpack.c.l.bf16 %v3085_v42  ;;  %v3087_v61 = vld [vmem:[%s3740_s20 + $0xa8] sm:$0xff]  }
  0x53   : > { %3268 = vrcp.f32 %v1175_v12  ;;  %v1177_v56 = vadd.f32 1.0, %v3245_v54  ;;  %v4042_v28 = vadd.f32 %v3754_v9, %v538_v26  ;;  %v2890_v46 = vunpack.c.h.bf16 %v3085_v42 }
  0x54   : > { %3270 = vrcp.f32 %v1176_v55  ;;  %v2461_v62 = vmul.f32 -1.442695, %v4039_v27  ;;  %v539_v20 = vmul.f32 %v2889_v45, %v3745_v0  ;;  %v2893_v1 = vunpack.c.l.bf16 %v3086_v41 }
  0x55   : > { %v3247_v30 = vpop.eup %3246  ;;  %3272 = vrcp.f32 %v1177_v56  ;;  %v2462_v3 = vmul.f32 -1.442695, %v4042_v28  ;;  %v540_v47 = vmul.f32 %v2890_v46, %v3745_v0  ;;  %v2894_v37 = vunpack.c.h.bf16 %v3086_v41 }
  0x56   : > { %v3249_v7 = vpop.eup %3248  ;;  %v1548_v17 = vmul.f32 %v3247_v30, %v3847_v31  ;;  %3274 = vpow2.f32 %v4006_v57  ;;  %v4051_v50 = vadd.f32 %v3754_v9, %v539_v20  ;;  %v541_v38 = vmul.f32 %v2893_v1, %v3745_v0 }
  0x57   : > { %v3251_v22 = vpop.eup %3250  ;;  %v1549_v33 = vmul.f32 %v3249_v7, %v3850_v32  ;;  %3276 = vpow2.f32 %v4012_v29  ;;  %v4057_v58 = vadd.f32 %v3754_v9, %v540_v47  ;;  %v542_v34 = vmul.f32 %v2894_v37, %v3745_v0 }
  0x58   : > { %v3253_v39 = vpop.eup %3252  ;;  %v2699_v31 = vpack.c.bf16 %v1548_v17, %v1548_v17  ;;  %v1550_v57 = vmul.f32 %v3251_v22, %v3853_v35  ;;  %3278 = vpow2.f32 %v2457_v18  ;;  %v2463_v43 = vmul.f32 -1.442695, %v4051_v50 }
  0x59   : > { %v3255_v19 = vpop.eup %3254  ;;  %v2700_v44 = vpack.c.bf16 %v1549_v33, %v1549_v33  ;;  %v1551_v32 = vmul.f32 %v3253_v39, %v3856_v36  ;;  %3280 = vpow2.f32 %v2458_v23  ;;  %v2464_v29 = vmul.f32 -1.442695, %v4057_v58 }
  0x5a   : > { %v3257_v24 = vpop.eup %3256  ;;  %2189 = vst.msk [vmem:[%s3924_s27 + $0x40] sm:$0xf] %vm2172_vm0, %v2699_v31  ;;  %v2701_v60 = vpack.c.bf16 %v1550_v57, %v1550_v57  ;;  %v1552_v42 = vmul.f32 %v3255_v19, %v3877_v8  ;;  %3282 = vpow2.f32 %v2459_v48  ;;  %v4068_v35 = vadd.f32 %v3754_v9, %v541_v38  ;;  %v3089_v57 = vld [vmem:[%s3740_s20 + $0xb8] sm:$0xff]  }
  0x5b   : > { %v3259_v18 = vpop.eup %3258  ;;  %2190 = vst.msk [vmem:[%s3924_s27 + $0x44] sm:$0xf] %vm2172_vm0, %v2700_v44  ;;  %v2702_v51 = vpack.c.bf16 %v1551_v32, %v1551_v32  ;;  %v1553_v36 = vmul.f32 %v3257_v24, %v3880_v10  ;;  %3284 = vpow2.f32 %v2460_v53  ;;  %v4074_v23 = vadd.f32 %v3754_v9, %v542_v34 }
  0x5c   : > { %v3261_v52 = vpop.eup %3260  ;;  %2191 = vst.msk [vmem:[%s3924_s27 + $0x48] sm:$0xf] %vm2172_vm0, %v2701_v60  ;;  %v2703_v8 = vpack.c.bf16 %v1552_v42, %v1552_v42  ;;  %v1554_v48 = vmul.f32 %v3259_v18, %v3883_v14  ;;  %3286 = vpow2.f32 %v2461_v62  ;;  %v2465_v25 = vmul.f32 -1.442695, %v4068_v35  ;;  %v3088_v62 = vld [vmem:[%s3740_s20 + $0xb0] sm:$0xff]  }
  0x5d   : > { %v3263_v12 = vpop.eup %3262  ;;  %2192 = vst.msk [vmem:[%s3924_s27 + $0x4c] sm:$0xf] %vm2172_vm0, %v2702_v51  ;;  %v2704_v10 = vpack.c.bf16 %v1553_v36, %v1553_v36  ;;  %v1555_v53 = vmul.f32 %v3261_v52, %v3886_v16  ;;  %3288 = vpow2.f32 %v2462_v3  ;;  %v2466_v26 = vmul.f32 -1.442695, %v4074_v23 }
  0x5e   : > { %v3265_v41 = vpop.eup %3264  ;;  %2193 = vst.msk [vmem:[%s3924_s27 + $0x50] sm:$0xf] %vm2172_vm0, %v2703_v8  ;;  %v2705_v54 = vpack.c.bf16 %v1554_v48, %v1554_v48  ;;  %v1556_v14 = vmul.f32 %v3263_v12, %v3907_v4  ;;  %3290 = vpow2.f32 %v2463_v43  ;;  %v2897_v55 = vunpack.c.l.bf16 %v3087_v61  ;;  %v3090_v12 = vld [vmem:[%s3740_s20 + $0xc0] sm:$0xff]  }
  0x5f   : > { %v3267_v45 = vpop.eup %3266  ;;  %2194 = vst.msk [vmem:[%s3924_s27 + $0x54] sm:$0xf] %vm2172_vm0, %v2704_v10  ;;  %v2706_v56 = vpack.c.bf16 %v1555_v53, %v1555_v53  ;;  %v1557_v46 = vmul.f32 %v3265_v41, %v3910_v5  ;;  %3292 = vpow2.f32 %v2464_v29  ;;  %v2898_v16 = vunpack.c.h.bf16 %v3087_v61 }
  0x60   : > { %v3269_v20 = vpop.eup %3268  ;;  %2195 = vst.msk [vmem:[%s3924_s27 + $0x58] sm:$0xf] %vm2172_vm0, %v2705_v54  ;;  %v2707_v1 = vpack.c.bf16 %v1556_v14, %v1556_v14  ;;  %v1558_v30 = vmul.f32 %v3267_v45, %v3914_v11  ;;  %3294 = vpow2.f32 %v2465_v25  ;;  %v543_v4 = vmul.f32 %v2897_v55, %v3745_v0 }
  0x61   : > { %v3271_v3 = vpop.eup %3270  ;;  %2196 = vst.msk [vmem:[%s3924_s27 + $0x5c] sm:$0xf] %vm2172_vm0, %v2706_v56  ;;  %v2708_v47 = vpack.c.bf16 %v1557_v46, %v1557_v46  ;;  %v1559_v5 = vmul.f32 %v3269_v20, %v3917_v13  ;;  %3296 = vpow2.f32 %v2466_v26  ;;  %v544_v37 = vmul.f32 %v2898_v16, %v3745_v0 }
  0x62   : > { %v3273_v7 = vpop.eup %3272  ;;  %2197 = vst.msk [vmem:[%s3924_s27 + $0x60] sm:$0xf] %vm2172_vm0, %v2707_v1  ;;  %v2709_v17 = vpack.c.bf16 %v1558_v30, %v1558_v30  ;;  %v1560_v11 = vmul.f32 %v3271_v3, %v3959_v63  ;;  %v4104_v38 = vadd.f32 %v3754_v9, %v543_v4  ;;  %v2901_v22 = vunpack.c.l.bf16 %v3088_v62  ;;  %v3091_v3 = vld [vmem:[%s3740_s20 + $0xc8] sm:$0xff]  }
  0x63   : > { %v3275_v33 = vpop.eup %3274  ;;  %2198 = vst.msk [vmem:[%s3924_s27 + $0x64] sm:$0xf] %vm2172_vm0, %v2708_v47  ;;  %v2710_v34 = vpack.c.bf16 %v1559_v5, %v1559_v5  ;;  %v1561_v13 = vmul.f32 %v3273_v7, %v3966_v2  ;;  %v4110_v39 = vadd.f32 %v3754_v9, %v544_v37  ;;  %v2902_v31 = vunpack.c.h.bf16 %v3088_v62 }
  0x64   : > { %v3277_v43 = vpop.eup %3276  ;;  %2199 = vst.msk [vmem:[%s3924_s27 + $0x68] sm:$0xf] %vm2172_vm0, %v2709_v17  ;;  %v2711_v63 = vpack.c.bf16 %v1560_v11, %v1560_v11  ;;  %v1178_v19 = vadd.f32 1.0, %v3275_v33  ;;  %v4116_v44 = vmul.f32 -1.442695, %v4104_v38  ;;  %v545_v32 = vmul.f32 %v2901_v22, %v3745_v0 }
  0x65   : > { %v3279_v29 = vpop.eup %3278  ;;  %2200 = vst.msk [vmem:[%s3924_s27 + $0x6c] sm:$0xf] %vm2172_vm0, %v2710_v34  ;;  %v2712_v2 = vpack.c.bf16 %v1561_v13, %v1561_v13  ;;  %v1179_v24 = vadd.f32 1.0, %v3277_v43  ;;  %v4122_v60 = vmul.f32 -1.442695, %v4110_v39  ;;  %v546_v42 = vmul.f32 %v2902_v31, %v3745_v0  ;;  %v3092_v34 = vld [vmem:[%s3740_s20 + $0xd0] sm:$0xff]  }
  0x66   : > { %v3281_v18 = vpop.eup %3280  ;;  %2201 = vst.msk [vmem:[%s3924_s27 + $0x70] sm:$0xf] %vm2172_vm0, %v2711_v63  ;;  %3298 = vrcp.f32 %v1178_v19  ;;  %v1180_v51 = vadd.f32 1.0, %v3279_v29  ;;  %v4128_v36 = vadd.f32 %v3754_v9, %v545_v32  ;;  %v2905_v61 = vunpack.c.l.bf16 %v3089_v57  ;;  %v3093_v29 = vld [vmem:[%s3740_s20 + $0xd8] sm:$0xff]  }
  0x67   : > { %v3283_v52 = vpop.eup %3282  ;;  %2202 = vst.msk [vmem:[%s3924_s27 + $0x74] sm:$0xf] %vm2172_vm0, %v2712_v2  ;;  %3300 = vrcp.f32 %v1179_v24  ;;  %v1181_v8 = vadd.f32 1.0, %v3281_v18  ;;  %v4133_v48 = vadd.f32 %v3754_v9, %v546_v42  ;;  %v2906_v25 = vunpack.c.h.bf16 %v3089_v57 }
  0x68   : > { %v3285_v10 = vpop.eup %3284  ;;  %3302 = vrcp.f32 %v1180_v51  ;;  %v1182_v53 = vadd.f32 1.0, %v3283_v52  ;;  %v2469_v26 = vmul.f32 -1.442695, %v4128_v36  ;;  %v547_v41 = vmul.f32 %v2905_v61, %v3745_v0  ;;  %v4172_v61 = vld [vmem:[%s4914_s2] ss:$0 sm:$0xff] }
  0x69   : > { %v3287_v54 = vpop.eup %3286  ;;  %3304 = vrcp.f32 %v1181_v8  ;;  %v1183_v14 = vadd.f32 1.0, %v3285_v10  ;;  %v2470_v55 = vmul.f32 -1.442695, %v4133_v48  ;;  %v548_v45 = vmul.f32 %v2906_v25, %v3745_v0 }
  0x6a   : > { %v3289_v56 = vpop.eup %3288  ;;  %3306 = vrcp.f32 %v1182_v53  ;;  %v1184_v46 = vadd.f32 1.0, %v3287_v54  ;;  %v4141_v16 = vadd.f32 %v3754_v9, %v547_v41  ;;  %v2909_v62 = vunpack.c.l.bf16 %v3090_v12 }
  0x6b   : > { %v3291_v20 = vpop.eup %3290  ;;  %3308 = vrcp.f32 %v1183_v14  ;;  %v1185_v1 = vadd.f32 1.0, %v3289_v56  ;;  %v4144_v30 = vadd.f32 %v3754_v9, %v548_v45  ;;  %v2910_v4 = vunpack.c.h.bf16 %v3090_v12 }
  0x6c   : > { %v3293_v47 = vpop.eup %3292  ;;  %3310 = vrcp.f32 %v1184_v46  ;;  %v1186_v5 = vadd.f32 1.0, %v3291_v20  ;;  %v2471_v37 = vmul.f32 -1.442695, %v4141_v16  ;;  %v549_v7 = vmul.f32 %v2909_v62, %v3745_v0 }
  0x6d   : > { %v3295_v17 = vpop.eup %3294  ;;  %3312 = vrcp.f32 %v1185_v1  ;;  %v1187_v11 = vadd.f32 1.0, %v3293_v47  ;;  %v2472_v22 = vmul.f32 -1.442695, %v4144_v30  ;;  %v550_v33 = vmul.f32 %v2910_v4, %v3745_v0  ;;  %v4163_v0 = vld [vmem:[%s4913_s1] ss:$0 sm:$0xff] }
  0x6e   : > { %v3297_v13 = vpop.eup %3296  ;;  %3314 = vrcp.f32 %v1186_v5  ;;  %v1188_v31 = vadd.f32 1.0, %v3295_v17  ;;  %v4153_v57 = vadd.f32 %v3754_v9, %v549_v7  ;;  %v2913_v43 = vunpack.c.l.bf16 %v3091_v3 }
  0x6f   : > { %3316 = vrcp.f32 %v1187_v11  ;;  %v1189_v63 = vadd.f32 1.0, %v3297_v13  ;;  %v4156_v19 = vadd.f32 %v3754_v9, %v550_v33  ;;  %v2914_v32 = vunpack.c.h.bf16 %v3091_v3 }
  0x70   : > { %3318 = vrcp.f32 %v1188_v31  ;;  %v2473_v2 = vmul.f32 -1.442695, %v4153_v57  ;;  %v551_v24 = vmul.f32 %v4163_v0, %v2913_v43  ;;  %v2917_v42 = vunpack.c.l.bf16 %v3092_v34 }
  0x71   : > { %3320 = vrcp.f32 %v1189_v63  ;;  %v2474_v18 = vmul.f32 -1.442695, %v4156_v19  ;;  %v552_v51 = vmul.f32 %v4163_v0, %v2914_v32  ;;  %v2918_v9 = vunpack.c.h.bf16 %v3092_v34  ;;  %v3094_v63 = vld [vmem:[%s3740_s20 + $0xe0] sm:$0xff]  }
  0x72   : > { %3322 = vpow2.f32 %v4116_v44  ;;  %v4175_v52 = vadd.f32 %v4172_v61, %v551_v24  ;;  %v553_v8 = vmul.f32 %v4163_v0, %v2917_v42  ;;  %v2921_v25 = vunpack.c.l.bf16 %v3093_v29 }
  0x73   : > { %v3299_v12 = vpop.eup %3298  ;;  %3324 = vpow2.f32 %v4122_v60  ;;  %v4180_v10 = vadd.f32 %v4172_v61, %v552_v51  ;;  %v554_v53 = vmul.f32 %v4163_v0, %v2918_v9  ;;  %v2922_v44 = vunpack.c.h.bf16 %v3093_v29  ;;  %v3095_v51 = vld [vmem:[%s3740_s20 + $0xe8] sm:$0xff]  }
  0x74   : > { %v3301_v41 = vpop.eup %3300  ;;  %v1562_v54 = vmul.f32 %v3299_v12, %v3995_v40  ;;  %3326 = vpow2.f32 %v2469_v26  ;;  %v2475_v14 = vmul.f32 -1.442695, %v4175_v52  ;;  %v4186_v45 = vadd.f32 %v4172_v61, %v553_v8 }
  0x75   : > { %v3303_v56 = vpop.eup %3302  ;;  %v1563_v46 = vmul.f32 %v3301_v41, %v4000_v15  ;;  %3328 = vpow2.f32 %v2470_v55  ;;  %v2476_v60 = vmul.f32 -1.442695, %v4180_v10  ;;  %v4191_v62 = vadd.f32 %v4172_v61, %v554_v53 }
  0x76   : > { %v3305_v20 = vpop.eup %3304  ;;  %v2713_v1 = vpack.c.bf16 %v1562_v54, %v1562_v54  ;;  %v1564_v40 = vmul.f32 %v3303_v56, %v4016_v21  ;;  %3330 = vpow2.f32 %v2471_v37  ;;  %v2477_v26 = vmul.f32 -1.442695, %v4186_v45 }
  0x77   : > { %v3307_v4 = vpop.eup %3306  ;;  %v2714_v3 = vpack.c.bf16 %v1563_v46, %v1563_v46  ;;  %v1565_v47 = vmul.f32 %v3305_v20, %v4019_v6  ;;  %3332 = vpow2.f32 %v2472_v22  ;;  %v2478_v15 = vmul.f32 -1.442695, %v4191_v62 }
  0x78   : > { %v3309_v55 = vpop.eup %3308  ;;  %2203 = vst.msk [vmem:[%s3924_s27 + $0x78] sm:$0xf] %vm2172_vm0, %v2713_v1  ;;  %v2715_v5 = vpack.c.bf16 %v1564_v40, %v1564_v40  ;;  %v1566_v7 = vmul.f32 %v3307_v4, %v4027_v59  ;;  %3334 = vpow2.f32 %v2473_v2  ;;  %v555_v21 = vmul.f32 %v4163_v0, %v2921_v25 }
  0x79   : > { %v3311_v37 = vpop.eup %3310  ;;  %2204 = vst.msk [vmem:[%s3924_s27 + $0x7c] sm:$0xf] %vm2172_vm0, %v2714_v3  ;;  %v2716_v17 = vpack.c.bf16 %v1565_v47, %v1565_v47  ;;  %v1567_v6 = vmul.f32 %v3309_v55, %v4030_v49  ;;  %3336 = vpow2.f32 %v2474_v18  ;;  %v556_v11 = vmul.f32 %v4163_v0, %v2922_v44 }
  0x7a   : > { %v3313_v22 = vpop.eup %3312  ;;  %2205 = vst.msk [vmem:[%s3924_s27 + $0x80] sm:$0xf] %vm2172_vm0, %v2715_v5  ;;  %v2717_v33 = vpack.c.bf16 %v1566_v7, %v1566_v7  ;;  %v1568_v59 = vmul.f32 %v3311_v37, %v4039_v27  ;;  %3338 = vpow2.f32 %v2475_v14  ;;  %v4209_v34 = vadd.f32 %v4172_v61, %v555_v21  ;;  %v3096_v7 = vld [vmem:[%s3740_s20 + $0xf0] sm:$0xff]  }
  0x7b   : > { %v3315_v13 = vpop.eup %3314  ;;  %2206 = vst.msk [vmem:[%s3924_s27 + $0x84] sm:$0xf] %vm2172_vm0, %v2716_v17  ;;  %v2718_v31 = vpack.c.bf16 %v1567_v6, %v1567_v6  ;;  %v1569_v49 = vmul.f32 %v3313_v22, %v4042_v28  ;;  %3340 = vpow2.f32 %v2476_v60  ;;  %v4215_v43 = vadd.f32 %v4172_v61, %v556_v11 }
  0x7c   : > { %v3317_v32 = vpop.eup %3316  ;;  %2207 = vst.msk [vmem:[%s3924_s27 + $0x88] sm:$0xf] %vm2172_vm0, %v2717_v33  ;;  %v2719_v27 = vpack.c.bf16 %v1568_v59, %v1568_v59  ;;  %v1570_v29 = vmul.f32 %v3315_v13, %v4051_v50  ;;  %3342 = vpow2.f32 %v2477_v26  ;;  %v2479_v2 = vmul.f32 -1.442695, %v4209_v34  ;;  %v3097_v13 = vld [vmem:[%s3740_s20 + $0xf8] sm:$0xff]  }
  0x7d   : > { %v3319_v24 = vpop.eup %3318  ;;  %2208 = vst.msk [vmem:[%s3924_s27 + $0x8c] sm:$0xf] %vm2172_vm0, %v2718_v31  ;;  %v2720_v28 = vpack.c.bf16 %v1569_v49, %v1569_v49  ;;  %v1571_v42 = vmul.f32 %v3317_v32, %v4057_v58  ;;  %3344 = vpow2.f32 %v2478_v15  ;;  %v2480_v18 = vmul.f32 -1.442695, %v4215_v43 }
  0x7e   : > { %v3321_v9 = vpop.eup %3320  ;;  %2209 = vst.msk [vmem:[%s3924_s27 + $0x90] sm:$0xf] %vm2172_vm0, %v2719_v27  ;;  %v2721_v8 = vpack.c.bf16 %v1570_v29, %v1570_v29  ;;  %v1572_v50 = vmul.f32 %v3319_v24, %v4068_v35  ;;  %3346 = vpow2.f32 %v2479_v2  ;;  %v2925_v25 = vunpack.c.l.bf16 %v3094_v63 }
  0x7f   : > { %v3323_v12 = vpop.eup %3322  ;;  %2210 = vst.msk [vmem:[%s3924_s27 + $0x94] sm:$0xf] %vm2172_vm0, %v2720_v28  ;;  %v2722_v53 = vpack.c.bf16 %v1571_v42, %v1571_v42  ;;  %v1573_v58 = vmul.f32 %v3321_v9, %v4074_v23  ;;  %3348 = vpow2.f32 %v2480_v18  ;;  %v2926_v44 = vunpack.c.h.bf16 %v3094_v63 }
  0x80   : > { %v3325_v41 = vpop.eup %3324  ;;  %2211 = vst.msk [vmem:[%s3924_s27 + $0x98] sm:$0xf] %vm2172_vm0, %v2721_v8  ;;  %v2723_v54 = vpack.c.bf16 %v1572_v50, %v1572_v50  ;;  %v1190_v14 = vadd.f32 1.0, %v3323_v12  ;;  %v557_v35 = vmul.f32 %v4163_v0, %v2925_v25  ;;  %v2929_v56 = vunpack.c.l.bf16 %v3095_v51 }
  0x81   : > { %v3327_v46 = vpop.eup %3326  ;;  %2212 = vst.msk [vmem:[%s3924_s27 + $0x9c] sm:$0xf] %vm2172_vm0, %v2722_v53  ;;  %v2724_v60 = vpack.c.bf16 %v1573_v58, %v1573_v58  ;;  %v1191_v20 = vadd.f32 1.0, %v3325_v41  ;;  %v558_v23 = vmul.f32 %v4163_v0, %v2926_v44  ;;  %v2930_v1 = vunpack.c.h.bf16 %v3095_v51 }
  0x82   : > { %v3329_v40 = vpop.eup %3328  ;;  %2213 = vst.msk [vmem:[%s3924_s27 + $0xa0] sm:$0xf] %vm2172_vm0, %v2723_v54  ;;  %3350 = vrcp.f32 %v1190_v14  ;;  %v1192_v26 = vadd.f32 1.0, %v3327_v46  ;;  %v4242_v4 = vadd.f32 %v4172_v61, %v557_v35  ;;  %v559_v3 = vmul.f32 %v4163_v0, %v2929_v56  ;;  %v3098_v56 = vld [vmem:[%s3740_s20 + $0x100] sm:$0xff]  }
  0x83   : > { %v3331_v47 = vpop.eup %3330  ;;  %2214 = vst.msk [vmem:[%s3924_s27 + $0xa4] sm:$0xf] %vm2172_vm0, %v2724_v60  ;;  %3352 = vrcp.f32 %v1191_v20  ;;  %v1193_v15 = vadd.f32 1.0, %v3329_v40  ;;  %v4248_v55 = vadd.f32 %v4172_v61, %v558_v23  ;;  %v560_v5 = vmul.f32 %v4163_v0, %v2930_v1  ;;  %v3099_v1 = vld [vmem:[%s3740_s20 + $0x108] sm:$0xff]  }
  0x84   : > { %v3333_v21 = vpop.eup %3332  ;;  %3354 = vrcp.f32 %v1192_v26  ;;  %v1194_v37 = vadd.f32 1.0, %v3331_v47  ;;  %v2481_v17 = vmul.f32 -1.442695, %v4242_v4  ;;  %v4254_v6 = vadd.f32 %v4172_v61, %v559_v3 }
  0x85   : > { %v3335_v11 = vpop.eup %3334  ;;  %3356 = vrcp.f32 %v1193_v15  ;;  %v1195_v22 = vadd.f32 1.0, %v3333_v21  ;;  %v2482_v33 = vmul.f32 -1.442695, %v4248_v55  ;;  %v4258_v59 = vadd.f32 %v4172_v61, %v560_v5 }
  0x86   : > { %v3337_v31 = vpop.eup %3336  ;;  %3358 = vrcp.f32 %v1194_v37  ;;  %v1196_v49 = vadd.f32 1.0, %v3335_v11  ;;  %v2483_v63 = vmul.f32 -1.442695, %v4254_v6  ;;  %v2933_v32 = vunpack.c.l.bf16 %v3096_v7 }
  0x87   : > { %v3339_v27 = vpop.eup %3338  ;;  %3360 = vrcp.f32 %v1195_v22  ;;  %v1197_v29 = vadd.f32 1.0, %v3337_v31  ;;  %v2484_v2 = vmul.f32 -1.442695, %v4258_v59  ;;  %v2934_v24 = vunpack.c.h.bf16 %v3096_v7 }
  0x88   : > { %v3341_v28 = vpop.eup %3340  ;;  %3362 = vrcp.f32 %v1196_v49  ;;  %v1198_v42 = vadd.f32 1.0, %v3339_v27  ;;  %v561_v18 = vmul.f32 %v4163_v0, %v2933_v32  ;;  %v2937_v51 = vunpack.c.l.bf16 %v3097_v13 }
  0x89   : > { %v3343_v9 = vpop.eup %3342  ;;  %3364 = vrcp.f32 %v1197_v29  ;;  %v1199_v8 = vadd.f32 1.0, %v3341_v28  ;;  %v562_v50 = vmul.f32 %v4163_v0, %v2934_v24  ;;  %v2938_v25 = vunpack.c.h.bf16 %v3097_v13 }
  0x8a   : > { %v3345_v12 = vpop.eup %3344  ;;  %3366 = vrcp.f32 %v1198_v42  ;;  %v1200_v53 = vadd.f32 1.0, %v3343_v9  ;;  %v4266_v58 = vadd.f32 %v4172_v61, %v561_v18  ;;  %v563_v44 = vmul.f32 %v4163_v0, %v2937_v51 }
  0x8b   : > { %v3347_v41 = vpop.eup %3346  ;;  %3368 = vrcp.f32 %v1199_v8  ;;  %v1201_v54 = vadd.f32 1.0, %v3345_v12  ;;  %v4270_v14 = vadd.f32 %v4172_v61, %v562_v50  ;;  %v564_v35 = vmul.f32 %v4163_v0, %v2938_v25 }
  0x8c   : > { %v3349_v46 = vpop.eup %3348  ;;  %3370 = vrcp.f32 %v1200_v53  ;;  %v1202_v60 = vadd.f32 1.0, %v3347_v41  ;;  %v2485_v20 = vmul.f32 -1.442695, %v4266_v58  ;;  %v4276_v23 = vadd.f32 %v4172_v61, %v563_v44 }
  0x8d   : > { %3372 = vrcp.f32 %v1201_v54  ;;  %v1203_v40 = vadd.f32 1.0, %v3349_v46  ;;  %v2486_v26 = vmul.f32 -1.442695, %v4270_v14  ;;  %v4281_v3 = vadd.f32 %v4172_v61, %v564_v35 }
  0x8e   : > { %3374 = vrcp.f32 %v1202_v60  ;;  %v2487_v47 = vmul.f32 -1.442695, %v4276_v23  ;;  %v2941_v15 = vunpack.c.l.bf16 %v3098_v56  ;;  %v2942_v5 = vunpack.c.h.bf16 %v3098_v56  ;;  %v3100_v56 = vld [vmem:[%s3740_s20 + $0x110] sm:$0xff]  }
  0x8f   : > { %v3351_v7 = vpop.eup %3350  ;;  %3376 = vrcp.f32 %v1203_v40  ;;  %v2488_v21 = vmul.f32 -1.442695, %v4281_v3  ;;  %v2945_v37 = vunpack.c.l.bf16 %v3099_v1  ;;  %v2946_v11 = vunpack.c.h.bf16 %v3099_v1 }
  0x90   : > { %v3353_v22 = vpop.eup %3352  ;;  %v1574_v13 = vmul.f32 %v3351_v7, %v4104_v38  ;;  %3378 = vpow2.f32 %v2481_v17  ;;  %v565_v31 = vmul.f32 %v4163_v0, %v2941_v15  ;;  %v566_v49 = vmul.f32 %v4163_v0, %v2942_v5 }
  0x91   : > { %v3355_v32 = vpop.eup %3354  ;;  %v1575_v27 = vmul.f32 %v3353_v22, %v4110_v39  ;;  %3380 = vpow2.f32 %v2482_v33  ;;  %v567_v29 = vmul.f32 %v4163_v0, %v2945_v37  ;;  %v568_v24 = vmul.f32 %v4163_v0, %v2946_v11 }
  0x92   : > { %v3357_v28 = vpop.eup %3356  ;;  %v2725_v42 = vpack.c.bf16 %v1574_v13, %v1574_v13  ;;  %v1576_v18 = vmul.f32 %v3355_v32, %v4128_v36  ;;  %3382 = vpow2.f32 %v2483_v63  ;;  %v4293_v38 = vadd.f32 %v4172_v61, %v565_v31 }
  0x93   : > { %v3359_v17 = vpop.eup %3358  ;;  %v2726_v51 = vpack.c.bf16 %v1575_v27, %v1575_v27  ;;  %v1577_v9 = vmul.f32 %v3357_v28, %v4133_v48  ;;  %3384 = vpow2.f32 %v2484_v2  ;;  %v4297_v39 = vadd.f32 %v4172_v61, %v566_v49 }
  0x94   : > { %v3361_v33 = vpop.eup %3360  ;;  %2215 = vst.msk [vmem:[%s3924_s27 + $0xa8] sm:$0xf] %vm2172_vm0, %v2725_v42  ;;  %v2727_v8 = vpack.c.bf16 %v1576_v18, %v1576_v18  ;;  %v1578_v50 = vmul.f32 %v3359_v17, %v4141_v16  ;;  %3386 = vpow2.f32 %v2485_v20  ;;  %v2489_v36 = vmul.f32 -1.442695, %v4293_v38 }
  0x95   : > { %v3363_v63 = vpop.eup %3362  ;;  %2216 = vst.msk [vmem:[%s3924_s27 + $0xac] sm:$0xf] %vm2172_vm0, %v2726_v51  ;;  %v2728_v25 = vpack.c.bf16 %v1577_v9, %v1577_v9  ;;  %v1579_v48 = vmul.f32 %v3361_v33, %v4144_v30  ;;  %3388 = vpow2.f32 %v2486_v26  ;;  %v2490_v2 = vmul.f32 -1.442695, %v4297_v39 }
  0x96   : > { %v3365_v12 = vpop.eup %3364  ;;  %2217 = vst.msk [vmem:[%s3924_s27 + $0xb0] sm:$0xf] %vm2172_vm0, %v2727_v8  ;;  %v2729_v53 = vpack.c.bf16 %v1578_v50, %v1578_v50  ;;  %v1580_v16 = vmul.f32 %v3363_v63, %v4153_v57  ;;  %3390 = vpow2.f32 %v2487_v47  ;;  %v4311_v44 = vadd.f32 %v4172_v61, %v567_v29  ;;  %v3101_v47 = vld [vmem:[%s3740_s20 + $0x118] sm:$0xff]   ;;  %v3102_v50 = vld [vmem:[%s3740_s20 + $0x120] sm:$0xff]  }
  0x97   : > { %v3367_v41 = vpop.eup %3366  ;;  %2218 = vst.msk [vmem:[%s3924_s27 + $0xb4] sm:$0xf] %vm2172_vm0, %v2728_v25  ;;  %v2730_v54 = vpack.c.bf16 %v1579_v48, %v1579_v48  ;;  %v1581_v30 = vmul.f32 %v3365_v12, %v4156_v19  ;;  %3392 = vpow2.f32 %v2488_v21  ;;  %v4317_v35 = vadd.f32 %v4172_v61, %v568_v24 }
  0x98   : > { %v3369_v46 = vpop.eup %3368  ;;  %2219 = vst.msk [vmem:[%s3924_s27 + $0xb8] sm:$0xf] %vm2172_vm0, %v2729_v53  ;;  %v2731_v57 = vpack.c.bf16 %v1580_v16, %v1580_v16  ;;  %v1582_v60 = vmul.f32 %v3367_v41, %v4175_v52  ;;  %3394 = vpow2.f32 %v2489_v36  ;;  %v2491_v20 = vmul.f32 -1.442695, %v4311_v44  ;;  %v3103_v41 = vld [vmem:[%s3740_s20 + $0x128] sm:$0xff]  }
  0x99   : > { %v3371_v1 = vpop.eup %3370  ;;  %2220 = vst.msk [vmem:[%s3924_s27 + $0xbc] sm:$0xf] %vm2172_vm0, %v2730_v54  ;;  %v2732_v19 = vpack.c.bf16 %v1581_v30, %v1581_v30  ;;  %v1583_v40 = vmul.f32 %v3369_v46, %v4180_v10  ;;  %3396 = vpow2.f32 %v2490_v2  ;;  %v2492_v26 = vmul.f32 -1.442695, %v4317_v35 }
  0x9a   : > { %v3373_v15 = vpop.eup %3372  ;;  %2221 = vst.msk [vmem:[%s3924_s27 + $0xc0] sm:$0xf] %vm2172_vm0, %v2731_v57  ;;  %v2733_v5 = vpack.c.bf16 %v1582_v60, %v1582_v60  ;;  %v1584_v52 = vmul.f32 %v3371_v1, %v4186_v45  ;;  %3398 = vpow2.f32 %v2491_v20  ;;  %v2949_v7 = vunpack.c.l.bf16 %v3100_v56 }
  0x9b   : > { %v3375_v21 = vpop.eup %3374  ;;  %2222 = vst.msk [vmem:[%s3924_s27 + $0xc4] sm:$0xf] %vm2172_vm0, %v2732_v19  ;;  %v2734_v37 = vpack.c.bf16 %v1583_v40, %v1583_v40  ;;  %v1585_v10 = vmul.f32 %v3373_v15, %v4191_v62  ;;  %3400 = vpow2.f32 %v2492_v26  ;;  %v2950_v11 = vunpack.c.h.bf16 %v3100_v56 }
  0x9c   : > { %v3377_v22 = vpop.eup %3376  ;;  %2223 = vst.msk [vmem:[%s3924_s27 + $0xc8] sm:$0xf] %vm2172_vm0, %v2733_v5  ;;  %v2735_v13 = vpack.c.bf16 %v1584_v52, %v1584_v52  ;;  %v1586_v31 = vmul.f32 %v3375_v21, %v4209_v34  ;;  %v569_v45 = vmul.f32 %v4163_v0, %v2949_v7  ;;  %v2953_v49 = vunpack.c.l.bf16 %v3101_v47 }
  0x9d   : > { %v3379_v32 = vpop.eup %3378  ;;  %2224 = vst.msk [vmem:[%s3924_s27 + $0xcc] sm:$0xf] %vm2172_vm0, %v2734_v37  ;;  %v2736_v27 = vpack.c.bf16 %v1585_v10, %v1585_v10  ;;  %v1587_v62 = vmul.f32 %v3377_v22, %v4215_v43  ;;  %v570_v29 = vmul.f32 %v4163_v0, %v2950_v11  ;;  %v2954_v24 = vunpack.c.h.bf16 %v3101_v47 }
  0x9e   : > { %v3381_v28 = vpop.eup %3380  ;;  %2225 = vst.msk [vmem:[%s3924_s27 + $0xd0] sm:$0xf] %vm2172_vm0, %v2735_v13  ;;  %v2737_v42 = vpack.c.bf16 %v1586_v31, %v1586_v31  ;;  %v1204_v34 = vadd.f32 1.0, %v3379_v32  ;;  %v4346_v18 = vadd.f32 %v4172_v61, %v569_v45  ;;  %v571_v17 = vmul.f32 %v4163_v0, %v2953_v49  ;;  %v3104_v49 = vld [vmem:[%s3740_s20 + $0x130] sm:$0xff]  }
  0x9f   : > { %v3383_v51 = vpop.eup %3382  ;;  %2226 = vst.msk [vmem:[%s3924_s27 + $0xd4] sm:$0xf] %vm2172_vm0, %v2736_v27  ;;  %v2738_v9 = vpack.c.bf16 %v1587_v62, %v1587_v62  ;;  %v1205_v43 = vadd.f32 1.0, %v3381_v28  ;;  %v4352_v33 = vadd.f32 %v4172_v61, %v570_v29  ;;  %v572_v8 = vmul.f32 %v4163_v0, %v2954_v24  ;;  %v3105_v24 = vld [vmem:[%s3740_s20 + $0x138] sm:$0xff]  }
  0xa0   : > { %v3385_v36 = vpop.eup %3384  ;;  %2227 = vst.msk [vmem:[%s3924_s27 + $0xd8] sm:$0xf] %vm2172_vm0, %v2737_v42  ;;  %3402 = vrcp.f32 %v1204_v34  ;;  %v1206_v63 = vadd.f32 1.0, %v3383_v51  ;;  %v2493_v25 = vmul.f32 -1.442695, %v4346_v18  ;;  %v4360_v48 = vadd.f32 %v4172_v61, %v571_v17  ;;  %v3106_v17 = vld [vmem:[%s3740_s20 + $0x140] sm:$0xff]  }
  0xa1   : > { %v3387_v2 = vpop.eup %3386  ;;  %2228 = vst.msk [vmem:[%s3924_s27 + $0xdc] sm:$0xf] %vm2172_vm0, %v2738_v9  ;;  %3404 = vrcp.f32 %v1205_v43  ;;  %v1207_v12 = vadd.f32 1.0, %v3385_v36  ;;  %v2494_v53 = vmul.f32 -1.442695, %v4352_v33  ;;  %v4366_v16 = vadd.f32 %v4172_v61, %v572_v8 }
  0xa2   : > { %v3389_v54 = vpop.eup %3388  ;;  %3406 = vrcp.f32 %v1206_v63  ;;  %v1208_v30 = vadd.f32 1.0, %v3387_v2  ;;  %v2495_v56 = vmul.f32 -1.442695, %v4360_v48  ;;  %v2957_v46 = vunpack.c.l.bf16 %v3102_v50 }
  0xa3   : > { %v3391_v57 = vpop.eup %3390  ;;  %3408 = vrcp.f32 %v1207_v12  ;;  %v1209_v60 = vadd.f32 1.0, %v3389_v54  ;;  %v2496_v20 = vmul.f32 -1.442695, %v4366_v16  ;;  %v2958_v1 = vunpack.c.h.bf16 %v3102_v50 }
  0xa4   : > { %v3393_v19 = vpop.eup %3392  ;;  %3410 = vrcp.f32 %v1208_v30  ;;  %v1210_v40 = vadd.f32 1.0, %v3391_v57  ;;  %v573_v26 = vmul.f32 %v4163_v0, %v2957_v46  ;;  %v2961_v47 = vunpack.c.l.bf16 %v3103_v41 }
  0xa5   : > { %v3395_v15 = vpop.eup %3394  ;;  %3412 = vrcp.f32 %v1209_v60  ;;  %v1211_v5 = vadd.f32 1.0, %v3393_v19  ;;  %v574_v52 = vmul.f32 %v4163_v0, %v2958_v1  ;;  %v2962_v7 = vunpack.c.h.bf16 %v3103_v41 }
  0xa6   : > { %v3397_v21 = vpop.eup %3396  ;;  %3414 = vrcp.f32 %v1210_v40  ;;  %v1212_v37 = vadd.f32 1.0, %v3395_v15  ;;  %v4374_v10 = vadd.f32 %v4172_v61, %v573_v26  ;;  %v575_v11 = vmul.f32 %v4163_v0, %v2961_v47 }
  0xa7   : > { %v3399_v22 = vpop.eup %3398  ;;  %3416 = vrcp.f32 %v1211_v5  ;;  %v1213_v13 = vadd.f32 1.0, %v3397_v21  ;;  %v4378_v31 = vadd.f32 %v4172_v61, %v574_v52  ;;  %v576_v45 = vmul.f32 %v4163_v0, %v2962_v7 }
  0xa8   : > { %v3401_v32 = vpop.eup %3400  ;;  %3418 = vrcp.f32 %v1212_v37  ;;  %v1214_v27 = vadd.f32 1.0, %v3399_v22  ;;  %v2497_v62 = vmul.f32 -1.442695, %v4374_v10  ;;  %v4384_v29 = vadd.f32 %v4172_v61, %v575_v11 }
  0xa9   : > { %3420 = vrcp.f32 %v1213_v13  ;;  %v1215_v28 = vadd.f32 1.0, %v3401_v32  ;;  %v2498_v42 = vmul.f32 -1.442695, %v4378_v31  ;;  %v4389_v34 = vadd.f32 %v4172_v61, %v576_v45 }
  0xaa   : > { %3422 = vrcp.f32 %v1214_v27  ;;  %v2499_v51 = vmul.f32 -1.442695, %v4384_v29  ;;  %v2965_v9 = vunpack.c.l.bf16 %v3104_v49  ;;  %v2966_v43 = vunpack.c.h.bf16 %v3104_v49 }
  0xab   : > { %3424 = vrcp.f32 %v1215_v28  ;;  %v2500_v8 = vmul.f32 -1.442695, %v4389_v34  ;;  %v2969_v50 = vunpack.c.l.bf16 %v3105_v24  ;;  %v2970_v36 = vunpack.c.h.bf16 %v3105_v24  ;;  %v3107_v28 = vld [vmem:[%s3740_s20 + $0x148] sm:$0xff]  }
  0xac   : > { %3426 = vpow2.f32 %v2493_v25  ;;  %v577_v63 = vmul.f32 %v4163_v0, %v2965_v9  ;;  %v578_v2 = vmul.f32 %v4163_v0, %v2966_v43  ;;  %v2973_v12 = vunpack.c.l.bf16 %v3106_v17 }
  0xad   : > { %v3403_v41 = vpop.eup %3402  ;;  %3428 = vpow2.f32 %v2494_v53  ;;  %v579_v54 = vmul.f32 %v4163_v0, %v2969_v50  ;;  %v580_v30 = vmul.f32 %v4163_v0, %v2970_v36  ;;  %v2974_v46 = vunpack.c.h.bf16 %v3106_v17 }
  0xae   : > { %v3405_v57 = vpop.eup %3404  ;;  %v1588_v60 = vmul.f32 %v3403_v41, %v4242_v4  ;;  %3430 = vpow2.f32 %v2495_v56  ;;  %v4400_v1 = vadd.f32 %v4172_v61, %v577_v63  ;;  %v4403_v25 = vadd.f32 %v4172_v61, %v578_v2 }
  0xaf   : > { %v3407_v19 = vpop.eup %3406  ;;  %v1589_v40 = vmul.f32 %v3405_v57, %v4248_v55  ;;  %3432 = vpow2.f32 %v2496_v20  ;;  %v4407_v53 = vadd.f32 %v4172_v61, %v579_v54  ;;  %v4410_v26 = vadd.f32 %v4172_v61, %v580_v30 }
  0xb0   : > { %v3409_v47 = vpop.eup %3408  ;;  %v2739_v4 = vpack.c.bf16 %v1588_v60, %v1588_v60  ;;  %v1590_v56 = vmul.f32 %v3407_v19, %v4254_v6  ;;  %3434 = vpow2.f32 %v2497_v62  ;;  %v2501_v15 = vmul.f32 -1.442695, %v4400_v1 }
  0xb1   : > { %v3411_v5 = vpop.eup %3410  ;;  %v2740_v52 = vpack.c.bf16 %v1589_v40, %v1589_v40  ;;  %v1591_v7 = vmul.f32 %v3409_v47, %v4258_v59  ;;  %3436 = vpow2.f32 %v2498_v42  ;;  %v2502_v55 = vmul.f32 -1.442695, %v4403_v25 }
  0xb2   : > { %v3413_v20 = vpop.eup %3412  ;;  %2229 = vst.msk [vmem:[%s3924_s27 + $0xe0] sm:$0xf] %vm2172_vm0, %v2739_v4  ;;  %v2741_v21 = vpack.c.bf16 %v1590_v56, %v1590_v56  ;;  %v1592_v37 = vmul.f32 %v3411_v5, %v4266_v58  ;;  %3438 = vpow2.f32 %v2499_v51  ;;  %v2503_v6 = vmul.f32 -1.442695, %v4407_v53 }
  0xb3   : > { %v3415_v11 = vpop.eup %3414  ;;  %2230 = vst.msk [vmem:[%s3924_s27 + $0xe4] sm:$0xf] %vm2172_vm0, %v2740_v52  ;;  %v2742_v22 = vpack.c.bf16 %v1591_v7, %v1591_v7  ;;  %v1593_v59 = vmul.f32 %v3413_v20, %v4270_v14  ;;  %3440 = vpow2.f32 %v2500_v8  ;;  %v2504_v13 = vmul.f32 -1.442695, %v4410_v26 }
  0xb4   : > { %v3417_v45 = vpop.eup %3416  ;;  %2231 = vst.msk [vmem:[%s3924_s27 + $0xe8] sm:$0xf] %vm2172_vm0, %v2741_v21  ;;  %v2743_v49 = vpack.c.bf16 %v1592_v37, %v1592_v37  ;;  %v1594_v58 = vmul.f32 %v3415_v11, %v4276_v23  ;;  %3442 = vpow2.f32 %v2501_v15  ;;  %v581_v32 = vmul.f32 %v4163_v0, %v2973_v12  ;;  %v3109_v37 = vld [vmem:[%s3740_s20 + $0x158] sm:$0xff]  }
  0xb5   : > { %v3419_v27 = vpop.eup %3418  ;;  %2232 = vst.msk [vmem:[%s3924_s27 + $0xec] sm:$0xf] %vm2172_vm0, %v2742_v22  ;;  %v2744_v62 = vpack.c.bf16 %v1593_v59, %v1593_v59  ;;  %v1595_v14 = vmul.f32 %v3417_v45, %v4281_v3  ;;  %3444 = vpow2.f32 %v2502_v55  ;;  %v582_v24 = vmul.f32 %v4163_v0, %v2974_v46  ;;  %v3108_v46 = vld [vmem:[%s3740_s20 + $0x150] sm:$0xff]  }
  0xb6   : > { %v3421_v42 = vpop.eup %3420  ;;  %2233 = vst.msk [vmem:[%s3924_s27 + $0xf0] sm:$0xf] %vm2172_vm0, %v2743_v49  ;;  %v2745_v17 = vpack.c.bf16 %v1594_v58, %v1594_v58  ;;  %v1596_v23 = vmul.f32 %v3419_v27, %v4293_v38  ;;  %3446 = vpow2.f32 %v2503_v6  ;;  %v4437_v51 = vadd.f32 %v4172_v61, %v581_v32 }
  0xb7   : > { %v3423_v9 = vpop.eup %3422  ;;  %2234 = vst.msk [vmem:[%s3924_s27 + $0xf4] sm:$0xf] %vm2172_vm0, %v2744_v62  ;;  %v2746_v3 = vpack.c.bf16 %v1595_v14, %v1595_v14  ;;  %v1597_v43 = vmul.f32 %v3421_v42, %v4297_v39  ;;  %3448 = vpow2.f32 %v2504_v13  ;;  %v4443_v8 = vadd.f32 %v4172_v61, %v582_v24 }
  0xb8   : > { %v3425_v50 = vpop.eup %3424  ;;  %2235 = vst.msk [vmem:[%s3924_s27 + $0xf8] sm:$0xf] %vm2172_vm0, %v2745_v17  ;;  %v2747_v38 = vpack.c.bf16 %v1596_v23, %v1596_v23  ;;  %v1598_v36 = vmul.f32 %v3423_v9, %v4311_v44  ;;  %v2505_v63 = vmul.f32 -1.442695, %v4437_v51  ;;  %v2977_v2 = vunpack.c.l.bf16 %v3107_v28  ;;  %v3110_v23 = vld [vmem:[%s3740_s20 + $0x160] sm:$0xff]  }
  0xb9   : > { %v3427_v12 = vpop.eup %3426  ;;  %2236 = vst.msk [vmem:[%s3924_s27 + $0xfc] sm:$0xf] %vm2172_vm0, %v2746_v3  ;;  %v2748_v41 = vpack.c.bf16 %v1597_v43, %v1597_v43  ;;  %v1599_v39 = vmul.f32 %v3425_v50, %v4317_v35  ;;  %v2506_v54 = vmul.f32 -1.442695, %v4443_v8  ;;  %v2978_v30 = vunpack.c.h.bf16 %v3107_v28 }
  0xba   : > { %v3429_v57 = vpop.eup %3428  ;;  %2237 = vst.msk [vmem:[%s3924_s27 + $0x100] sm:$0xf] %vm2172_vm0, %v2747_v38  ;;  %v2749_v60 = vpack.c.bf16 %v1598_v36, %v1598_v36  ;;  %v1216_v44 = vadd.f32 1.0, %v3427_v12  ;;  %3450 = vpow2.f32 %v2505_v63  ;;  %v583_v19 = vmul.f32 %v4163_v0, %v2977_v2  ;;  %v3111_v12 = vld [vmem:[%s3740_s20 + $0x168] sm:$0xff]  }
  0xbb   : > { %v3431_v40 = vpop.eup %3430  ;;  %2238 = vst.msk [vmem:[%s3924_s27 + $0x104] sm:$0xf] %vm2172_vm0, %v2748_v41  ;;  %v2750_v47 = vpack.c.bf16 %v1599_v39, %v1599_v39  ;;  %v1217_v35 = vadd.f32 1.0, %v3429_v57  ;;  %3452 = vpow2.f32 %v2506_v54  ;;  %v584_v4 = vmul.f32 %v4163_v0, %v2978_v30 }
  0xbc   : > { %v3433_v56 = vpop.eup %3432  ;;  %2239 = vst.msk [vmem:[%s3924_s27 + $0x108] sm:$0xf] %vm2172_vm0, %v2749_v60  ;;  %3454 = vrcp.f32 %v1216_v44  ;;  %v1218_v15 = vadd.f32 1.0, %v3431_v40  ;;  %v4463_v5 = vadd.f32 %v4172_v61, %v583_v19  ;;  %v2981_v52 = vunpack.c.l.bf16 %v3108_v46 }
  0xbd   : > { %v3435_v7 = vpop.eup %3434  ;;  %2240 = vst.msk [vmem:[%s3924_s27 + $0x10c] sm:$0xf] %vm2172_vm0, %v2750_v47  ;;  %3456 = vrcp.f32 %v1217_v35  ;;  %v1219_v55 = vadd.f32 1.0, %v3433_v56  ;;  %v4468_v20 = vadd.f32 %v4172_v61, %v584_v4  ;;  %v2982_v21 = vunpack.c.h.bf16 %v3108_v46 }
  0xbe   : > { %v3437_v6 = vpop.eup %3436  ;;  %3458 = vrcp.f32 %v1218_v15  ;;  %v1220_v11 = vadd.f32 1.0, %v3435_v7  ;;  %v2507_v22 = vmul.f32 -1.442695, %v4463_v5  ;;  %v585_v59 = vmul.f32 %v4163_v0, %v2981_v52 }
  0xbf   : > { %v3439_v13 = vpop.eup %3438  ;;  %3460 = vrcp.f32 %v1219_v55  ;;  %v1221_v45 = vadd.f32 1.0, %v3437_v6  ;;  %v2508_v49 = vmul.f32 -1.442695, %v4468_v20  ;;  %v586_v58 = vmul.f32 %v4163_v0, %v2982_v21 }
  0xc0   : > { %v3441_v32 = vpop.eup %3440  ;;  %3462 = vrcp.f32 %v1220_v11  ;;  %v1222_v27 = vadd.f32 1.0, %v3439_v13  ;;  %v4476_v62 = vadd.f32 %v4172_v61, %v585_v59  ;;  %v2985_v14 = vunpack.c.l.bf16 %v3109_v37 }
  0xc1   : > { %v3443_v24 = vpop.eup %3442  ;;  %3464 = vrcp.f32 %v1221_v45  ;;  %v1223_v28 = vadd.f32 1.0, %v3441_v32  ;;  %v4479_v42 = vadd.f32 %v4172_v61, %v586_v58  ;;  %v2986_v17 = vunpack.c.h.bf16 %v3109_v37 }
  0xc2   : > { %v3445_v9 = vpop.eup %3444  ;;  %3466 = vrcp.f32 %v1222_v27  ;;  %v1224_v3 = vadd.f32 1.0, %v3443_v24  ;;  %v2509_v43 = vmul.f32 -1.442695, %v4476_v62  ;;  %v587_v50 = vmul.f32 %v4163_v0, %v2985_v14 }
  0xc3   : > { %v3447_v38 = vpop.eup %3446  ;;  %3468 = vrcp.f32 %v1223_v28  ;;  %v1225_v36 = vadd.f32 1.0, %v3445_v9  ;;  %v2510_v63 = vmul.f32 -1.442695, %v4479_v42  ;;  %v588_v2 = vmul.f32 %v4163_v0, %v2986_v17 }
  0xc4   : > { %v3449_v41 = vpop.eup %3448  ;;  %3470 = vrcp.f32 %v1224_v3  ;;  %v1226_v39 = vadd.f32 1.0, %v3447_v38  ;;  %v4488_v54 = vadd.f32 %v4172_v61, %v587_v50  ;;  %v2989_v30 = vunpack.c.l.bf16 %v3110_v23 }
  0xc5   : > { %3472 = vrcp.f32 %v1225_v36  ;;  %v1227_v46 = vadd.f32 1.0, %v3449_v41  ;;  %v4491_v57 = vadd.f32 %v4172_v61, %v588_v2  ;;  %v2990_v60 = vunpack.c.h.bf16 %v3110_v23 }
  0xc6   : > { %3474 = vrcp.f32 %v1226_v39  ;;  %v2511_v44 = vmul.f32 -1.442695, %v4488_v54  ;;  %v589_v19 = vmul.f32 %v4163_v0, %v2989_v30  ;;  %v2993_v40 = vunpack.c.l.bf16 %v3111_v12 }
  0xc7   : > { %v3451_v47 = vpop.eup %3450  ;;  %3476 = vrcp.f32 %v1227_v46  ;;  %v2512_v35 = vmul.f32 -1.442695, %v4491_v57  ;;  %v590_v4 = vmul.f32 %v4163_v0, %v2990_v60  ;;  %v2994_v56 = vunpack.c.h.bf16 %v3111_v12 }
  0xc8   : > { %v3453_v15 = vpop.eup %3452  ;;  %v1228_v52 = vadd.f32 1.0, %v3451_v47  ;;  %3478 = vpow2.f32 %v2507_v22  ;;  %v4498_v7 = vadd.f32 %v4172_v61, %v589_v19  ;;  %v591_v55 = vmul.f32 %v4163_v0, %v2993_v40  ;;  %v4546_v40 = vld [vmem:[%s4914_s2] ss:$0 sm:$0xff] }
  0xc9   : > { %v3455_v21 = vpop.eup %3454  ;;  %v1229_v37 = vadd.f32 1.0, %v3453_v15  ;;  %3480 = vpow2.f32 %v2508_v49  ;;  %v4502_v6 = vadd.f32 %v4172_v61, %v590_v4  ;;  %v592_v11 = vmul.f32 %v4163_v0, %v2994_v56  ;;  %v3112_v0 = vld [vmem:[%s3740_s20 + $0x170] sm:$0xff]  }
  0xca   : > { %v3457_v59 = vpop.eup %3456  ;;  %v1600_v13 = vmul.f32 %v3455_v21, %v4346_v18  ;;  %3482 = vrcp.f32 %v1228_v52  ;;  %v2513_v22 = vmul.f32 -1.442695, %v4498_v7  ;;  %v4508_v45 = vadd.f32 %v4172_v61, %v591_v55 }
  0xcb   : > { %v3459_v58 = vpop.eup %3458  ;;  %v1601_v32 = vmul.f32 %v3457_v59, %v4352_v33  ;;  %3484 = vrcp.f32 %v1229_v37  ;;  %v2514_v49 = vmul.f32 -1.442695, %v4502_v6  ;;  %v4513_v27 = vadd.f32 %v4172_v61, %v592_v11 }
  0xcc   : > { %v3461_v14 = vpop.eup %3460  ;;  %v2751_v24 = vpack.c.bf16 %v1600_v13, %v1600_v13  ;;  %v1602_v18 = vmul.f32 %v3459_v58, %v4360_v48  ;;  %3486 = vpow2.f32 %v2509_v43  ;;  %v2515_v28 = vmul.f32 -1.442695, %v4508_v45 }
  0xcd   : > { %v3463_v17 = vpop.eup %3462  ;;  %v2752_v23 = vpack.c.bf16 %v1601_v32, %v1601_v32  ;;  %v1603_v33 = vmul.f32 %v3461_v14, %v4366_v16  ;;  %3488 = vpow2.f32 %v2510_v63  ;;  %v2516_v9 = vmul.f32 -1.442695, %v4513_v27 }
  0xce   : > { %v3465_v3 = vpop.eup %3464  ;;  %2241 = vst.msk [vmem:[%s3924_s27 + $0x110] sm:$0xf] %vm2172_vm0, %v2751_v24  ;;  %v2753_v61 = vpack.c.bf16 %v1602_v18, %v1602_v18  ;;  %v1604_v50 = vmul.f32 %v3463_v17, %v4374_v10  ;;  %3490 = vpow2.f32 %v2511_v44  ;;  %v2997_v48 = vunpack.c.l.bf16 %v3112_v0  ;;  %v4532_v10 = vld [vmem:[%s4913_s1] ss:$0 sm:$0xff] }
  0xcf   : > { %v3467_v43 = vpop.eup %3466  ;;  %2242 = vst.msk [vmem:[%s3924_s27 + $0x114] sm:$0xf] %vm2172_vm0, %v2752_v23  ;;  %v2754_v38 = vpack.c.bf16 %v1603_v33, %v1603_v33  ;;  %v1605_v36 = vmul.f32 %v3465_v3, %v4378_v31  ;;  %3492 = vpow2.f32 %v2512_v35  ;;  %v2998_v16 = vunpack.c.h.bf16 %v3112_v0 }
  0xd0   : > { %v3469_v63 = vpop.eup %3468  ;;  %2243 = vst.msk [vmem:[%s3924_s27 + $0x118] sm:$0xf] %vm2172_vm0, %v2753_v61  ;;  %v2755_v2 = vpack.c.bf16 %v1604_v50, %v1604_v50  ;;  %v1606_v12 = vmul.f32 %v3467_v43, %v4384_v29  ;;  %3494 = vpow2.f32 %v2513_v22  ;;  %v593_v41 = vmul.f32 %v4532_v10, %v2997_v48  ;;  %v3113_v29 = vld [vmem:[%s3740_s20 + $0x178] sm:$0xff]   ;;  %v3114_v22 = vld [vmem:[%s3740_s20 + $0x180] sm:$0xff]   ;;  %v3115_v50 = vld [vmem:[%s3740_s20 + $0x188] sm:$0xff]  }
  0xd1   : > { %v3471_v31 = vpop.eup %3470  ;;  %2244 = vst.msk [vmem:[%s3924_s27 + $0x11c] sm:$0xf] %vm2172_vm0, %v2754_v38  ;;  %v2756_v39 = vpack.c.bf16 %v1605_v36, %v1605_v36  ;;  %v1607_v30 = vmul.f32 %v3469_v63, %v4389_v34  ;;  %3496 = vpow2.f32 %v2514_v49  ;;  %v594_v46 = vmul.f32 %v4532_v10, %v2998_v16 }
  0xd2   : > { %v3473_v60 = vpop.eup %3472  ;;  %2245 = vst.msk [vmem:[%s3924_s27 + $0x120] sm:$0xf] %vm2172_vm0, %v2755_v2  ;;  %v2757_v44 = vpack.c.bf16 %v1606_v12, %v1606_v12  ;;  %v1608_v19 = vmul.f32 %v3471_v31, %v4400_v1  ;;  %3498 = vpow2.f32 %v2515_v28  ;;  %v4549_v34 = vadd.f32 %v4546_v40, %v593_v41 }
  0xd3   : > { %v3475_v47 = vpop.eup %3474  ;;  %2246 = vst.msk [vmem:[%s3924_s27 + $0x124] sm:$0xf] %vm2172_vm0, %v2756_v39  ;;  %v2758_v35 = vpack.c.bf16 %v1607_v30, %v1607_v30  ;;  %v1609_v4 = vmul.f32 %v3473_v60, %v4403_v25  ;;  %3500 = vpow2.f32 %v2516_v9  ;;  %v4555_v1 = vadd.f32 %v4546_v40, %v594_v46 }
  0xd4   : > { %v3477_v56 = vpop.eup %3476  ;;  %2247 = vst.msk [vmem:[%s3924_s27 + $0x128] sm:$0xf] %vm2172_vm0, %v2757_v44  ;;  %v2759_v15 = vpack.c.bf16 %v1608_v19, %v1608_v19  ;;  %v1610_v52 = vmul.f32 %v3475_v47, %v4407_v53  ;;  %v2517_v55 = vmul.f32 -1.442695, %v4549_v34  ;;  %v3001_v21 = vunpack.c.l.bf16 %v3113_v29  ;;  %v3116_v19 = vld [vmem:[%s3740_s20 + $0x190] sm:$0xff]  }
  0xd5   : > { %v3479_v37 = vpop.eup %3478  ;;  %2248 = vst.msk [vmem:[%s3924_s27 + $0x12c] sm:$0xf] %vm2172_vm0, %v2758_v35  ;;  %v2760_v11 = vpack.c.bf16 %v1609_v4, %v1609_v4  ;;  %v1611_v25 = vmul.f32 %v3477_v56, %v4410_v26  ;;  %v2518_v59 = vmul.f32 -1.442695, %v4555_v1  ;;  %v3002_v13 = vunpack.c.h.bf16 %v3113_v29 }
  0xd6   : > { %v3481_v58 = vpop.eup %3480  ;;  %2249 = vst.msk [vmem:[%s3924_s27 + $0x130] sm:$0xf] %vm2172_vm0, %v2759_v15  ;;  %v2761_v32 = vpack.c.bf16 %v1610_v52, %v1610_v52  ;;  %v1230_v53 = vadd.f32 1.0, %v3479_v37  ;;  %3502 = vpow2.f32 %v2517_v55  ;;  %v595_v49 = vmul.f32 %v4532_v10, %v3001_v21  ;;  %v3117_v37 = vld [vmem:[%s3740_s20 + $0x198] sm:$0xff]  }
  0xd7   : > { %v3483_v0 = vpop.eup %3482  ;;  %2250 = vst.msk [vmem:[%s3924_s27 + $0x134] sm:$0xf] %vm2172_vm0, %v2760_v11  ;;  %v2762_v14 = vpack.c.bf16 %v1611_v25, %v1611_v25  ;;  %v1231_v26 = vadd.f32 1.0, %v3481_v58  ;;  %3504 = vpow2.f32 %v2518_v59  ;;  %v596_v24 = vmul.f32 %v4532_v10, %v3002_v13 }
  0xd8   : > { %v3485_v18 = vpop.eup %3484  ;;  %2251 = vst.msk [vmem:[%s3924_s27 + $0x138] sm:$0xf] %vm2172_vm0, %v2761_v32  ;;  %v1612_v28 = vmul.f32 %v3483_v0, %v4437_v51  ;;  %3506 = vrcp.f32 %v1230_v53  ;;  %v4576_v17 = vadd.f32 %v4546_v40, %v595_v49  ;;  %v3005_v23 = vunpack.c.l.bf16 %v3114_v22 }
  0xd9   : > { %v3487_v33 = vpop.eup %3486  ;;  %2252 = vst.msk [vmem:[%s3924_s27 + $0x13c] sm:$0xf] %vm2172_vm0, %v2762_v14  ;;  %v1613_v9 = vmul.f32 %v3485_v18, %v4443_v8  ;;  %3508 = vrcp.f32 %v1231_v26  ;;  %v4582_v3 = vadd.f32 %v4546_v40, %v596_v24  ;;  %v3006_v61 = vunpack.c.h.bf16 %v3114_v22 }
  0xda   : > { %v3489_v48 = vpop.eup %3488  ;;  %v2763_v43 = vpack.c.bf16 %v1612_v28, %v1612_v28  ;;  %v1232_v51 = vadd.f32 1.0, %v3487_v33  ;;  %v2519_v38 = vmul.f32 -1.442695, %v4576_v17  ;;  %v597_v36 = vmul.f32 %v4532_v10, %v3005_v23 }
  0xdb   : > { %v3491_v16 = vpop.eup %3490  ;;  %v2764_v63 = vpack.c.bf16 %v1613_v9, %v1613_v9  ;;  %v1233_v2 = vadd.f32 1.0, %v3489_v48  ;;  %v2520_v8 = vmul.f32 -1.442695, %v4582_v3  ;;  %v598_v12 = vmul.f32 %v4532_v10, %v3006_v61 }
  0xdc   : > { %v3493_v41 = vpop.eup %3492  ;;  %2253 = vst.msk [vmem:[%s3924_s27 + $0x140] sm:$0xf] %vm2172_vm0, %v2763_v43  ;;  %3510 = vrcp.f32 %v1232_v51  ;;  %v1234_v31 = vadd.f32 1.0, %v3491_v16  ;;  %v4592_v39 = vadd.f32 %v4546_v40, %v597_v36  ;;  %v3009_v30 = vunpack.c.l.bf16 %v3115_v50  ;;  %v3118_v51 = vld [vmem:[%s3740_s20 + $0x1a0] sm:$0xff]  }
  0xdd   : > { %v3495_v46 = vpop.eup %3494  ;;  %2254 = vst.msk [vmem:[%s3924_s27 + $0x144] sm:$0xf] %vm2172_vm0, %v2764_v63  ;;  %3512 = vrcp.f32 %v1233_v2  ;;  %v1235_v29 = vadd.f32 1.0, %v3493_v41  ;;  %v4597_v60 = vadd.f32 %v4546_v40, %v598_v12  ;;  %v3010_v44 = vunpack.c.h.bf16 %v3115_v50  ;;  %v3119_v41 = vld [vmem:[%s3740_s20 + $0x1a8] sm:$0xff]  }
  0xde   : > { %v3497_v47 = vpop.eup %3496  ;;  %3514 = vrcp.f32 %v1234_v31  ;;  %v1236_v35 = vadd.f32 1.0, %v3495_v46  ;;  %v2521_v4 = vmul.f32 -1.442695, %v4592_v39  ;;  %v599_v56 = vmul.f32 %v4532_v10, %v3009_v30 }
  0xdf   : > { %v3499_v15 = vpop.eup %3498  ;;  %3516 = vrcp.f32 %v1235_v29  ;;  %v1237_v52 = vadd.f32 1.0, %v3497_v47  ;;  %v2522_v55 = vmul.f32 -1.442695, %v4597_v60  ;;  %v600_v21 = vmul.f32 %v4532_v10, %v3010_v44 }
  0xe0   : > { %v3501_v11 = vpop.eup %3500  ;;  %3518 = vrcp.f32 %v1236_v35  ;;  %v1238_v25 = vadd.f32 1.0, %v3499_v15  ;;  %v4606_v59 = vadd.f32 %v4546_v40, %v599_v56  ;;  %v3013_v13 = vunpack.c.l.bf16 %v3116_v19 }
  0xe1   : > { %3520 = vrcp.f32 %v1237_v52  ;;  %v1239_v22 = vadd.f32 1.0, %v3501_v11  ;;  %v4609_v58 = vadd.f32 %v4546_v40, %v600_v21  ;;  %v3014_v32 = vunpack.c.h.bf16 %v3116_v19 }
  0xe2   : > { %3522 = vrcp.f32 %v1238_v25  ;;  %v2523_v53 = vmul.f32 -1.442695, %v4606_v59  ;;  %v601_v49 = vmul.f32 %v4532_v10, %v3013_v13  ;;  %v3017_v0 = vunpack.c.l.bf16 %v3117_v37 }
  0xe3   : > { %v3503_v14 = vpop.eup %3502  ;;  %3524 = vrcp.f32 %v1239_v22  ;;  %v2524_v26 = vmul.f32 -1.442695, %v4609_v58  ;;  %v602_v24 = vmul.f32 %v4532_v10, %v3014_v32  ;;  %v3018_v18 = vunpack.c.h.bf16 %v3117_v37 }
  0xe4   : > { %v3505_v28 = vpop.eup %3504  ;;  %v1240_v23 = vadd.f32 1.0, %v3503_v14  ;;  %3526 = vpow2.f32 %v2519_v38  ;;  %v4616_v33 = vadd.f32 %v4546_v40, %v601_v49  ;;  %v603_v9 = vmul.f32 %v4532_v10, %v3017_v0 }
  0xe5   : > { %v3507_v61 = vpop.eup %3506  ;;  %v1241_v50 = vadd.f32 1.0, %v3505_v28  ;;  %3528 = vpow2.f32 %v2520_v8  ;;  %v4620_v48 = vadd.f32 %v4546_v40, %v602_v24  ;;  %v604_v43 = vmul.f32 %v4532_v10, %v3018_v18  ;;  %v3120_v24 = vld [vmem:[%s3740_s20 + $0x1b0] sm:$0xff]  }
  0xe6   : > { %v3509_v36 = vpop.eup %3508  ;;  %v1614_v16 = vmul.f32 %v3507_v61, %v4463_v5  ;;  %3530 = vrcp.f32 %v1240_v23  ;;  %v2525_v38 = vmul.f32 -1.442695, %v4616_v33  ;;  %v4627_v63 = vadd.f32 %v4546_v40, %v603_v9 }
  0xe7   : > { %v1615_v2 = vmul.f32 %v3509_v36, %v4468_v20  ;;  %3532 = vrcp.f32 %v1241_v50  ;;  %v2526_v8 = vmul.f32 -1.442695, %v4620_v48  ;;  %v4632_v12 = vadd.f32 %v4546_v40, %v604_v43 }
  0xe8   : > { %v2765_v31 = vpack.c.bf16 %v1614_v16, %v1614_v16  ;;  %3534 = vpow2.f32 %v2521_v4  ;;  %v2527_v5 = vmul.f32 -1.442695, %v4627_v63  ;;  %v3021_v30 = vunpack.c.l.bf16 %v3118_v51 }
  0xe9   : > { %v3511_v46 = vpop.eup %3510  ;;  %v2766_v29 = vpack.c.bf16 %v1615_v2, %v1615_v2  ;;  %3536 = vpow2.f32 %v2522_v55  ;;  %v2528_v44 = vmul.f32 -1.442695, %v4632_v12  ;;  %v3022_v19 = vunpack.c.h.bf16 %v3118_v51 }
  0xea   : > { %v3513_v20 = vpop.eup %3512  ;;  %2255 = vst.msk [vmem:[%s3924_s27 + $0x148] sm:$0xf] %vm2172_vm0, %v2765_v31  ;;  %v1616_v47 = vmul.f32 %v3511_v46, %v4476_v62  ;;  %3538 = vpow2.f32 %v2523_v53  ;;  %v605_v35 = vmul.f32 %v4532_v10, %v3021_v30  ;;  %v3025_v56 = vunpack.c.l.bf16 %v3119_v41 }
  0xeb   : > { %v3515_v15 = vpop.eup %3514  ;;  %2256 = vst.msk [vmem:[%s3924_s27 + $0x14c] sm:$0xf] %vm2172_vm0, %v2766_v29  ;;  %v1617_v4 = vmul.f32 %v3513_v20, %v4479_v42  ;;  %3540 = vpow2.f32 %v2524_v26  ;;  %v606_v52 = vmul.f32 %v4532_v10, %v3022_v19  ;;  %v3026_v55 = vunpack.c.h.bf16 %v3119_v41 }
  0xec   : > { %v3517_v21 = vpop.eup %3516  ;;  %v2767_v37 = vpack.c.bf16 %v1616_v47, %v1616_v47  ;;  %v1618_v11 = vmul.f32 %v3515_v15, %v4488_v54  ;;  %3542 = vpow2.f32 %v2525_v38  ;;  %v4647_v62 = vadd.f32 %v4546_v40, %v605_v35  ;;  %v3121_v47 = vld [vmem:[%s3740_s20 + $0x1b8] sm:$0xff]  }
  0xed   : > { %v3519_v25 = vpop.eup %3518  ;;  %v2768_v13 = vpack.c.bf16 %v1617_v4, %v1617_v4  ;;  %v1619_v22 = vmul.f32 %v3517_v21, %v4491_v57  ;;  %3544 = vpow2.f32 %v2526_v8  ;;  %v4651_v42 = vadd.f32 %v4546_v40, %v606_v52  ;;  %v3122_v21 = vld [vmem:[%s3740_s20 + $0x1c0] sm:$0xff]  }
  0xee   : > { %v3521_v32 = vpop.eup %3520  ;;  %2257 = vst.msk [vmem:[%s3924_s27 + $0x150] sm:$0xf] %vm2172_vm0, %v2767_v37  ;;  %v2769_v53 = vpack.c.bf16 %v1618_v11, %v1618_v11  ;;  %v1620_v54 = vmul.f32 %v3519_v25, %v4498_v7  ;;  %3546 = vpow2.f32 %v2527_v5  ;;  %v2529_v49 = vmul.f32 -1.442695, %v4647_v62 }
  0xef   : > { %v3523_v0 = vpop.eup %3522  ;;  %2258 = vst.msk [vmem:[%s3924_s27 + $0x154] sm:$0xf] %vm2172_vm0, %v2768_v13  ;;  %v2770_v14 = vpack.c.bf16 %v1619_v22, %v1619_v22  ;;  %v1621_v57 = vmul.f32 %v3521_v32, %v4502_v6  ;;  %3548 = vpow2.f32 %v2528_v44  ;;  %v2530_v26 = vmul.f32 -1.442695, %v4651_v42 }
  0xf0   : > { %v3525_v18 = vpop.eup %3524  ;;  %2259 = vst.msk [vmem:[%s3924_s27 + $0x158] sm:$0xf] %vm2172_vm0, %v2769_v53  ;;  %v2771_v28 = vpack.c.bf16 %v1620_v54, %v1620_v54  ;;  %v1622_v7 = vmul.f32 %v3523_v0, %v4508_v45  ;;  %3550 = vpow2.f32 %v2529_v49  ;;  %v607_v23 = vmul.f32 %v4532_v10, %v3025_v56 }
  0xf1   : > { %v3527_v9 = vpop.eup %3526  ;;  %2260 = vst.msk [vmem:[%s3924_s27 + $0x15c] sm:$0xf] %vm2172_vm0, %v2770_v14  ;;  %v2772_v61 = vpack.c.bf16 %v1621_v57, %v1621_v57  ;;  %v1623_v6 = vmul.f32 %v3525_v18, %v4513_v27  ;;  %3552 = vpow2.f32 %v2530_v26  ;;  %v608_v50 = vmul.f32 %v4532_v10, %v3026_v55 }
  0xf2   : > { %v3529_v43 = vpop.eup %3528  ;;  %2261 = vst.msk [vmem:[%s3924_s27 + $0x160] sm:$0xf] %vm2172_vm0, %v2771_v28  ;;  %v2773_v51 = vpack.c.bf16 %v1622_v7, %v1622_v7  ;;  %v1242_v36 = vadd.f32 1.0, %v3527_v9  ;;  %v4673_v45 = vadd.f32 %v4546_v40, %v607_v23  ;;  %v3029_v16 = vunpack.c.l.bf16 %v3120_v24 }
  0xf3   : > { %v3531_v38 = vpop.eup %3530  ;;  %2262 = vst.msk [vmem:[%s3924_s27 + $0x164] sm:$0xf] %vm2172_vm0, %v2772_v61  ;;  %v2774_v2 = vpack.c.bf16 %v1623_v6, %v1623_v6  ;;  %v1243_v27 = vadd.f32 1.0, %v3529_v43  ;;  %v4678_v8 = vadd.f32 %v4546_v40, %v608_v50  ;;  %v3030_v41 = vunpack.c.h.bf16 %v3120_v24 }
  0xf4   : > { %v3533_v31 = vpop.eup %3532  ;;  %2263 = vst.msk [vmem:[%s3924_s27 + $0x168] sm:$0xf] %vm2172_vm0, %v2773_v51  ;;  %v1624_v5 = vmul.f32 %v3531_v38, %v4549_v34  ;;  %3554 = vrcp.f32 %v1242_v36  ;;  %v2531_v30 = vmul.f32 -1.442695, %v4673_v45  ;;  %v609_v46 = vmul.f32 %v4532_v10, %v3029_v16  ;;  %v3123_v36 = vld [vmem:[%s3740_s20 + $0x1c8] sm:$0xff]  }
  0xf5   : > { %v3535_v29 = vpop.eup %3534  ;;  %2264 = vst.msk [vmem:[%s3924_s27 + $0x16c] sm:$0xf] %vm2172_vm0, %v2774_v2  ;;  %v1625_v44 = vmul.f32 %v3533_v31, %v4555_v1  ;;  %3556 = vrcp.f32 %v1243_v27  ;;  %v2532_v19 = vmul.f32 -1.442695, %v4678_v8  ;;  %v610_v20 = vmul.f32 %v4532_v10, %v3030_v41  ;;  %v3124_v41 = vld [vmem:[%s3740_s20 + $0x1d0] sm:$0xff]  }
  0xf6   : > { %v3537_v35 = vpop.eup %3536  ;;  %v2775_v34 = vpack.c.bf16 %v1624_v5, %v1624_v5  ;;  %v1244_v56 = vadd.f32 1.0, %v3535_v29  ;;  %3558 = vpow2.f32 %v2531_v30  ;;  %v4692_v15 = vadd.f32 %v4546_v40, %v609_v46 }
  0xf7   : > { %v3539_v4 = vpop.eup %3538  ;;  %v2776_v52 = vpack.c.bf16 %v1625_v44, %v1625_v44  ;;  %v1245_v55 = vadd.f32 1.0, %v3537_v35  ;;  %3560 = vpow2.f32 %v2532_v19  ;;  %v4695_v1 = vadd.f32 %v4546_v40, %v610_v20 }
  0xf8   : > { %v3541_v37 = vpop.eup %3540  ;;  %2265 = vst.msk [vmem:[%s3924_s27 + $0x170] sm:$0xf] %vm2172_vm0, %v2775_v34  ;;  %3562 = vrcp.f32 %v1244_v56  ;;  %v1246_v11 = vadd.f32 1.0, %v3539_v4  ;;  %v2533_v25 = vmul.f32 -1.442695, %v4692_v15  ;;  %v3033_v13 = vunpack.c.l.bf16 %v3121_v47 }
  0xf9   : > { %v3543_v22 = vpop.eup %3542  ;;  %2266 = vst.msk [vmem:[%s3924_s27 + $0x174] sm:$0xf] %vm2172_vm0, %v2776_v52  ;;  %3564 = vrcp.f32 %v1245_v55  ;;  %v1247_v32 = vadd.f32 1.0, %v3541_v37  ;;  %v2534_v53 = vmul.f32 -1.442695, %v4695_v1  ;;  %v3034_v54 = vunpack.c.h.bf16 %v3121_v47 }
  0xfa   : > { %v3545_v49 = vpop.eup %3544  ;;  %3566 = vrcp.f32 %v1246_v11  ;;  %v1248_v0 = vadd.f32 1.0, %v3543_v22  ;;  %v611_v14 = vmul.f32 %v4532_v10, %v3033_v13  ;;  %v3037_v57 = vunpack.c.l.bf16 %v3122_v21 }
  0xfb   : > { %v3547_v26 = vpop.eup %3546  ;;  %3568 = vrcp.f32 %v1247_v32  ;;  %v1249_v24 = vadd.f32 1.0, %v3545_v49  ;;  %v612_v18 = vmul.f32 %v4532_v10, %v3034_v54  ;;  %v3038_v28 = vunpack.c.h.bf16 %v3122_v21 }
  0xfc   : > { %v3549_v7 = vpop.eup %3548  ;;  %3570 = vrcp.f32 %v1248_v0  ;;  %v1250_v23 = vadd.f32 1.0, %v3547_v26  ;;  %v4707_v9 = vadd.f32 %v4546_v40, %v611_v14  ;;  %v613_v61 = vmul.f32 %v4532_v10, %v3037_v57 }
  0xfd   : > { %v3551_v6 = vpop.eup %3550  ;;  %3572 = vrcp.f32 %v1249_v24  ;;  %v1251_v50 = vadd.f32 1.0, %v3549_v7  ;;  %v4711_v43 = vadd.f32 %v4546_v40, %v612_v18  ;;  %v614_v51 = vmul.f32 %v4532_v10, %v3038_v28  ;;  %v3125_v7 = vld [vmem:[%s3740_s20 + $0x1d8] sm:$0xff]  }
  0xfe   : > { %v3553_v16 = vpop.eup %3552  ;;  %3574 = vrcp.f32 %v1250_v23  ;;  %v1252_v38 = vadd.f32 1.0, %v3551_v6  ;;  %v2535_v2 = vmul.f32 -1.442695, %v4707_v9  ;;  %v4717_v27 = vadd.f32 %v4546_v40, %v613_v61 }
  0xff   : > { %3576 = vrcp.f32 %v1251_v50  ;;  %v1253_v31 = vadd.f32 1.0, %v3553_v16  ;;  %v2536_v5 = vmul.f32 -1.442695, %v4711_v43  ;;  %v4722_v30 = vadd.f32 %v4546_v40, %v614_v51 }
 0x100   : > { %3578 = vrcp.f32 %v1252_v38  ;;  %v2537_v46 = vmul.f32 -1.442695, %v4717_v27  ;;  %v3041_v29 = vunpack.c.l.bf16 %v3123_v36  ;;  %v3042_v44 = vunpack.c.h.bf16 %v3123_v36 }
 0x101   : > { %v3555_v19 = vpop.eup %3554  ;;  %3580 = vrcp.f32 %v1253_v31  ;;  %v2538_v20 = vmul.f32 -1.442695, %v4722_v30  ;;  %v3045_v47 = vunpack.c.l.bf16 %v3124_v41  ;;  %v3046_v35 = vunpack.c.h.bf16 %v3124_v41 }
 0x102   : > { %v3557_v34 = vpop.eup %3556  ;;  %v1626_v56 = vmul.f32 %v3555_v19, %v4576_v17  ;;  %3582 = vpow2.f32 %v2533_v25  ;;  %v615_v4 = vmul.f32 %v4532_v10, %v3041_v29  ;;  %v616_v52 = vmul.f32 %v4532_v10, %v3042_v44 }
 0x103   : > { %v3559_v55 = vpop.eup %3558  ;;  %v1627_v21 = vmul.f32 %v3557_v34, %v4582_v3  ;;  %3584 = vpow2.f32 %v2534_v53  ;;  %v617_v37 = vmul.f32 %v4532_v10, %v3045_v47  ;;  %v618_v11 = vmul.f32 %v4532_v10, %v3046_v35 }
 0x104   : > { %v3561_v13 = vpop.eup %3560  ;;  %v2777_v22 = vpack.c.bf16 %v1626_v56, %v1626_v56  ;;  %v1254_v32 = vadd.f32 1.0, %v3559_v55  ;;  %3586 = vpow2.f32 %v2535_v2  ;;  %v4733_v17 = vadd.f32 %v4546_v40, %v615_v4 }
 0x105   : > { %v3563_v25 = vpop.eup %3562  ;;  %v2778_v54 = vpack.c.bf16 %v1627_v21, %v1627_v21  ;;  %v1255_v49 = vadd.f32 1.0, %v3561_v13  ;;  %3588 = vpow2.f32 %v2536_v5  ;;  %v4736_v3 = vadd.f32 %v4546_v40, %v616_v52  ;;  %v3127_v13 = vld [vmem:[%s3740_s20 + $0x1e8] sm:$0xff]  }
 0x106   : > { %v3565_v53 = vpop.eup %3564  ;;  %2267 = vst.msk [vmem:[%s3924_s27 + $0x178] sm:$0xf] %vm2172_vm0, %v2777_v22  ;;  %v1628_v0 = vmul.f32 %v3563_v25, %v4592_v39  ;;  %3590 = vrcp.f32 %v1254_v32  ;;  %v2539_v14 = vmul.f32 -1.442695, %v4733_v17  ;;  %v4743_v57 = vadd.f32 %v4546_v40, %v617_v37 }
 0x107   : > { %v3567_v26 = vpop.eup %3566  ;;  %2268 = vst.msk [vmem:[%s3924_s27 + $0x17c] sm:$0xf] %vm2172_vm0, %v2778_v54  ;;  %v1629_v24 = vmul.f32 %v3565_v53, %v4597_v60  ;;  %3592 = vrcp.f32 %v1255_v49  ;;  %v2540_v18 = vmul.f32 -1.442695, %v4736_v3  ;;  %v4750_v28 = vadd.f32 %v4546_v40, %v618_v11 }
 0x108   : > { %v3569_v39 = vpop.eup %3568  ;;  %v2779_v23 = vpack.c.bf16 %v1628_v0, %v1628_v0  ;;  %v1630_v61 = vmul.f32 %v3567_v26, %v4606_v59  ;;  %3594 = vpow2.f32 %v2537_v46  ;;  %v2541_v6 = vmul.f32 -1.442695, %v4743_v57  ;;  %v3126_v46 = vld [vmem:[%s3740_s20 + $0x1e0] sm:$0xff]  }
 0x109   : > { %v3571_v50 = vpop.eup %3570  ;;  %v2780_v51 = vpack.c.bf16 %v1629_v24, %v1629_v24  ;;  %v1631_v60 = vmul.f32 %v3569_v39, %v4609_v58  ;;  %3596 = vpow2.f32 %v2538_v20  ;;  %v2542_v36 = vmul.f32 -1.442695, %v4750_v28 }
 0x10a   : > { %v3573_v16 = vpop.eup %3572  ;;  %2269 = vst.msk [vmem:[%s3924_s27 + $0x180] sm:$0xf] %vm2172_vm0, %v2779_v23  ;;  %v2781_v38 = vpack.c.bf16 %v1630_v61, %v1630_v61  ;;  %v1632_v2 = vmul.f32 %v3571_v50, %v4616_v33  ;;  %3598 = vpow2.f32 %v2539_v14  ;;  %v3049_v59 = vunpack.c.l.bf16 %v3125_v7 }
 0x10b   : > { %v3575_v41 = vpop.eup %3574  ;;  %2270 = vst.msk [vmem:[%s3924_s27 + $0x184] sm:$0xf] %vm2172_vm0, %v2780_v51  ;;  %v2782_v31 = vpack.c.bf16 %v1631_v60, %v1631_v60  ;;  %v1633_v5 = vmul.f32 %v3573_v16, %v4620_v48  ;;  %3600 = vpow2.f32 %v2540_v18  ;;  %v3050_v58 = vunpack.c.h.bf16 %v3125_v7 }
 0x10c   : > { %v3577_v29 = vpop.eup %3576  ;;  %2271 = vst.msk [vmem:[%s3924_s27 + $0x188] sm:$0xf] %vm2172_vm0, %v2781_v38  ;;  %v2783_v44 = vpack.c.bf16 %v1632_v2, %v1632_v2  ;;  %v1634_v19 = vmul.f32 %v3575_v41, %v4627_v63  ;;  %3602 = vpow2.f32 %v2541_v6  ;;  %v619_v33 = vmul.f32 %v4532_v10, %v3049_v59  ;;  %v3128_v2 = vld [vmem:[%s3740_s20 + $0x1f0] sm:$0xff]  }
 0x10d   : > { %v3579_v20 = vpop.eup %3578  ;;  %2272 = vst.msk [vmem:[%s3924_s27 + $0x18c] sm:$0xf] %vm2172_vm0, %v2782_v31  ;;  %v2784_v47 = vpack.c.bf16 %v1633_v5, %v1633_v5  ;;  %v1635_v48 = vmul.f32 %v3577_v29, %v4632_v12  ;;  %3604 = vpow2.f32 %v2542_v36  ;;  %v620_v35 = vmul.f32 %v4532_v10, %v3050_v58 }
 0x10e   : > { %v3581_v34 = vpop.eup %3580  ;;  %2273 = vst.msk [vmem:[%s3924_s27 + $0x190] sm:$0xf] %vm2172_vm0, %v2783_v44  ;;  %v2785_v56 = vpack.c.bf16 %v1634_v19, %v1634_v19  ;;  %v1636_v63 = vmul.f32 %v3579_v20, %v4647_v62  ;;  %v4776_v4 = vadd.f32 %v4546_v40, %v619_v33  ;;  %v3053_v52 = vunpack.c.l.bf16 %v3126_v46  ;;  %v3129_v44 = vld [vmem:[%s3740_s20 + $0x1f8] sm:$0xff]  }
 0x10f   : > { %v3583_v55 = vpop.eup %3582  ;;  %2274 = vst.msk [vmem:[%s3924_s27 + $0x194] sm:$0xf] %vm2172_vm0, %v2784_v47  ;;  %v2786_v21 = vpack.c.bf16 %v1635_v48, %v1635_v48  ;;  %v1637_v12 = vmul.f32 %v3581_v34, %v4651_v42  ;;  %v4782_v37 = vadd.f32 %v4546_v40, %v620_v35  ;;  %v3054_v11 = vunpack.c.h.bf16 %v3126_v46 }
 0x110   : > { %v3585_v22 = vpop.eup %3584  ;;  %2275 = vst.msk [vmem:[%s3924_s27 + $0x198] sm:$0xf] %vm2172_vm0, %v2785_v56  ;;  %v2787_v62 = vpack.c.bf16 %v1636_v63, %v1636_v63  ;;  %v1256_v32 = vadd.f32 1.0, %v3583_v55  ;;  %v2543_v25 = vmul.f32 -1.442695, %v4776_v4  ;;  %v621_v54 = vmul.f32 %v4532_v10, %v3053_v52 }
 0x111   : > { %v3587_v49 = vpop.eup %3586  ;;  %2276 = vst.msk [vmem:[%s3924_s27 + $0x19c] sm:$0xf] %vm2172_vm0, %v2786_v21  ;;  %v2788_v42 = vpack.c.bf16 %v1637_v12, %v1637_v12  ;;  %v1257_v53 = vadd.f32 1.0, %v3585_v22  ;;  %v2544_v0 = vmul.f32 -1.442695, %v4782_v37  ;;  %v622_v14 = vmul.f32 %v4532_v10, %v3054_v11 }
 0x112   : > { %v3589_v26 = vpop.eup %3588  ;;  %2277 = vst.msk [vmem:[%s3924_s27 + $0x1a0] sm:$0xf] %vm2172_vm0, %v2787_v62  ;;  %3606 = vrcp.f32 %v1256_v32  ;;  %v1258_v24 = vadd.f32 1.0, %v3587_v49  ;;  %v4796_v18 = vadd.f32 %v4546_v40, %v621_v54  ;;  %v3057_v7 = vunpack.c.l.bf16 %v3127_v13 }
 0x113   : > { %v3591_v39 = vpop.eup %3590  ;;  %2278 = vst.msk [vmem:[%s3924_s27 + $0x1a4] sm:$0xf] %vm2172_vm0, %v2788_v42  ;;  %3608 = vrcp.f32 %v1257_v53  ;;  %v1259_v23 = vadd.f32 1.0, %v3589_v26  ;;  %v4801_v61 = vadd.f32 %v4546_v40, %v622_v14  ;;  %v3058_v6 = vunpack.c.h.bf16 %v3127_v13 }
 0x114   : > { %v3593_v50 = vpop.eup %3592  ;;  %v1638_v51 = vmul.f32 %v3591_v39, %v4673_v45  ;;  %3610 = vrcp.f32 %v1258_v24  ;;  %v623_v60 = vmul.f32 %v4532_v10, %v3057_v7  ;;  %v2545_v5 = vmul.f32 -1.442695, %v4796_v18 }
 0x115   : > { %v3595_v36 = vpop.eup %3594  ;;  %v1639_v16 = vmul.f32 %v3593_v50, %v4678_v8  ;;  %3612 = vrcp.f32 %v1259_v23  ;;  %v624_v38 = vmul.f32 %v4532_v10, %v3058_v6  ;;  %v2546_v29 = vmul.f32 -1.442695, %v4801_v61 }
 0x116   : > { %v3597_v59 = vpop.eup %3596  ;;  %v2789_v41 = vpack.c.bf16 %v1638_v51, %v1638_v51  ;;  %v1260_v31 = vadd.f32 1.0, %v3595_v36  ;;  %3614 = vpow2.f32 %v2543_v25  ;;  %v4814_v33 = vadd.f32 %v4546_v40, %v623_v60 }
 0x117   : > { %v3599_v45 = vpop.eup %3598  ;;  %v2790_v58 = vpack.c.bf16 %v1639_v16, %v1639_v16  ;;  %v1261_v46 = vadd.f32 1.0, %v3597_v59  ;;  %3616 = vpow2.f32 %v2544_v0  ;;  %v3061_v20 = vunpack.c.l.bf16 %v3128_v2 }
 0x118   : > { %v3601_v8 = vpop.eup %3600  ;;  %2279 = vst.msk [vmem:[%s3924_s27 + $0x1a8] sm:$0xf] %vm2172_vm0, %v2789_v41  ;;  %3618 = vrcp.f32 %v1260_v31  ;;  %v1262_v19 = vadd.f32 1.0, %v3599_v45  ;;  %v4819_v35 = vadd.f32 %v4546_v40, %v624_v38  ;;  %v3062_v34 = vunpack.c.h.bf16 %v3128_v2 }
 0x119   : > { %v3603_v47 = vpop.eup %3602  ;;  %2280 = vst.msk [vmem:[%s3924_s27 + $0x1ac] sm:$0xf] %vm2172_vm0, %v2790_v58  ;;  %3620 = vrcp.f32 %v1261_v46  ;;  %v1263_v48 = vadd.f32 1.0, %v3601_v8  ;;  %v625_v52 = vmul.f32 %v4532_v10, %v3061_v20  ;;  %v3065_v55 = vunpack.c.l.bf16 %v3129_v44 }
 0x11a   : > { %v3605_v56 = vpop.eup %3604  ;;  %3622 = vrcp.f32 %v1262_v19  ;;  %v1264_v63 = vadd.f32 1.0, %v3603_v47  ;;  %v626_v12 = vmul.f32 %v4532_v10, %v3062_v34  ;;  %v3066_v11 = vunpack.c.h.bf16 %v3129_v44 }
 0x11b   : > { %3624 = vrcp.f32 %v1263_v48  ;;  %v1265_v21 = vadd.f32 1.0, %v3605_v56  ;;  %v2547_v13 = vmul.f32 -1.442695, %v4814_v33  ;;  %v4825_v22 = vadd.f32 %v4546_v40, %v625_v52 }
 0x11c   : > { %3626 = vrcp.f32 %v1264_v63  ;;  %v627_v62 = vmul.f32 %v4532_v10, %v3065_v55  ;;  %v2548_v32 = vmul.f32 -1.442695, %v4819_v35  ;;  %v4830_v25 = vadd.f32 %v4546_v40, %v626_v12 }
 0x11d   : > { %3628 = vrcp.f32 %v1265_v21  ;;  %v628_v54 = vmul.f32 %v4532_v10, %v3066_v11  ;;  %v2549_v49 = vmul.f32 -1.442695, %v4825_v22 }
 0x11e   : > { %3630 = vpow2.f32 %v2545_v5  ;;  %v4835_v42 = vadd.f32 %v4546_v40, %v627_v62  ;;  %v2550_v0 = vmul.f32 -1.442695, %v4830_v25 }
 0x11f   : > { %v3607_v53 = vpop.eup %3606  ;;  %3632 = vpow2.f32 %v2546_v29  ;;  %v4839_v14 = vadd.f32 %v4546_v40, %v628_v54 }
 0x120   : > { %v3609_v26 = vpop.eup %3608  ;;  %v1640_v24 = vmul.f32 %v3607_v53, %v4692_v15  ;;  %3634 = vpow2.f32 %v2547_v13  ;;  %v2551_v10 = vmul.f32 -1.442695, %v4835_v42 }
 0x121   : > { %v3611_v7 = vpop.eup %3610  ;;  %v1641_v39 = vmul.f32 %v3609_v26, %v4695_v1  ;;  %3636 = vpow2.f32 %v2548_v32  ;;  %v2552_v23 = vmul.f32 -1.442695, %v4839_v14 }
 0x122   : > { %v3613_v6 = vpop.eup %3612  ;;  %v2791_v50 = vpack.c.bf16 %v1640_v24, %v1640_v24  ;;  %v1642_v51 = vmul.f32 %v3611_v7, %v4707_v9  ;;  %3638 = vpow2.f32 %v2549_v49 }
 0x123   : > { %v3615_v40 = vpop.eup %3614  ;;  %v2792_v60 = vpack.c.bf16 %v1641_v39, %v1641_v39  ;;  %v1643_v15 = vmul.f32 %v3613_v6, %v4711_v43  ;;  %3640 = vpow2.f32 %v2550_v0 }
 0x124   : > { %v3617_v36 = vpop.eup %3616  ;;  %2281 = vst.msk [vmem:[%s3924_s27 + $0x1b0] sm:$0xf] %vm2172_vm0, %v2791_v50  ;;  %v2793_v1 = vpack.c.bf16 %v1642_v51, %v1642_v51  ;;  %v1266_v16 = vadd.f32 1.0, %v3615_v40  ;;  %3642 = vpow2.f32 %v2551_v10 }
 0x125   : > { %v3619_v38 = vpop.eup %3618  ;;  %2282 = vst.msk [vmem:[%s3924_s27 + $0x1b4] sm:$0xf] %vm2172_vm0, %v2792_v60  ;;  %v2794_v2 = vpack.c.bf16 %v1643_v15, %v1643_v15  ;;  %v1267_v59 = vadd.f32 1.0, %v3617_v36  ;;  %3644 = vpow2.f32 %v2552_v23 }
 0x126   : > { %v3621_v9 = vpop.eup %3620  ;;  %2283 = vst.msk [vmem:[%s3924_s27 + $0x1b8] sm:$0xf] %vm2172_vm0, %v2793_v1  ;;  %v1644_v43 = vmul.f32 %v3619_v38, %v4717_v27  ;;  %3646 = vrcp.f32 %v1266_v16 }
 0x127   : > { %v3623_v41 = vpop.eup %3622  ;;  %2284 = vst.msk [vmem:[%s3924_s27 + $0x1bc] sm:$0xf] %vm2172_vm0, %v2794_v2  ;;  %v1645_v31 = vmul.f32 %v3621_v9, %v4722_v30  ;;  %3648 = vrcp.f32 %v1267_v59 }
 0x128   : > { %v3625_v5 = vpop.eup %3624  ;;  %v2795_v45 = vpack.c.bf16 %v1644_v43, %v1644_v43  ;;  %v1646_v58 = vmul.f32 %v3623_v41, %v4733_v17 }
 0x129   : > { %v3627_v46 = vpop.eup %3626  ;;  %v2796_v29 = vpack.c.bf16 %v1645_v31, %v1645_v31  ;;  %v1647_v44 = vmul.f32 %v3625_v5, %v4736_v3 }
 0x12a   : > { %v3629_v8 = vpop.eup %3628  ;;  %2285 = vst.msk [vmem:[%s3924_s27 + $0x1c0] sm:$0xf] %vm2172_vm0, %v2795_v45  ;;  %v2797_v27 = vpack.c.bf16 %v1646_v58, %v1646_v58  ;;  %v1648_v19 = vmul.f32 %v3627_v46, %v4743_v57 }
 0x12b   : > { %v3631_v20 = vpop.eup %3630  ;;  %2286 = vst.msk [vmem:[%s3924_s27 + $0x1c4] sm:$0xf] %vm2172_vm0, %v2796_v29  ;;  %v2798_v30 = vpack.c.bf16 %v1647_v44, %v1647_v44  ;;  %v1649_v47 = vmul.f32 %v3629_v8, %v4750_v28 }
 0x12c   : > { %v3633_v17 = vpop.eup %3632  ;;  %2287 = vst.msk [vmem:[%s3924_s27 + $0x1c8] sm:$0xf] %vm2172_vm0, %v2797_v27  ;;  %v2799_v48 = vpack.c.bf16 %v1648_v19, %v1648_v19  ;;  %v1268_v34 = vadd.f32 1.0, %v3631_v20 }
 0x12d   : > { %v3635_v3 = vpop.eup %3634  ;;  %2288 = vst.msk [vmem:[%s3924_s27 + $0x1cc] sm:$0xf] %vm2172_vm0, %v2798_v30  ;;  %v2800_v56 = vpack.c.bf16 %v1649_v47, %v1649_v47  ;;  %v1269_v63 = vadd.f32 1.0, %v3633_v17 }
 0x12e   : > { %v3637_v52 = vpop.eup %3636  ;;  %2289 = vst.msk [vmem:[%s3924_s27 + $0x1d0] sm:$0xf] %vm2172_vm0, %v2799_v48  ;;  %3650 = vrcp.f32 %v1268_v34  ;;  %v1270_v57 = vadd.f32 1.0, %v3635_v3 }
 0x12f   : > { %v3639_v55 = vpop.eup %3638  ;;  %2290 = vst.msk [vmem:[%s3924_s27 + $0x1d4] sm:$0xf] %vm2172_vm0, %v2800_v56  ;;  %3652 = vrcp.f32 %v1269_v63  ;;  %v1271_v28 = vadd.f32 1.0, %v3637_v52 }
 0x130   : > { %v3641_v21 = vpop.eup %3640  ;;  %3654 = vrcp.f32 %v1270_v57  ;;  %v1272_v12 = vadd.f32 1.0, %v3639_v55 }
 0x131   : > { %v3643_v11 = vpop.eup %3642  ;;  %3656 = vrcp.f32 %v1271_v28  ;;  %v1273_v13 = vadd.f32 1.0, %v3641_v21 }
 0x132   : > { %v3645_v62 = vpop.eup %3644  ;;  %3658 = vrcp.f32 %v1272_v12  ;;  %v1274_v32 = vadd.f32 1.0, %v3643_v11 }
 0x133   : > { %v3647_v54 = vpop.eup %3646  ;;  %3660 = vrcp.f32 %v1273_v13  ;;  %v1275_v49 = vadd.f32 1.0, %v3645_v62 }
 0x134   : > { %v3649_v53 = vpop.eup %3648  ;;  %v1650_v0 = vmul.f32 %v3647_v54, %v4776_v4  ;;  %3662 = vrcp.f32 %v1274_v32 }
 0x135   : > { %v1651_v26 = vmul.f32 %v3649_v53, %v4782_v37  ;;  %3664 = vrcp.f32 %v1275_v49 }
 0x136   : > { %v2801_v24 = vpack.c.bf16 %v1650_v0, %v1650_v0 }
 0x137   : > { %v2802_v10 = vpack.c.bf16 %v1651_v26, %v1651_v26 }
 0x138   : > { %2291 = vst.msk [vmem:[%s3924_s27 + $0x1d8] sm:$0xf] %vm2172_vm0, %v2801_v24 }
 0x139   : > { %2292 = vst.msk [vmem:[%s3924_s27 + $0x1dc] sm:$0xf] %vm2172_vm0, %v2802_v10 }
 0x13b   : > { %v3651_v7 = vpop.eup %3650 }
 0x13c   : > { %v3653_v39 = vpop.eup %3652  ;;  %v1652_v23 = vmul.f32 %v3651_v7, %v4796_v18 }
 0x13d   : > { %v3655_v6 = vpop.eup %3654  ;;  %v1653_v50 = vmul.f32 %v3653_v39, %v4801_v61 }
 0x13e   : > { %v3657_v4 = vpop.eup %3656  ;;  %v2803_v51 = vpack.c.bf16 %v1652_v23, %v1652_v23  ;;  %v1654_v37 = vmul.f32 %v3655_v6, %v4814_v33 }
 0x13f   : > { %v3659_v40 = vpop.eup %3658  ;;  %v2804_v60 = vpack.c.bf16 %v1653_v50, %v1653_v50  ;;  %v1655_v15 = vmul.f32 %v3657_v4, %v4819_v35 }
 0x140   : > { %v3661_v36 = vpop.eup %3660  ;;  %2293 = vst.msk [vmem:[%s3924_s27 + $0x1e0] sm:$0xf] %vm2172_vm0, %v2803_v51  ;;  %v2805_v1 = vpack.c.bf16 %v1654_v37, %v1654_v37  ;;  %v1656_v18 = vmul.f32 %v3659_v40, %v4825_v22 }
 0x141   : > { %v3663_v61 = vpop.eup %3662  ;;  %2294 = vst.msk [vmem:[%s3924_s27 + $0x1e4] sm:$0xf] %vm2172_vm0, %v2804_v60  ;;  %v2806_v16 = vpack.c.bf16 %v1655_v15, %v1655_v15  ;;  %v1657_v33 = vmul.f32 %v3661_v36, %v4830_v25 }
 0x142   : > { %v3665_v38 = vpop.eup %3664  ;;  %2295 = vst.msk [vmem:[%s3924_s27 + $0x1e8] sm:$0xf] %vm2172_vm0, %v2805_v1  ;;  %v2807_v35 = vpack.c.bf16 %v1656_v18, %v1656_v18  ;;  %v1658_v2 = vmul.f32 %v3663_v61, %v4835_v42 }
 0x143   : > { %2296 = vst.msk [vmem:[%s3924_s27 + $0x1ec] sm:$0xf] %vm2172_vm0, %v2806_v16  ;;  %v2808_v59 = vpack.c.bf16 %v1657_v33, %v1657_v33  ;;  %v1659_v9 = vmul.f32 %v3665_v38, %v4839_v14 }
 0x144   : > { %2297 = vst.msk [vmem:[%s3924_s27 + $0x1f0] sm:$0xf] %vm2172_vm0, %v2807_v35  ;;  %v2809_v22 = vpack.c.bf16 %v1658_v2, %v1658_v2 }
 0x145   : > { %2298 = vst.msk [vmem:[%s3924_s27 + $0x1f4] sm:$0xf] %vm2172_vm0, %v2808_v59  ;;  %v2810_v43 = vpack.c.bf16 %v1659_v9, %v1659_v9 }
 0x146   : > { %2299 = vst.msk [vmem:[%s3924_s27 + $0x1f8] sm:$0xf] %vm2172_vm0, %v2809_v22 }
 0x147   : > { %2300 = vst.msk [vmem:[%s3924_s27 + $0x1fc] sm:$0xf] %vm2172_vm0, %v2810_v43 }
 0x148 PF: > { %s13_s14 = sadd.s32 1, %s3692_s14   ;;  %s4916_s12 = smov %s3688_s13 }
 0x149   : > { %p10_p5 = scmp.ge.s32.totalorder %s13_s14, 38   ;;  %s4917_s13 = smov %s4919_s15 }
 0x14b   :  { %12 = sbr.rel (!%p10_p5) target bundleno = 2 (0x2), region = 68 }

</bundles_post_ra>
